<compile_context>
chip_gen: v7x
topology: tpu7x:2x2x1
jax: 0.10.0
libtpu: 0.0.40
codegen_flags: <defaults>
</compile_context>

<pallas_src>
import functools

import jax
import jax.numpy as jnp
from jax.experimental import pallas as pl
from jax.experimental.pallas import tpu as pltpu


# ---------------------------------------------------------------------------
# Pallas kernel: one fused bidirectional LSTM layer over the whole sequence
# ---------------------------------------------------------------------------
def _bilstm_layer_kernel(emit_seq, gf_ref, gb_ref, whhf_ref, whhb_ref, *out_refs):
    """Fused bidirectional LSTM layer (time-major, full sequence in one shot).

    gf_ref : (T, B, 4H) f32  precomputed  x_t @ W_ih_fwd^T + (b_ih+b_hh)_fwd  (gate order i,f,g,o)
    gb_ref : (T, B, 4H) f32  precomputed  x_t @ W_ih_bwd^T + (b_ih+b_hh)_bwd  (same time order as x)
    whhf_ref / whhb_ref : (H, 4H) bf16   recurrent weights (pre-transposed)
    out_refs:
      emit_seq=True : seq_ref (T, B, 2H) f32 = [h_fwd(t) | h_bwd(t)],  hfin_ref (B, 2H) f32
      emit_seq=False: hfin_ref (B, 2H) f32 = [h_fwd(T-1) | h_bwd(0)]
    """
    if emit_seq:
        seq_ref, hfin_ref = out_refs
    else:
        (hfin_ref,) = out_refs

    T, B, _ = gf_ref.shape
    H = whhf_ref.shape[0]

    # Recurrent weights stay resident in vregs/VMEM for the whole sequence.
    whh_f = whhf_ref[...]
    whh_b = whhb_ref[...]

    def cell(gates_in, h_prev, c_prev, whh):
        # Only the (B,H)@(H,4H) recurrent matmul stays inside the serial loop.
        gates = gates_in + jnp.dot(h_prev.astype(jnp.bfloat16), whh,
                                   preferred_element_type=jnp.float32)
        i = jax.nn.sigmoid(gates[:, 0 * H:1 * H])
        f = jax.nn.sigmoid(gates[:, 1 * H:2 * H])
        g = jnp.tanh(gates[:, 2 * H:3 * H])
        o = jax.nn.sigmoid(gates[:, 3 * H:4 * H])
        c = f * c_prev + i * g
        h = o * jnp.tanh(c)
        return h, c

    def step(t, carry):
        h_f, c_f, h_b, c_b = carry
        # Forward direction consumes time step t.
        h_f, c_f = cell(gf_ref[t], h_f, c_f, whh_f)
        # Backward direction consumes time step T-1-t (no jnp.flip of x / outputs).
        tb = T - 1 - t
        h_b, c_b = cell(gb_ref[tb], h_b, c_b, whh_b)
        if emit_seq:
            seq_ref[t, :, 0:H] = h_f
            seq_ref[tb, :, H:2 * H] = h_b
        return h_f, c_f, h_b, c_b

    zeros = jnp.zeros((B, H), jnp.float32)
    h_f, c_f, h_b, c_b = jax.lax.fori_loop(
        0, T, step, (zeros, zeros, zeros, zeros), unroll=(T <= 32))

    hfin_ref[:, 0:H] = h_f
    hfin_ref[:, H:2 * H] = h_b


# ---------------------------------------------------------------------------
# Wrapper around the fused layer kernel
# ---------------------------------------------------------------------------
def bilstm_layer(gates_fwd, gates_bwd, w_hh_fwd_t, w_hh_bwd_t, *, emit_seq):
    """gates_*: (T, B, 4H) f32;  w_hh_*_t: (H, 4H).  Returns (seq, h_final) or h_final."""
    T, B, G = gates_fwd.shape
    H = G // 4

    hfin_sds = jax.ShapeDtypeStruct((B, 2 * H), jnp.float32)
    hfin_spec = pl.BlockSpec((B, 2 * H), lambda i: (0, 0))
    if emit_seq:
        out_shape = (jax.ShapeDtypeStruct((T, B, 2 * H), jnp.float32), hfin_sds)
        out_specs = [pl.BlockSpec((T, B, 2 * H), lambda i: (0, 0, 0)), hfin_spec]
    else:
        out_shape = hfin_sds
        out_specs = hfin_spec

    return pl.pallas_call(
        functools.partial(_bilstm_layer_kernel, emit_seq),
        out_shape=out_shape,
        grid_spec=pltpu.PrefetchScalarGridSpec(
            num_scalar_prefetch=0,
            grid=(1,),  # whole sequence handled inside one invocation
            in_specs=[
                pl.BlockSpec((T, B, G), lambda i: (0, 0, 0)),   # gates fwd
                pl.BlockSpec((T, B, G), lambda i: (0, 0, 0)),   # gates bwd
                pl.BlockSpec((H, G), lambda i: (0, 0)),          # W_hh fwd (bf16)
                pl.BlockSpec((H, G), lambda i: (0, 0)),          # W_hh bwd (bf16)
            ],
            out_specs=out_specs,
        ),
        compiler_params=pltpu.CompilerParams(
            dimension_semantics=("arbitrary",)),  # recurrence -> sequential
    )(gates_fwd, gates_bwd,
      w_hh_fwd_t.astype(jnp.bfloat16), w_hh_bwd_t.astype(jnp.bfloat16))


# ---------------------------------------------------------------------------
# Parameters
# ---------------------------------------------------------------------------
def init_params(key, vocab_size, embedding_dim, hidden_dim, n_layers):
    """Deterministic parameter init mimicking PyTorch shapes / U(-1/sqrt(H), 1/sqrt(H))."""
    key, k_emb = jax.random.split(key)
    params = {"embedding": jax.random.normal(
        k_emb, (vocab_size, embedding_dim), jnp.float32)}

    scale = 1.0 / float(hidden_dim) ** 0.5
    layers = []
    for layer in range(n_layers):
        in_dim = embedding_dim if layer == 0 else 2 * hidden_dim
        dirs = []
        for _direction in range(2):  # forward, backward
            key, k1, k2, k3, k4 = jax.random.split(key, 5)
            w_ih = jax.random.uniform(k1, (4 * hidden_dim, in_dim),
                                      jnp.float32, -scale, scale)
            w_hh = jax.random.uniform(k2, (4 * hidden_dim, hidden_dim),
                                      jnp.float32, -scale, scale)
            b_ih = jax.random.uniform(k3, (4 * hidden_dim,),
                                      jnp.float32, -scale, scale)
            b_hh = jax.random.uniform(k4, (4 * hidden_dim,),
                                      jnp.float32, -scale, scale)
            dirs.append({
                "w_ih_t": w_ih.T,          # (in_dim, 4H)
                "w_hh_t": w_hh.T,          # (H, 4H)
                "bias": b_ih + b_hh,       # (4H,) combined bias
            })
        layers.append(dirs)
    params["lstm"] = layers

    key, kw, kb = jax.random.split(key, 3)
    fc_scale = 1.0 / float(2 * hidden_dim) ** 0.5
    params["fc_w_t"] = jax.random.uniform(kw, (2 * hidden_dim, 1),
                                          jnp.float32, -fc_scale, fc_scale)
    params["fc_b"] = jax.random.uniform(kb, (1, 1),
                                        jnp.float32, -fc_scale, fc_scale)
    return params


# ---------------------------------------------------------------------------
# Forward pass
# ---------------------------------------------------------------------------
@jax.jit
def lstm_model_forward(params, text):
    """text: (B, T) int32 token ids -> (B, 1) sigmoid probabilities."""
    emb = jnp.take(params["embedding"], text, axis=0)        # (B, T, E)
    x = jnp.transpose(emb, (1, 0, 2)).astype(jnp.float32)     # time-major (T, B, E)

    n_layers = len(params["lstm"])
    h_final = None
    for li, dirs in enumerate(params["lstm"]):
        T, B, D = x.shape
        # Input projection hoisted out of the recurrence: one big matmul per direction.
        x2d = x.reshape(T * B, D).astype(jnp.bfloat16)

        def in_proj(d, x2d=x2d, T=T, B=B):
            g = jnp.dot(x2d, d["w_ih_t"].astype(jnp.bfloat16),
                        preferred_element_type=jnp.float32)
            return g.reshape(T, B, -1) + d["bias"]

        gates_fwd = in_proj(dirs[0])
        gates_bwd = in_proj(dirs[1])

        if li == n_layers - 1:
            # Last layer: its full sequence output is never consumed -> skip writing it.
            h_final = bilstm_layer(gates_fwd, gates_bwd,
                                   dirs[0]["w_hh_t"], dirs[1]["w_hh_t"],
                                   emit_seq=False)
        else:
            x, h_final = bilstm_layer(gates_fwd, gates_bwd,
                                      dirs[0]["w_hh_t"], dirs[1]["w_hh_t"],
                                      emit_seq=True)
        # TODO(synk): inter-layer LSTM dropout / nn.Dropout are identity at inference time.

    # FC + sigmoid head: ~hundreds of FLOPs with lane-width-1 output -> plain JAX/XLA.
    logits = jnp.dot(h_final, params["fc_w_t"]) + params["fc_b"]   # (B, 1)
    return jax.nn.sigmoid(logits)


# ---------------------------------------------------------------------------
if __name__ == "__main__":
    VOCAB_SIZE = 50
    EMBEDDING_DIM = 32
    HIDDEN_DIM = 32
    N_LAYERS = 2
    BATCH = 2
    SEQ = 8

    key = jax.random.PRNGKey(0)
    key, k_params, k_text = jax.random.split(key, 3)
    params = init_params(k_params, VOCAB_SIZE, EMBEDDING_DIM, HIDDEN_DIM, N_LAYERS)
    text = jax.random.randint(k_text, (BATCH, SEQ), 0, VOCAB_SIZE, dtype=jnp.int32)

    out = lstm_model_forward(params, text)
    out = jax.block_until_ready(out)
    assert out.shape == (BATCH, 1)
    assert bool(jnp.all((out >= 0.0) & (out <= 1.0)))
    print("KERNEL_OK")
</pallas_src>

<mosaic_0001>
module attributes {stable_mosaic.version = 11 : i64} {
  func.func @_bilstm_layer_kernel(%arg0: i32, %arg1: memref<8x2x128xf32, #tpu.memory_space<vmem>>, %arg2: memref<8x2x128xf32, #tpu.memory_space<vmem>>, %arg3: memref<32x128xbf16, #tpu.memory_space<vmem>>, %arg4: memref<32x128xbf16, #tpu.memory_space<vmem>>, %arg5: memref<2x64xf32, #tpu.memory_space<vmem>>) attributes {dimension_semantics = [#tpu.dimension_semantics<arbitrary>], iteration_bounds = array<i64: 1>, scalar_prefetch = 0 : i64, scratch_operands = 0 : i64, tpu.core_type = #tpu.core_type<tc>, window_params = [{pipeline_mode = #tpu.pipeline_mode<synchronous>, transform_indices = @transform_0, window_bounds = array<i64: 8, 2, 128>}, {pipeline_mode = #tpu.pipeline_mode<synchronous>, transform_indices = @transform_1, window_bounds = array<i64: 8, 2, 128>}, {pipeline_mode = #tpu.pipeline_mode<synchronous>, transform_indices = @transform_2, window_bounds = array<i64: 32, 128>}, {pipeline_mode = #tpu.pipeline_mode<synchronous>, transform_indices = @transform_3, window_bounds = array<i64: 32, 128>}, {pipeline_mode = #tpu.pipeline_mode<synchronous>, transform_indices = @transform_4, window_bounds = array<i64: 2, 64>}]} {
    %c0 = arith.constant 0 : index
    %c0_0 = arith.constant 0 : index
    %0 = vector.load %arg3[%c0, %c0_0] : memref<32x128xbf16, #tpu.memory_space<vmem>>, vector<32x128xbf16>
    %c0_1 = arith.constant 0 : index
    %c0_2 = arith.constant 0 : index
    %1 = vector.load %arg4[%c0_1, %c0_2] : memref<32x128xbf16, #tpu.memory_space<vmem>>, vector<32x128xbf16>
    %cst = arith.constant 0.000000e+00 : f32
    %2 = vector.broadcast %cst : f32 to vector<2x32xf32>
    %c0_i32 = arith.constant 0 : i32
    %3 = arith.index_cast %c0_i32 : i32 to index
    %c0_3 = arith.constant 0 : index
    %c0_4 = arith.constant 0 : index
    %4 = vector.load %arg1[%3, %c0_3, %c0_4] : memref<8x2x128xf32, #tpu.memory_space<vmem>>, vector<1x2x128xf32>
    %5 = vector.shape_cast %4 : vector<1x2x128xf32> to vector<2x128xf32>
    %6 = arith.truncf %2 : vector<2x32xf32> to vector<2x32xbf16>
    %cst_5 = arith.constant dense<0.000000e+00> : vector<2x128xf32>
    %7 = tpu.matmul %6, %0, %cst_5 {dimension_numbers = #tpu.dot_dimension_numbers<[1], [0], [0], [1], [0, 0, 1, 1], [], []>} : vector<2x32xbf16>, vector<32x128xbf16>, vector<2x128xf32> -> vector<2x128xf32>
    %8 = arith.addf %5, %7 : vector<2x128xf32>
    %9 = vector.extract_strided_slice %8 {offsets = [0, 0], sizes = [2, 32], strides = [1, 1]} : vector<2x128xf32> to vector<2x32xf32>
    %10 = arith.negf %9 : vector<2x32xf32>
    %11 = math.exp %10 : vector<2x32xf32>
    %cst_6 = arith.constant 1.000000e+00 : f32
    %12 = vector.broadcast %cst_6 : f32 to vector<2x32xf32>
    %13 = arith.addf %12, %11 : vector<2x32xf32>
    %14 = arith.divf %12, %13 : vector<2x32xf32>
    %15 = vector.extract_strided_slice %8 {offsets = [0, 32], sizes = [2, 32], strides = [1, 1]} : vector<2x128xf32> to vector<2x32xf32>
    %16 = arith.negf %15 : vector<2x32xf32>
    %17 = math.exp %16 : vector<2x32xf32>
    %cst_7 = arith.constant 1.000000e+00 : f32
    %18 = vector.broadcast %cst_7 : f32 to vector<2x32xf32>
    %19 = arith.addf %18, %17 : vector<2x32xf32>
    %20 = arith.divf %18, %19 : vector<2x32xf32>
    %21 = vector.extract_strided_slice %8 {offsets = [0, 64], sizes = [2, 32], strides = [1, 1]} : vector<2x128xf32> to vector<2x32xf32>
    %22 = math.tanh %21 : vector<2x32xf32>
    %23 = vector.extract_strided_slice %8 {offsets = [0, 96], sizes = [2, 32], strides = [1, 1]} : vector<2x128xf32> to vector<2x32xf32>
    %24 = arith.negf %23 : vector<2x32xf32>
    %25 = math.exp %24 : vector<2x32xf32>
    %cst_8 = arith.constant 1.000000e+00 : f32
    %26 = vector.broadcast %cst_8 : f32 to vector<2x32xf32>
    %27 = arith.addf %26, %25 : vector<2x32xf32>
    %28 = arith.divf %26, %27 : vector<2x32xf32>
    %29 = arith.mulf %20, %2 : vector<2x32xf32>
    %30 = arith.mulf %14, %22 : vector<2x32xf32>
    %31 = arith.addf %29, %30 : vector<2x32xf32>
    %32 = math.tanh %31 : vector<2x32xf32>
    %33 = arith.mulf %28, %32 : vector<2x32xf32>
    %c7_i32 = arith.constant 7 : i32
    %34 = arith.subi %c7_i32, %c0_i32 : i32
    %35 = arith.index_cast %34 : i32 to index
    %c0_9 = arith.constant 0 : index
    %c0_10 = arith.constant 0 : index
    %36 = vector.load %arg2[%35, %c0_9, %c0_10] : memref<8x2x128xf32, #tpu.memory_space<vmem>>, vector<1x2x128xf32>
    %37 = vector.shape_cast %36 : vector<1x2x128xf32> to vector<2x128xf32>
    %38 = arith.truncf %2 : vector<2x32xf32> to vector<2x32xbf16>
    %cst_11 = arith.constant dense<0.000000e+00> : vector<2x128xf32>
    %39 = tpu.matmul %38, %1, %cst_11 {dimension_numbers = #tpu.dot_dimension_numbers<[1], [0], [0], [1], [0, 0, 1, 1], [], []>} : vector<2x32xbf16>, vector<32x128xbf16>, vector<2x128xf32> -> vector<2x128xf32>
    %40 = arith.addf %37, %39 : vector<2x128xf32>
    %41 = vector.extract_strided_slice %40 {offsets = [0, 0], sizes = [2, 32], strides = [1, 1]} : vector<2x128xf32> to vector<2x32xf32>
    %42 = arith.negf %41 : vector<2x32xf32>
    %43 = math.exp %42 : vector<2x32xf32>
    %cst_12 = arith.constant 1.000000e+00 : f32
    %44 = vector.broadcast %cst_12 : f32 to vector<2x32xf32>
    %45 = arith.addf %44, %43 : vector<2x32xf32>
    %46 = arith.divf %44, %45 : vector<2x32xf32>
    %47 = vector.extract_strided_slice %40 {offsets = [0, 32], sizes = [2, 32], strides = [1, 1]} : vector<2x128xf32> to vector<2x32xf32>
    %48 = arith.negf %47 : vector<2x32xf32>
    %49 = math.exp %48 : vector<2x32xf32>
    %cst_13 = arith.constant 1.000000e+00 : f32
    %50 = vector.broadcast %cst_13 : f32 to vector<2x32xf32>
    %51 = arith.addf %50, %49 : vector<2x32xf32>
    %52 = arith.divf %50, %51 : vector<2x32xf32>
    %53 = vector.extract_strided_slice %40 {offsets = [0, 64], sizes = [2, 32], strides = [1, 1]} : vector<2x128xf32> to vector<2x32xf32>
    %54 = math.tanh %53 : vector<2x32xf32>
    %55 = vector.extract_strided_slice %40 {offsets = [0, 96], sizes = [2, 32], strides = [1, 1]} : vector<2x128xf32> to vector<2x32xf32>
    %56 = arith.negf %55 : vector<2x32xf32>
    %57 = math.exp %56 : vector<2x32xf32>
    %cst_14 = arith.constant 1.000000e+00 : f32
    %58 = vector.broadcast %cst_14 : f32 to vector<2x32xf32>
    %59 = arith.addf %58, %57 : vector<2x32xf32>
    %60 = arith.divf %58, %59 : vector<2x32xf32>
    %61 = arith.mulf %52, %2 : vector<2x32xf32>
    %62 = arith.mulf %46, %54 : vector<2x32xf32>
    %63 = arith.addf %61, %62 : vector<2x32xf32>
    %64 = math.tanh %63 : vector<2x32xf32>
    %65 = arith.mulf %60, %64 : vector<2x32xf32>
    %c1_i32 = arith.constant 1 : i32
    %66 = arith.index_cast %c1_i32 : i32 to index
    %c0_15 = arith.constant 0 : index
    %c0_16 = arith.constant 0 : index
    %67 = vector.load %arg1[%66, %c0_15, %c0_16] : memref<8x2x128xf32, #tpu.memory_space<vmem>>, vector<1x2x128xf32>
    %68 = vector.shape_cast %67 : vector<1x2x128xf32> to vector<2x128xf32>
    %69 = arith.truncf %33 : vector<2x32xf32> to vector<2x32xbf16>
    %cst_17 = arith.constant dense<0.000000e+00> : vector<2x128xf32>
    %70 = tpu.matmul %69, %0, %cst_17 {dimension_numbers = #tpu.dot_dimension_numbers<[1], [0], [0], [1], [0, 0, 1, 1], [], []>} : vector<2x32xbf16>, vector<32x128xbf16>, vector<2x128xf32> -> vector<2x128xf32>
    %71 = arith.addf %68, %70 : vector<2x128xf32>
    %72 = vector.extract_strided_slice %71 {offsets = [0, 0], sizes = [2, 32], strides = [1, 1]} : vector<2x128xf32> to vector<2x32xf32>
    %73 = arith.negf %72 : vector<2x32xf32>
    %74 = math.exp %73 : vector<2x32xf32>
    %cst_18 = arith.constant 1.000000e+00 : f32
    %75 = vector.broadcast %cst_18 : f32 to vector<2x32xf32>
    %76 = arith.addf %75, %74 : vector<2x32xf32>
    %77 = arith.divf %75, %76 : vector<2x32xf32>
    %78 = vector.extract_strided_slice %71 {offsets = [0, 32], sizes = [2, 32], strides = [1, 1]} : vector<2x128xf32> to vector<2x32xf32>
    %79 = arith.negf %78 : vector<2x32xf32>
    %80 = math.exp %79 : vector<2x32xf32>
    %cst_19 = arith.constant 1.000000e+00 : f32
    %81 = vector.broadcast %cst_19 : f32 to vector<2x32xf32>
    %82 = arith.addf %81, %80 : vector<2x32xf32>
    %83 = arith.divf %81, %82 : vector<2x32xf32>
    %84 = vector.extract_strided_slice %71 {offsets = [0, 64], sizes = [2, 32], strides = [1, 1]} : vector<2x128xf32> to vector<2x32xf32>
    %85 = math.tanh %84 : vector<2x32xf32>
    %86 = vector.extract_strided_slice %71 {offsets = [0, 96], sizes = [2, 32], strides = [1, 1]} : vector<2x128xf32> to vector<2x32xf32>
    %87 = arith.negf %86 : vector<2x32xf32>
    %88 = math.exp %87 : vector<2x32xf32>
    %cst_20 = arith.constant 1.000000e+00 : f32
    %89 = vector.broadcast %cst_20 : f32 to vector<2x32xf32>
    %90 = arith.addf %89, %88 : vector<2x32xf32>
    %91 = arith.divf %89, %90 : vector<2x32xf32>
    %92 = arith.mulf %83, %31 : vector<2x32xf32>
    %93 = arith.mulf %77, %85 : vector<2x32xf32>
    %94 = arith.addf %92, %93 : vector<2x32xf32>
    %95 = math.tanh %94 : vector<2x32xf32>
    %96 = arith.mulf %91, %95 : vector<2x32xf32>
    %c7_i32_21 = arith.constant 7 : i32
    %97 = arith.subi %c7_i32_21, %c1_i32 : i32
    %98 = arith.index_cast %97 : i32 to index
    %c0_22 = arith.constant 0 : index
    %c0_23 = arith.constant 0 : index
    %99 = vector.load %arg2[%98, %c0_22, %c0_23] : memref<8x2x128xf32, #tpu.memory_space<vmem>>, vector<1x2x128xf32>
    %100 = vector.shape_cast %99 : vector<1x2x128xf32> to vector<2x128xf32>
    %101 = arith.truncf %65 : vector<2x32xf32> to vector<2x32xbf16>
    %cst_24 = arith.constant dense<0.000000e+00> : vector<2x128xf32>
    %102 = tpu.matmul %101, %1, %cst_24 {dimension_numbers = #tpu.dot_dimension_numbers<[1], [0], [0], [1], [0, 0, 1, 1], [], []>} : vector<2x32xbf16>, vector<32x128xbf16>, vector<2x128xf32> -> vector<2x128xf32>
    %103 = arith.addf %100, %102 : vector<2x128xf32>
    %104 = vector.extract_strided_slice %103 {offsets = [0, 0], sizes = [2, 32], strides = [1, 1]} : vector<2x128xf32> to vector<2x32xf32>
    %105 = arith.negf %104 : vector<2x32xf32>
    %106 = math.exp %105 : vector<2x32xf32>
    %cst_25 = arith.constant 1.000000e+00 : f32
    %107 = vector.broadcast %cst_25 : f32 to vector<2x32xf32>
    %108 = arith.addf %107, %106 : vector<2x32xf32>
    %109 = arith.divf %107, %108 : vector<2x32xf32>
    %110 = vector.extract_strided_slice %103 {offsets = [0, 32], sizes = [2, 32], strides = [1, 1]} : vector<2x128xf32> to vector<2x32xf32>
    %111 = arith.negf %110 : vector<2x32xf32>
    %112 = math.exp %111 : vector<2x32xf32>
    %cst_26 = arith.constant 1.000000e+00 : f32
    %113 = vector.broadcast %cst_26 : f32 to vector<2x32xf32>
    %114 = arith.addf %113, %112 : vector<2x32xf32>
    %115 = arith.divf %113, %114 : vector<2x32xf32>
    %116 = vector.extract_strided_slice %103 {offsets = [0, 64], sizes = [2, 32], strides = [1, 1]} : vector<2x128xf32> to vector<2x32xf32>
    %117 = math.tanh %116 : vector<2x32xf32>
    %118 = vector.extract_strided_slice %103 {offsets = [0, 96], sizes = [2, 32], strides = [1, 1]} : vector<2x128xf32> to vector<2x32xf32>
    %119 = arith.negf %118 : vector<2x32xf32>
    %120 = math.exp %119 : vector<2x32xf32>
    %cst_27 = arith.constant 1.000000e+00 : f32
    %121 = vector.broadcast %cst_27 : f32 to vector<2x32xf32>
    %122 = arith.addf %121, %120 : vector<2x32xf32>
    %123 = arith.divf %121, %122 : vector<2x32xf32>
    %124 = arith.mulf %115, %63 : vector<2x32xf32>
    %125 = arith.mulf %109, %117 : vector<2x32xf32>
    %126 = arith.addf %124, %125 : vector<2x32xf32>
    %127 = math.tanh %126 : vector<2x32xf32>
    %128 = arith.mulf %123, %127 : vector<2x32xf32>
    %c2_i32 = arith.constant 2 : i32
    %129 = arith.index_cast %c2_i32 : i32 to index
    %c0_28 = arith.constant 0 : index
    %c0_29 = arith.constant 0 : index
    %130 = vector.load %arg1[%129, %c0_28, %c0_29] : memref<8x2x128xf32, #tpu.memory_space<vmem>>, vector<1x2x128xf32>
    %131 = vector.shape_cast %130 : vector<1x2x128xf32> to vector<2x128xf32>
    %132 = arith.truncf %96 : vector<2x32xf32> to vector<2x32xbf16>
    %cst_30 = arith.constant dense<0.000000e+00> : vector<2x128xf32>
    %133 = tpu.matmul %132, %0, %cst_30 {dimension_numbers = #tpu.dot_dimension_numbers<[1], [0], [0], [1], [0, 0, 1, 1], [], []>} : vector<2x32xbf16>, vector<32x128xbf16>, vector<2x128xf32> -> vector<2x128xf32>
    %134 = arith.addf %131, %133 : vector<2x128xf32>
    %135 = vector.extract_strided_slice %134 {offsets = [0, 0], sizes = [2, 32], strides = [1, 1]} : vector<2x128xf32> to vector<2x32xf32>
    %136 = arith.negf %135 : vector<2x32xf32>
    %137 = math.exp %136 : vector<2x32xf32>
    %cst_31 = arith.constant 1.000000e+00 : f32
    %138 = vector.broadcast %cst_31 : f32 to vector<2x32xf32>
    %139 = arith.addf %138, %137 : vector<2x32xf32>
    %140 = arith.divf %138, %139 : vector<2x32xf32>
    %141 = vector.extract_strided_slice %134 {offsets = [0, 32], sizes = [2, 32], strides = [1, 1]} : vector<2x128xf32> to vector<2x32xf32>
    %142 = arith.negf %141 : vector<2x32xf32>
    %143 = math.exp %142 : vector<2x32xf32>
    %cst_32 = arith.constant 1.000000e+00 : f32
    %144 = vector.broadcast %cst_32 : f32 to vector<2x32xf32>
    %145 = arith.addf %144, %143 : vector<2x32xf32>
    %146 = arith.divf %144, %145 : vector<2x32xf32>
    %147 = vector.extract_strided_slice %134 {offsets = [0, 64], sizes = [2, 32], strides = [1, 1]} : vector<2x128xf32> to vector<2x32xf32>
    %148 = math.tanh %147 : vector<2x32xf32>
    %149 = vector.extract_strided_slice %134 {offsets = [0, 96], sizes = [2, 32], strides = [1, 1]} : vector<2x128xf32> to vector<2x32xf32>
    %150 = arith.negf %149 : vector<2x32xf32>
    %151 = math.exp %150 : vector<2x32xf32>
    %cst_33 = arith.constant 1.000000e+00 : f32
    %152 = vector.broadcast %cst_33 : f32 to vector<2x32xf32>
    %153 = arith.addf %152, %151 : vector<2x32xf32>
    %154 = arith.divf %152, %153 : vector<2x32xf32>
    %155 = arith.mulf %146, %94 : vector<2x32xf32>
    %156 = arith.mulf %140, %148 : vector<2x32xf32>
    %157 = arith.addf %155, %156 : vector<2x32xf32>
    %158 = math.tanh %157 : vector<2x32xf32>
    %159 = arith.mulf %154, %158 : vector<2x32xf32>
    %c7_i32_34 = arith.constant 7 : i32
    %160 = arith.subi %c7_i32_34, %c2_i32 : i32
    %161 = arith.index_cast %160 : i32 to index
    %c0_35 = arith.constant 0 : index
    %c0_36 = arith.constant 0 : index
    %162 = vector.load %arg2[%161, %c0_35, %c0_36] : memref<8x2x128xf32, #tpu.memory_space<vmem>>, vector<1x2x128xf32>
    %163 = vector.shape_cast %162 : vector<1x2x128xf32> to vector<2x128xf32>
    %164 = arith.truncf %128 : vector<2x32xf32> to vector<2x32xbf16>
    %cst_37 = arith.constant dense<0.000000e+00> : vector<2x128xf32>
    %165 = tpu.matmul %164, %1, %cst_37 {dimension_numbers = #tpu.dot_dimension_numbers<[1], [0], [0], [1], [0, 0, 1, 1], [], []>} : vector<2x32xbf16>, vector<32x128xbf16>, vector<2x128xf32> -> vector<2x128xf32>
    %166 = arith.addf %163, %165 : vector<2x128xf32>
    %167 = vector.extract_strided_slice %166 {offsets = [0, 0], sizes = [2, 32], strides = [1, 1]} : vector<2x128xf32> to vector<2x32xf32>
    %168 = arith.negf %167 : vector<2x32xf32>
    %169 = math.exp %168 : vector<2x32xf32>
    %cst_38 = arith.constant 1.000000e+00 : f32
    %170 = vector.broadcast %cst_38 : f32 to vector<2x32xf32>
    %171 = arith.addf %170, %169 : vector<2x32xf32>
    %172 = arith.divf %170, %171 : vector<2x32xf32>
    %173 = vector.extract_strided_slice %166 {offsets = [0, 32], sizes = [2, 32], strides = [1, 1]} : vector<2x128xf32> to vector<2x32xf32>
    %174 = arith.negf %173 : vector<2x32xf32>
    %175 = math.exp %174 : vector<2x32xf32>
    %cst_39 = arith.constant 1.000000e+00 : f32
    %176 = vector.broadcast %cst_39 : f32 to vector<2x32xf32>
    %177 = arith.addf %176, %175 : vector<2x32xf32>
    %178 = arith.divf %176, %177 : vector<2x32xf32>
    %179 = vector.extract_strided_slice %166 {offsets = [0, 64], sizes = [2, 32], strides = [1, 1]} : vector<2x128xf32> to vector<2x32xf32>
    %180 = math.tanh %179 : vector<2x32xf32>
    %181 = vector.extract_strided_slice %166 {offsets = [0, 96], sizes = [2, 32], strides = [1, 1]} : vector<2x128xf32> to vector<2x32xf32>
    %182 = arith.negf %181 : vector<2x32xf32>
    %183 = math.exp %182 : vector<2x32xf32>
    %cst_40 = arith.constant 1.000000e+00 : f32
    %184 = vector.broadcast %cst_40 : f32 to vector<2x32xf32>
    %185 = arith.addf %184, %183 : vector<2x32xf32>
    %186 = arith.divf %184, %185 : vector<2x32xf32>
    %187 = arith.mulf %178, %126 : vector<2x32xf32>
    %188 = arith.mulf %172, %180 : vector<2x32xf32>
    %189 = arith.addf %187, %188 : vector<2x32xf32>
    %190 = math.tanh %189 : vector<2x32xf32>
    %191 = arith.mulf %186, %190 : vector<2x32xf32>
    %c3_i32 = arith.constant 3 : i32
    %192 = arith.index_cast %c3_i32 : i32 to index
    %c0_41 = arith.constant 0 : index
    %c0_42 = arith.constant 0 : index
    %193 = vector.load %arg1[%192, %c0_41, %c0_42] : memref<8x2x128xf32, #tpu.memory_space<vmem>>, vector<1x2x128xf32>
    %194 = vector.shape_cast %193 : vector<1x2x128xf32> to vector<2x128xf32>
    %195 = arith.truncf %159 : vector<2x32xf32> to vector<2x32xbf16>
    %cst_43 = arith.constant dense<0.000000e+00> : vector<2x128xf32>
    %196 = tpu.matmul %195, %0, %cst_43 {dimension_numbers = #tpu.dot_dimension_numbers<[1], [0], [0], [1], [0, 0, 1, 1], [], []>} : vector<2x32xbf16>, vector<32x128xbf16>, vector<2x128xf32> -> vector<2x128xf32>
    %197 = arith.addf %194, %196 : vector<2x128xf32>
    %198 = vector.extract_strided_slice %197 {offsets = [0, 0], sizes = [2, 32], strides = [1, 1]} : vector<2x128xf32> to vector<2x32xf32>
    %199 = arith.negf %198 : vector<2x32xf32>
    %200 = math.exp %199 : vector<2x32xf32>
    %cst_44 = arith.constant 1.000000e+00 : f32
    %201 = vector.broadcast %cst_44 : f32 to vector<2x32xf32>
    %202 = arith.addf %201, %200 : vector<2x32xf32>
    %203 = arith.divf %201, %202 : vector<2x32xf32>
    %204 = vector.extract_strided_slice %197 {offsets = [0, 32], sizes = [2, 32], strides = [1, 1]} : vector<2x128xf32> to vector<2x32xf32>
    %205 = arith.negf %204 : vector<2x32xf32>
    %206 = math.exp %205 : vector<2x32xf32>
    %cst_45 = arith.constant 1.000000e+00 : f32
    %207 = vector.broadcast %cst_45 : f32 to vector<2x32xf32>
    %208 = arith.addf %207, %206 : vector<2x32xf32>
    %209 = arith.divf %207, %208 : vector<2x32xf32>
    %210 = vector.extract_strided_slice %197 {offsets = [0, 64], sizes = [2, 32], strides = [1, 1]} : vector<2x128xf32> to vector<2x32xf32>
    %211 = math.tanh %210 : vector<2x32xf32>
    %212 = vector.extract_strided_slice %197 {offsets = [0, 96], sizes = [2, 32], strides = [1, 1]} : vector<2x128xf32> to vector<2x32xf32>
    %213 = arith.negf %212 : vector<2x32xf32>
    %214 = math.exp %213 : vector<2x32xf32>
    %cst_46 = arith.constant 1.000000e+00 : f32
    %215 = vector.broadcast %cst_46 : f32 to vector<2x32xf32>
    %216 = arith.addf %215, %214 : vector<2x32xf32>
    %217 = arith.divf %215, %216 : vector<2x32xf32>
    %218 = arith.mulf %209, %157 : vector<2x32xf32>
    %219 = arith.mulf %203, %211 : vector<2x32xf32>
    %220 = arith.addf %218, %219 : vector<2x32xf32>
    %221 = math.tanh %220 : vector<2x32xf32>
    %222 = arith.mulf %217, %221 : vector<2x32xf32>
    %c7_i32_47 = arith.constant 7 : i32
    %223 = arith.subi %c7_i32_47, %c3_i32 : i32
    %224 = arith.index_cast %223 : i32 to index
    %c0_48 = arith.constant 0 : index
    %c0_49 = arith.constant 0 : index
    %225 = vector.load %arg2[%224, %c0_48, %c0_49] : memref<8x2x128xf32, #tpu.memory_space<vmem>>, vector<1x2x128xf32>
    %226 = vector.shape_cast %225 : vector<1x2x128xf32> to vector<2x128xf32>
    %227 = arith.truncf %191 : vector<2x32xf32> to vector<2x32xbf16>
    %cst_50 = arith.constant dense<0.000000e+00> : vector<2x128xf32>
    %228 = tpu.matmul %227, %1, %cst_50 {dimension_numbers = #tpu.dot_dimension_numbers<[1], [0], [0], [1], [0, 0, 1, 1], [], []>} : vector<2x32xbf16>, vector<32x128xbf16>, vector<2x128xf32> -> vector<2x128xf32>
    %229 = arith.addf %226, %228 : vector<2x128xf32>
    %230 = vector.extract_strided_slice %229 {offsets = [0, 0], sizes = [2, 32], strides = [1, 1]} : vector<2x128xf32> to vector<2x32xf32>
    %231 = arith.negf %230 : vector<2x32xf32>
    %232 = math.exp %231 : vector<2x32xf32>
    %cst_51 = arith.constant 1.000000e+00 : f32
    %233 = vector.broadcast %cst_51 : f32 to vector<2x32xf32>
    %234 = arith.addf %233, %232 : vector<2x32xf32>
    %235 = arith.divf %233, %234 : vector<2x32xf32>
    %236 = vector.extract_strided_slice %229 {offsets = [0, 32], sizes = [2, 32], strides = [1, 1]} : vector<2x128xf32> to vector<2x32xf32>
    %237 = arith.negf %236 : vector<2x32xf32>
    %238 = math.exp %237 : vector<2x32xf32>
    %cst_52 = arith.constant 1.000000e+00 : f32
    %239 = vector.broadcast %cst_52 : f32 to vector<2x32xf32>
    %240 = arith.addf %239, %238 : vector<2x32xf32>
    %241 = arith.divf %239, %240 : vector<2x32xf32>
    %242 = vector.extract_strided_slice %229 {offsets = [0, 64], sizes = [2, 32], strides = [1, 1]} : vector<2x128xf32> to vector<2x32xf32>
    %243 = math.tanh %242 : vector<2x32xf32>
    %244 = vector.extract_strided_slice %229 {offsets = [0, 96], sizes = [2, 32], strides = [1, 1]} : vector<2x128xf32> to vector<2x32xf32>
    %245 = arith.negf %244 : vector<2x32xf32>
    %246 = math.exp %245 : vector<2x32xf32>
    %cst_53 = arith.constant 1.000000e+00 : f32
    %247 = vector.broadcast %cst_53 : f32 to vector<2x32xf32>
    %248 = arith.addf %247, %246 : vector<2x32xf32>
    %249 = arith.divf %247, %248 : vector<2x32xf32>
    %250 = arith.mulf %241, %189 : vector<2x32xf32>
    %251 = arith.mulf %235, %243 : vector<2x32xf32>
    %252 = arith.addf %250, %251 : vector<2x32xf32>
    %253 = math.tanh %252 : vector<2x32xf32>
    %254 = arith.mulf %249, %253 : vector<2x32xf32>
    %c4_i32 = arith.constant 4 : i32
    %255 = arith.index_cast %c4_i32 : i32 to index
    %c0_54 = arith.constant 0 : index
    %c0_55 = arith.constant 0 : index
    %256 = vector.load %arg1[%255, %c0_54, %c0_55] : memref<8x2x128xf32, #tpu.memory_space<vmem>>, vector<1x2x128xf32>
    %257 = vector.shape_cast %256 : vector<1x2x128xf32> to vector<2x128xf32>
    %258 = arith.truncf %222 : vector<2x32xf32> to vector<2x32xbf16>
    %cst_56 = arith.constant dense<0.000000e+00> : vector<2x128xf32>
    %259 = tpu.matmul %258, %0, %cst_56 {dimension_numbers = #tpu.dot_dimension_numbers<[1], [0], [0], [1], [0, 0, 1, 1], [], []>} : vector<2x32xbf16>, vector<32x128xbf16>, vector<2x128xf32> -> vector<2x128xf32>
    %260 = arith.addf %257, %259 : vector<2x128xf32>
    %261 = vector.extract_strided_slice %260 {offsets = [0, 0], sizes = [2, 32], strides = [1, 1]} : vector<2x128xf32> to vector<2x32xf32>
    %262 = arith.negf %261 : vector<2x32xf32>
    %263 = math.exp %262 : vector<2x32xf32>
    %cst_57 = arith.constant 1.000000e+00 : f32
    %264 = vector.broadcast %cst_57 : f32 to vector<2x32xf32>
    %265 = arith.addf %264, %263 : vector<2x32xf32>
    %266 = arith.divf %264, %265 : vector<2x32xf32>
    %267 = vector.extract_strided_slice %260 {offsets = [0, 32], sizes = [2, 32], strides = [1, 1]} : vector<2x128xf32> to vector<2x32xf32>
    %268 = arith.negf %267 : vector<2x32xf32>
    %269 = math.exp %268 : vector<2x32xf32>
    %cst_58 = arith.constant 1.000000e+00 : f32
    %270 = vector.broadcast %cst_58 : f32 to vector<2x32xf32>
    %271 = arith.addf %270, %269 : vector<2x32xf32>
    %272 = arith.divf %270, %271 : vector<2x32xf32>
    %273 = vector.extract_strided_slice %260 {offsets = [0, 64], sizes = [2, 32], strides = [1, 1]} : vector<2x128xf32> to vector<2x32xf32>
    %274 = math.tanh %273 : vector<2x32xf32>
    %275 = vector.extract_strided_slice %260 {offsets = [0, 96], sizes = [2, 32], strides = [1, 1]} : vector<2x128xf32> to vector<2x32xf32>
    %276 = arith.negf %275 : vector<2x32xf32>
    %277 = math.exp %276 : vector<2x32xf32>
    %cst_59 = arith.constant 1.000000e+00 : f32
    %278 = vector.broadcast %cst_59 : f32 to vector<2x32xf32>
    %279 = arith.addf %278, %277 : vector<2x32xf32>
    %280 = arith.divf %278, %279 : vector<2x32xf32>
    %281 = arith.mulf %272, %220 : vector<2x32xf32>
    %282 = arith.mulf %266, %274 : vector<2x32xf32>
    %283 = arith.addf %281, %282 : vector<2x32xf32>
    %284 = math.tanh %283 : vector<2x32xf32>
    %285 = arith.mulf %280, %284 : vector<2x32xf32>
    %c7_i32_60 = arith.constant 7 : i32
    %286 = arith.subi %c7_i32_60, %c4_i32 : i32
    %287 = arith.index_cast %286 : i32 to index
    %c0_61 = arith.constant 0 : index
    %c0_62 = arith.constant 0 : index
    %288 = vector.load %arg2[%287, %c0_61, %c0_62] : memref<8x2x128xf32, #tpu.memory_space<vmem>>, vector<1x2x128xf32>
    %289 = vector.shape_cast %288 : vector<1x2x128xf32> to vector<2x128xf32>
    %290 = arith.truncf %254 : vector<2x32xf32> to vector<2x32xbf16>
    %cst_63 = arith.constant dense<0.000000e+00> : vector<2x128xf32>
    %291 = tpu.matmul %290, %1, %cst_63 {dimension_numbers = #tpu.dot_dimension_numbers<[1], [0], [0], [1], [0, 0, 1, 1], [], []>} : vector<2x32xbf16>, vector<32x128xbf16>, vector<2x128xf32> -> vector<2x128xf32>
    %292 = arith.addf %289, %291 : vector<2x128xf32>
    %293 = vector.extract_strided_slice %292 {offsets = [0, 0], sizes = [2, 32], strides = [1, 1]} : vector<2x128xf32> to vector<2x32xf32>
    %294 = arith.negf %293 : vector<2x32xf32>
    %295 = math.exp %294 : vector<2x32xf32>
    %cst_64 = arith.constant 1.000000e+00 : f32
    %296 = vector.broadcast %cst_64 : f32 to vector<2x32xf32>
    %297 = arith.addf %296, %295 : vector<2x32xf32>
    %298 = arith.divf %296, %297 : vector<2x32xf32>
    %299 = vector.extract_strided_slice %292 {offsets = [0, 32], sizes = [2, 32], strides = [1, 1]} : vector<2x128xf32> to vector<2x32xf32>
    %300 = arith.negf %299 : vector<2x32xf32>
    %301 = math.exp %300 : vector<2x32xf32>
    %cst_65 = arith.constant 1.000000e+00 : f32
    %302 = vector.broadcast %cst_65 : f32 to vector<2x32xf32>
    %303 = arith.addf %302, %301 : vector<2x32xf32>
    %304 = arith.divf %302, %303 : vector<2x32xf32>
    %305 = vector.extract_strided_slice %292 {offsets = [0, 64], sizes = [2, 32], strides = [1, 1]} : vector<2x128xf32> to vector<2x32xf32>
    %306 = math.tanh %305 : vector<2x32xf32>
    %307 = vector.extract_strided_slice %292 {offsets = [0, 96], sizes = [2, 32], strides = [1, 1]} : vector<2x128xf32> to vector<2x32xf32>
    %308 = arith.negf %307 : vector<2x32xf32>
    %309 = math.exp %308 : vector<2x32xf32>
    %cst_66 = arith.constant 1.000000e+00 : f32
    %310 = vector.broadcast %cst_66 : f32 to vector<2x32xf32>
    %311 = arith.addf %310, %309 : vector<2x32xf32>
    %312 = arith.divf %310, %311 : vector<2x32xf32>
    %313 = arith.mulf %304, %252 : vector<2x32xf32>
    %314 = arith.mulf %298, %306 : vector<2x32xf32>
    %315 = arith.addf %313, %314 : vector<2x32xf32>
    %316 = math.tanh %315 : vector<2x32xf32>
    %317 = arith.mulf %312, %316 : vector<2x32xf32>
    %c5_i32 = arith.constant 5 : i32
    %318 = arith.index_cast %c5_i32 : i32 to index
    %c0_67 = arith.constant 0 : index
    %c0_68 = arith.constant 0 : index
    %319 = vector.load %arg1[%318, %c0_67, %c0_68] : memref<8x2x128xf32, #tpu.memory_space<vmem>>, vector<1x2x128xf32>
    %320 = vector.shape_cast %319 : vector<1x2x128xf32> to vector<2x128xf32>
    %321 = arith.truncf %285 : vector<2x32xf32> to vector<2x32xbf16>
    %cst_69 = arith.constant dense<0.000000e+00> : vector<2x128xf32>
    %322 = tpu.matmul %321, %0, %cst_69 {dimension_numbers = #tpu.dot_dimension_numbers<[1], [0], [0], [1], [0, 0, 1, 1], [], []>} : vector<2x32xbf16>, vector<32x128xbf16>, vector<2x128xf32> -> vector<2x128xf32>
    %323 = arith.addf %320, %322 : vector<2x128xf32>
    %324 = vector.extract_strided_slice %323 {offsets = [0, 0], sizes = [2, 32], strides = [1, 1]} : vector<2x128xf32> to vector<2x32xf32>
    %325 = arith.negf %324 : vector<2x32xf32>
    %326 = math.exp %325 : vector<2x32xf32>
    %cst_70 = arith.constant 1.000000e+00 : f32
    %327 = vector.broadcast %cst_70 : f32 to vector<2x32xf32>
    %328 = arith.addf %327, %326 : vector<2x32xf32>
    %329 = arith.divf %327, %328 : vector<2x32xf32>
    %330 = vector.extract_strided_slice %323 {offsets = [0, 32], sizes = [2, 32], strides = [1, 1]} : vector<2x128xf32> to vector<2x32xf32>
    %331 = arith.negf %330 : vector<2x32xf32>
    %332 = math.exp %331 : vector<2x32xf32>
    %cst_71 = arith.constant 1.000000e+00 : f32
    %333 = vector.broadcast %cst_71 : f32 to vector<2x32xf32>
    %334 = arith.addf %333, %332 : vector<2x32xf32>
    %335 = arith.divf %333, %334 : vector<2x32xf32>
    %336 = vector.extract_strided_slice %323 {offsets = [0, 64], sizes = [2, 32], strides = [1, 1]} : vector<2x128xf32> to vector<2x32xf32>
    %337 = math.tanh %336 : vector<2x32xf32>
    %338 = vector.extract_strided_slice %323 {offsets = [0, 96], sizes = [2, 32], strides = [1, 1]} : vector<2x128xf32> to vector<2x32xf32>
    %339 = arith.negf %338 : vector<2x32xf32>
    %340 = math.exp %339 : vector<2x32xf32>
    %cst_72 = arith.constant 1.000000e+00 : f32
    %341 = vector.broadcast %cst_72 : f32 to vector<2x32xf32>
    %342 = arith.addf %341, %340 : vector<2x32xf32>
    %343 = arith.divf %341, %342 : vector<2x32xf32>
    %344 = arith.mulf %335, %283 : vector<2x32xf32>
    %345 = arith.mulf %329, %337 : vector<2x32xf32>
    %346 = arith.addf %344, %345 : vector<2x32xf32>
    %347 = math.tanh %346 : vector<2x32xf32>
    %348 = arith.mulf %343, %347 : vector<2x32xf32>
    %c7_i32_73 = arith.constant 7 : i32
    %349 = arith.subi %c7_i32_73, %c5_i32 : i32
    %350 = arith.index_cast %349 : i32 to index
    %c0_74 = arith.constant 0 : index
    %c0_75 = arith.constant 0 : index
    %351 = vector.load %arg2[%350, %c0_74, %c0_75] : memref<8x2x128xf32, #tpu.memory_space<vmem>>, vector<1x2x128xf32>
    %352 = vector.shape_cast %351 : vector<1x2x128xf32> to vector<2x128xf32>
    %353 = arith.truncf %317 : vector<2x32xf32> to vector<2x32xbf16>
    %cst_76 = arith.constant dense<0.000000e+00> : vector<2x128xf32>
    %354 = tpu.matmul %353, %1, %cst_76 {dimension_numbers = #tpu.dot_dimension_numbers<[1], [0], [0], [1], [0, 0, 1, 1], [], []>} : vector<2x32xbf16>, vector<32x128xbf16>, vector<2x128xf32> -> vector<2x128xf32>
    %355 = arith.addf %352, %354 : vector<2x128xf32>
    %356 = vector.extract_strided_slice %355 {offsets = [0, 0], sizes = [2, 32], strides = [1, 1]} : vector<2x128xf32> to vector<2x32xf32>
    %357 = arith.negf %356 : vector<2x32xf32>
    %358 = math.exp %357 : vector<2x32xf32>
    %cst_77 = arith.constant 1.000000e+00 : f32
    %359 = vector.broadcast %cst_77 : f32 to vector<2x32xf32>
    %360 = arith.addf %359, %358 : vector<2x32xf32>
    %361 = arith.divf %359, %360 : vector<2x32xf32>
    %362 = vector.extract_strided_slice %355 {offsets = [0, 32], sizes = [2, 32], strides = [1, 1]} : vector<2x128xf32> to vector<2x32xf32>
    %363 = arith.negf %362 : vector<2x32xf32>
    %364 = math.exp %363 : vector<2x32xf32>
    %cst_78 = arith.constant 1.000000e+00 : f32
    %365 = vector.broadcast %cst_78 : f32 to vector<2x32xf32>
    %366 = arith.addf %365, %364 : vector<2x32xf32>
    %367 = arith.divf %365, %366 : vector<2x32xf32>
    %368 = vector.extract_strided_slice %355 {offsets = [0, 64], sizes = [2, 32], strides = [1, 1]} : vector<2x128xf32> to vector<2x32xf32>
    %369 = math.tanh %368 : vector<2x32xf32>
    %370 = vector.extract_strided_slice %355 {offsets = [0, 96], sizes = [2, 32], strides = [1, 1]} : vector<2x128xf32> to vector<2x32xf32>
    %371 = arith.negf %370 : vector<2x32xf32>
    %372 = math.exp %371 : vector<2x32xf32>
    %cst_79 = arith.constant 1.000000e+00 : f32
    %373 = vector.broadcast %cst_79 : f32 to vector<2x32xf32>
    %374 = arith.addf %373, %372 : vector<2x32xf32>
    %375 = arith.divf %373, %374 : vector<2x32xf32>
    %376 = arith.mulf %367, %315 : vector<2x32xf32>
    %377 = arith.mulf %361, %369 : vector<2x32xf32>
    %378 = arith.addf %376, %377 : vector<2x32xf32>
    %379 = math.tanh %378 : vector<2x32xf32>
    %380 = arith.mulf %375, %379 : vector<2x32xf32>
    %c6_i32 = arith.constant 6 : i32
    %381 = arith.index_cast %c6_i32 : i32 to index
    %c0_80 = arith.constant 0 : index
    %c0_81 = arith.constant 0 : index
    %382 = vector.load %arg1[%381, %c0_80, %c0_81] : memref<8x2x128xf32, #tpu.memory_space<vmem>>, vector<1x2x128xf32>
    %383 = vector.shape_cast %382 : vector<1x2x128xf32> to vector<2x128xf32>
    %384 = arith.truncf %348 : vector<2x32xf32> to vector<2x32xbf16>
    %cst_82 = arith.constant dense<0.000000e+00> : vector<2x128xf32>
    %385 = tpu.matmul %384, %0, %cst_82 {dimension_numbers = #tpu.dot_dimension_numbers<[1], [0], [0], [1], [0, 0, 1, 1], [], []>} : vector<2x32xbf16>, vector<32x128xbf16>, vector<2x128xf32> -> vector<2x128xf32>
    %386 = arith.addf %383, %385 : vector<2x128xf32>
    %387 = vector.extract_strided_slice %386 {offsets = [0, 0], sizes = [2, 32], strides = [1, 1]} : vector<2x128xf32> to vector<2x32xf32>
    %388 = arith.negf %387 : vector<2x32xf32>
    %389 = math.exp %388 : vector<2x32xf32>
    %cst_83 = arith.constant 1.000000e+00 : f32
    %390 = vector.broadcast %cst_83 : f32 to vector<2x32xf32>
    %391 = arith.addf %390, %389 : vector<2x32xf32>
    %392 = arith.divf %390, %391 : vector<2x32xf32>
    %393 = vector.extract_strided_slice %386 {offsets = [0, 32], sizes = [2, 32], strides = [1, 1]} : vector<2x128xf32> to vector<2x32xf32>
    %394 = arith.negf %393 : vector<2x32xf32>
    %395 = math.exp %394 : vector<2x32xf32>
    %cst_84 = arith.constant 1.000000e+00 : f32
    %396 = vector.broadcast %cst_84 : f32 to vector<2x32xf32>
    %397 = arith.addf %396, %395 : vector<2x32xf32>
    %398 = arith.divf %396, %397 : vector<2x32xf32>
    %399 = vector.extract_strided_slice %386 {offsets = [0, 64], sizes = [2, 32], strides = [1, 1]} : vector<2x128xf32> to vector<2x32xf32>
    %400 = math.tanh %399 : vector<2x32xf32>
    %401 = vector.extract_strided_slice %386 {offsets = [0, 96], sizes = [2, 32], strides = [1, 1]} : vector<2x128xf32> to vector<2x32xf32>
    %402 = arith.negf %401 : vector<2x32xf32>
    %403 = math.exp %402 : vector<2x32xf32>
    %cst_85 = arith.constant 1.000000e+00 : f32
    %404 = vector.broadcast %cst_85 : f32 to vector<2x32xf32>
    %405 = arith.addf %404, %403 : vector<2x32xf32>
    %406 = arith.divf %404, %405 : vector<2x32xf32>
    %407 = arith.mulf %398, %346 : vector<2x32xf32>
    %408 = arith.mulf %392, %400 : vector<2x32xf32>
    %409 = arith.addf %407, %408 : vector<2x32xf32>
    %410 = math.tanh %409 : vector<2x32xf32>
    %411 = arith.mulf %406, %410 : vector<2x32xf32>
    %c7_i32_86 = arith.constant 7 : i32
    %412 = arith.subi %c7_i32_86, %c6_i32 : i32
    %413 = arith.index_cast %412 : i32 to index
    %c0_87 = arith.constant 0 : index
    %c0_88 = arith.constant 0 : index
    %414 = vector.load %arg2[%413, %c0_87, %c0_88] : memref<8x2x128xf32, #tpu.memory_space<vmem>>, vector<1x2x128xf32>
    %415 = vector.shape_cast %414 : vector<1x2x128xf32> to vector<2x128xf32>
    %416 = arith.truncf %380 : vector<2x32xf32> to vector<2x32xbf16>
    %cst_89 = arith.constant dense<0.000000e+00> : vector<2x128xf32>
    %417 = tpu.matmul %416, %1, %cst_89 {dimension_numbers = #tpu.dot_dimension_numbers<[1], [0], [0], [1], [0, 0, 1, 1], [], []>} : vector<2x32xbf16>, vector<32x128xbf16>, vector<2x128xf32> -> vector<2x128xf32>
    %418 = arith.addf %415, %417 : vector<2x128xf32>
    %419 = vector.extract_strided_slice %418 {offsets = [0, 0], sizes = [2, 32], strides = [1, 1]} : vector<2x128xf32> to vector<2x32xf32>
    %420 = arith.negf %419 : vector<2x32xf32>
    %421 = math.exp %420 : vector<2x32xf32>
    %cst_90 = arith.constant 1.000000e+00 : f32
    %422 = vector.broadcast %cst_90 : f32 to vector<2x32xf32>
    %423 = arith.addf %422, %421 : vector<2x32xf32>
    %424 = arith.divf %422, %423 : vector<2x32xf32>
    %425 = vector.extract_strided_slice %418 {offsets = [0, 32], sizes = [2, 32], strides = [1, 1]} : vector<2x128xf32> to vector<2x32xf32>
    %426 = arith.negf %425 : vector<2x32xf32>
    %427 = math.exp %426 : vector<2x32xf32>
    %cst_91 = arith.constant 1.000000e+00 : f32
    %428 = vector.broadcast %cst_91 : f32 to vector<2x32xf32>
    %429 = arith.addf %428, %427 : vector<2x32xf32>
    %430 = arith.divf %428, %429 : vector<2x32xf32>
    %431 = vector.extract_strided_slice %418 {offsets = [0, 64], sizes = [2, 32], strides = [1, 1]} : vector<2x128xf32> to vector<2x32xf32>
    %432 = math.tanh %431 : vector<2x32xf32>
    %433 = vector.extract_strided_slice %418 {offsets = [0, 96], sizes = [2, 32], strides = [1, 1]} : vector<2x128xf32> to vector<2x32xf32>
    %434 = arith.negf %433 : vector<2x32xf32>
    %435 = math.exp %434 : vector<2x32xf32>
    %cst_92 = arith.constant 1.000000e+00 : f32
    %436 = vector.broadcast %cst_92 : f32 to vector<2x32xf32>
    %437 = arith.addf %436, %435 : vector<2x32xf32>
    %438 = arith.divf %436, %437 : vector<2x32xf32>
    %439 = arith.mulf %430, %378 : vector<2x32xf32>
    %440 = arith.mulf %424, %432 : vector<2x32xf32>
    %441 = arith.addf %439, %440 : vector<2x32xf32>
    %442 = math.tanh %441 : vector<2x32xf32>
    %443 = arith.mulf %438, %442 : vector<2x32xf32>
    %c7_i32_93 = arith.constant 7 : i32
    %444 = arith.index_cast %c7_i32_93 : i32 to index
    %c0_94 = arith.constant 0 : index
    %c0_95 = arith.constant 0 : index
    %445 = vector.load %arg1[%444, %c0_94, %c0_95] : memref<8x2x128xf32, #tpu.memory_space<vmem>>, vector<1x2x128xf32>
    %446 = vector.shape_cast %445 : vector<1x2x128xf32> to vector<2x128xf32>
    %447 = arith.truncf %411 : vector<2x32xf32> to vector<2x32xbf16>
    %cst_96 = arith.constant dense<0.000000e+00> : vector<2x128xf32>
    %448 = tpu.matmul %447, %0, %cst_96 {dimension_numbers = #tpu.dot_dimension_numbers<[1], [0], [0], [1], [0, 0, 1, 1], [], []>} : vector<2x32xbf16>, vector<32x128xbf16>, vector<2x128xf32> -> vector<2x128xf32>
    %449 = arith.addf %446, %448 : vector<2x128xf32>
    %450 = vector.extract_strided_slice %449 {offsets = [0, 0], sizes = [2, 32], strides = [1, 1]} : vector<2x128xf32> to vector<2x32xf32>
    %451 = arith.negf %450 : vector<2x32xf32>
    %452 = math.exp %451 : vector<2x32xf32>
    %cst_97 = arith.constant 1.000000e+00 : f32
    %453 = vector.broadcast %cst_97 : f32 to vector<2x32xf32>
    %454 = arith.addf %453, %452 : vector<2x32xf32>
    %455 = arith.divf %453, %454 : vector<2x32xf32>
    %456 = vector.extract_strided_slice %449 {offsets = [0, 32], sizes = [2, 32], strides = [1, 1]} : vector<2x128xf32> to vector<2x32xf32>
    %457 = arith.negf %456 : vector<2x32xf32>
    %458 = math.exp %457 : vector<2x32xf32>
    %cst_98 = arith.constant 1.000000e+00 : f32
    %459 = vector.broadcast %cst_98 : f32 to vector<2x32xf32>
    %460 = arith.addf %459, %458 : vector<2x32xf32>
    %461 = arith.divf %459, %460 : vector<2x32xf32>
    %462 = vector.extract_strided_slice %449 {offsets = [0, 64], sizes = [2, 32], strides = [1, 1]} : vector<2x128xf32> to vector<2x32xf32>
    %463 = math.tanh %462 : vector<2x32xf32>
    %464 = vector.extract_strided_slice %449 {offsets = [0, 96], sizes = [2, 32], strides = [1, 1]} : vector<2x128xf32> to vector<2x32xf32>
    %465 = arith.negf %464 : vector<2x32xf32>
    %466 = math.exp %465 : vector<2x32xf32>
    %cst_99 = arith.constant 1.000000e+00 : f32
    %467 = vector.broadcast %cst_99 : f32 to vector<2x32xf32>
    %468 = arith.addf %467, %466 : vector<2x32xf32>
    %469 = arith.divf %467, %468 : vector<2x32xf32>
    %470 = arith.mulf %461, %409 : vector<2x32xf32>
    %471 = arith.mulf %455, %463 : vector<2x32xf32>
    %472 = arith.addf %470, %471 : vector<2x32xf32>
    %473 = math.tanh %472 : vector<2x32xf32>
    %474 = arith.mulf %469, %473 : vector<2x32xf32>
    %c7_i32_100 = arith.constant 7 : i32
    %475 = arith.subi %c7_i32_100, %c7_i32_93 : i32
    %476 = arith.index_cast %475 : i32 to index
    %c0_101 = arith.constant 0 : index
    %c0_102 = arith.constant 0 : index
    %477 = vector.load %arg2[%476, %c0_101, %c0_102] : memref<8x2x128xf32, #tpu.memory_space<vmem>>, vector<1x2x128xf32>
    %478 = vector.shape_cast %477 : vector<1x2x128xf32> to vector<2x128xf32>
    %479 = arith.truncf %443 : vector<2x32xf32> to vector<2x32xbf16>
    %cst_103 = arith.constant dense<0.000000e+00> : vector<2x128xf32>
    %480 = tpu.matmul %479, %1, %cst_103 {dimension_numbers = #tpu.dot_dimension_numbers<[1], [0], [0], [1], [0, 0, 1, 1], [], []>} : vector<2x32xbf16>, vector<32x128xbf16>, vector<2x128xf32> -> vector<2x128xf32>
    %481 = arith.addf %478, %480 : vector<2x128xf32>
    %482 = vector.extract_strided_slice %481 {offsets = [0, 0], sizes = [2, 32], strides = [1, 1]} : vector<2x128xf32> to vector<2x32xf32>
    %483 = arith.negf %482 : vector<2x32xf32>
    %484 = math.exp %483 : vector<2x32xf32>
    %cst_104 = arith.constant 1.000000e+00 : f32
    %485 = vector.broadcast %cst_104 : f32 to vector<2x32xf32>
    %486 = arith.addf %485, %484 : vector<2x32xf32>
    %487 = arith.divf %485, %486 : vector<2x32xf32>
    %488 = vector.extract_strided_slice %481 {offsets = [0, 32], sizes = [2, 32], strides = [1, 1]} : vector<2x128xf32> to vector<2x32xf32>
    %489 = arith.negf %488 : vector<2x32xf32>
    %490 = math.exp %489 : vector<2x32xf32>
    %cst_105 = arith.constant 1.000000e+00 : f32
    %491 = vector.broadcast %cst_105 : f32 to vector<2x32xf32>
    %492 = arith.addf %491, %490 : vector<2x32xf32>
    %493 = arith.divf %491, %492 : vector<2x32xf32>
    %494 = vector.extract_strided_slice %481 {offsets = [0, 64], sizes = [2, 32], strides = [1, 1]} : vector<2x128xf32> to vector<2x32xf32>
    %495 = math.tanh %494 : vector<2x32xf32>
    %496 = vector.extract_strided_slice %481 {offsets = [0, 96], sizes = [2, 32], strides = [1, 1]} : vector<2x128xf32> to vector<2x32xf32>
    %497 = arith.negf %496 : vector<2x32xf32>
    %498 = math.exp %497 : vector<2x32xf32>
    %cst_106 = arith.constant 1.000000e+00 : f32
    %499 = vector.broadcast %cst_106 : f32 to vector<2x32xf32>
    %500 = arith.addf %499, %498 : vector<2x32xf32>
    %501 = arith.divf %499, %500 : vector<2x32xf32>
    %502 = arith.mulf %493, %441 : vector<2x32xf32>
    %503 = arith.mulf %487, %495 : vector<2x32xf32>
    %504 = arith.addf %502, %503 : vector<2x32xf32>
    %505 = math.tanh %504 : vector<2x32xf32>
    %506 = arith.mulf %501, %505 : vector<2x32xf32>
    %c8_i32 = arith.constant 8 : i32
    %c0_107 = arith.constant 0 : index
    %c0_108 = arith.constant 0 : index
    %507 = vector.load %arg5[%c0_107, %c0_108] : memref<2x64xf32, #tpu.memory_space<vmem>>, vector<2x32xf32>
    tpu.vector_store %arg5[%c0_107, %c0_108], %474 {strides = array<i32>} : memref<2x64xf32, #tpu.memory_space<vmem>>, vector<2x32xf32>,
    %c0_109 = arith.constant 0 : index
    %c32 = arith.constant 32 : index
    %508 = vector.load %arg5[%c0_109, %c32] : memref<2x64xf32, #tpu.memory_space<vmem>>, vector<2x32xf32>
    tpu.vector_store %arg5[%c0_109, %c32], %506 {strides = array<i32>} : memref<2x64xf32, #tpu.memory_space<vmem>>, vector<2x32xf32>,
    return
  }
  func.func @transform_0(%arg0: i32) -> (i32, i32, i32) {
    %c0_i32 = arith.constant 0 : i32
    %c0_i32_0 = arith.constant 0 : i32
    %c0_i32_1 = arith.constant 0 : i32
    %c0_i32_2 = arith.constant 0 : i32
    return %c0_i32, %c0_i32_0, %c0_i32_1 : i32, i32, i32
  }
  func.func @transform_1(%arg0: i32) -> (i32, i32, i32) {
    %c0_i32 = arith.constant 0 : i32
    %c0_i32_0 = arith.constant 0 : i32
    %c0_i32_1 = arith.constant 0 : i32
    %c0_i32_2 = arith.constant 0 : i32
    return %c0_i32, %c0_i32_0, %c0_i32_1 : i32, i32, i32
  }
  func.func @transform_2(%arg0: i32) -> (i32, i32) {
    %c0_i32 = arith.constant 0 : i32
    %c0_i32_0 = arith.constant 0 : i32
    %c0_i32_1 = arith.constant 0 : i32
    return %c0_i32, %c0_i32_0 : i32, i32
  }
  func.func @transform_3(%arg0: i32) -> (i32, i32) {
    %c0_i32 = arith.constant 0 : i32
    %c0_i32_0 = arith.constant 0 : i32
    %c0_i32_1 = arith.constant 0 : i32
    return %c0_i32, %c0_i32_0 : i32, i32
  }
  func.func @transform_4(%arg0: i32) -> (i32, i32) {
    %c0_i32 = arith.constant 0 : i32
    %c0_i32_0 = arith.constant 0 : i32
    %c0_i32_1 = arith.constant 0 : i32
    return %c0_i32, %c0_i32_0 : i32, i32
  }
}

module attributes {stable_mosaic.version = 11 : i64} {
  func.func @_bilstm_layer_kernel(%arg0: i32, %arg1: memref<8x2x128xf32, #tpu.memory_space<vmem>>, %arg2: memref<8x2x128xf32, #tpu.memory_space<vmem>>, %arg3: memref<32x128xbf16, #tpu.memory_space<vmem>>, %arg4: memref<32x128xbf16, #tpu.memory_space<vmem>>, %arg5: memref<8x2x64xf32, #tpu.memory_space<vmem>>, %arg6: memref<2x64xf32, #tpu.memory_space<vmem>>) attributes {dimension_semantics = [#tpu.dimension_semantics<arbitrary>], iteration_bounds = array<i64: 1>, scalar_prefetch = 0 : i64, scratch_operands = 0 : i64, tpu.core_type = #tpu.core_type<tc>, window_params = [{pipeline_mode = #tpu.pipeline_mode<synchronous>, transform_indices = @transform_0, window_bounds = array<i64: 8, 2, 128>}, {pipeline_mode = #tpu.pipeline_mode<synchronous>, transform_indices = @transform_1, window_bounds = array<i64: 8, 2, 128>}, {pipeline_mode = #tpu.pipeline_mode<synchronous>, transform_indices = @transform_2, window_bounds = array<i64: 32, 128>}, {pipeline_mode = #tpu.pipeline_mode<synchronous>, transform_indices = @transform_3, window_bounds = array<i64: 32, 128>}, {pipeline_mode = #tpu.pipeline_mode<synchronous>, transform_indices = @transform_4, window_bounds = array<i64: 8, 2, 64>}, {pipeline_mode = #tpu.pipeline_mode<synchronous>, transform_indices = @transform_5, window_bounds = array<i64: 2, 64>}]} {
    %c0 = arith.constant 0 : index
    %c0_0 = arith.constant 0 : index
    %0 = vector.load %arg3[%c0, %c0_0] : memref<32x128xbf16, #tpu.memory_space<vmem>>, vector<32x128xbf16>
    %c0_1 = arith.constant 0 : index
    %c0_2 = arith.constant 0 : index
    %1 = vector.load %arg4[%c0_1, %c0_2] : memref<32x128xbf16, #tpu.memory_space<vmem>>, vector<32x128xbf16>
    %cst = arith.constant 0.000000e+00 : f32
    %2 = vector.broadcast %cst : f32 to vector<2x32xf32>
    %c0_i32 = arith.constant 0 : i32
    %3 = arith.index_cast %c0_i32 : i32 to index
    %c0_3 = arith.constant 0 : index
    %c0_4 = arith.constant 0 : index
    %4 = vector.load %arg1[%3, %c0_3, %c0_4] : memref<8x2x128xf32, #tpu.memory_space<vmem>>, vector<1x2x128xf32>
    %5 = vector.shape_cast %4 : vector<1x2x128xf32> to vector<2x128xf32>
    %6 = arith.truncf %2 : vector<2x32xf32> to vector<2x32xbf16>
    %cst_5 = arith.constant dense<0.000000e+00> : vector<2x128xf32>
    %7 = tpu.matmul %6, %0, %cst_5 {dimension_numbers = #tpu.dot_dimension_numbers<[1], [0], [0], [1], [0, 0, 1, 1], [], []>} : vector<2x32xbf16>, vector<32x128xbf16>, vector<2x128xf32> -> vector<2x128xf32>
    %8 = arith.addf %5, %7 : vector<2x128xf32>
    %9 = vector.extract_strided_slice %8 {offsets = [0, 0], sizes = [2, 32], strides = [1, 1]} : vector<2x128xf32> to vector<2x32xf32>
    %10 = arith.negf %9 : vector<2x32xf32>
    %11 = math.exp %10 : vector<2x32xf32>
    %cst_6 = arith.constant 1.000000e+00 : f32
    %12 = vector.broadcast %cst_6 : f32 to vector<2x32xf32>
    %13 = arith.addf %12, %11 : vector<2x32xf32>
    %14 = arith.divf %12, %13 : vector<2x32xf32>
    %15 = vector.extract_strided_slice %8 {offsets = [0, 32], sizes = [2, 32], strides = [1, 1]} : vector<2x128xf32> to vector<2x32xf32>
    %16 = arith.negf %15 : vector<2x32xf32>
    %17 = math.exp %16 : vector<2x32xf32>
    %cst_7 = arith.constant 1.000000e+00 : f32
    %18 = vector.broadcast %cst_7 : f32 to vector<2x32xf32>
    %19 = arith.addf %18, %17 : vector<2x32xf32>
    %20 = arith.divf %18, %19 : vector<2x32xf32>
    %21 = vector.extract_strided_slice %8 {offsets = [0, 64], sizes = [2, 32], strides = [1, 1]} : vector<2x128xf32> to vector<2x32xf32>
    %22 = math.tanh %21 : vector<2x32xf32>
    %23 = vector.extract_strided_slice %8 {offsets = [0, 96], sizes = [2, 32], strides = [1, 1]} : vector<2x128xf32> to vector<2x32xf32>
    %24 = arith.negf %23 : vector<2x32xf32>
    %25 = math.exp %24 : vector<2x32xf32>
    %cst_8 = arith.constant 1.000000e+00 : f32
    %26 = vector.broadcast %cst_8 : f32 to vector<2x32xf32>
    %27 = arith.addf %26, %25 : vector<2x32xf32>
    %28 = arith.divf %26, %27 : vector<2x32xf32>
    %29 = arith.mulf %20, %2 : vector<2x32xf32>
    %30 = arith.mulf %14, %22 : vector<2x32xf32>
    %31 = arith.addf %29, %30 : vector<2x32xf32>
    %32 = math.tanh %31 : vector<2x32xf32>
    %33 = arith.mulf %28, %32 : vector<2x32xf32>
    %c7_i32 = arith.constant 7 : i32
    %34 = arith.subi %c7_i32, %c0_i32 : i32
    %35 = arith.index_cast %34 : i32 to index
    %c0_9 = arith.constant 0 : index
    %c0_10 = arith.constant 0 : index
    %36 = vector.load %arg2[%35, %c0_9, %c0_10] : memref<8x2x128xf32, #tpu.memory_space<vmem>>, vector<1x2x128xf32>
    %37 = vector.shape_cast %36 : vector<1x2x128xf32> to vector<2x128xf32>
    %38 = arith.truncf %2 : vector<2x32xf32> to vector<2x32xbf16>
    %cst_11 = arith.constant dense<0.000000e+00> : vector<2x128xf32>
    %39 = tpu.matmul %38, %1, %cst_11 {dimension_numbers = #tpu.dot_dimension_numbers<[1], [0], [0], [1], [0, 0, 1, 1], [], []>} : vector<2x32xbf16>, vector<32x128xbf16>, vector<2x128xf32> -> vector<2x128xf32>
    %40 = arith.addf %37, %39 : vector<2x128xf32>
    %41 = vector.extract_strided_slice %40 {offsets = [0, 0], sizes = [2, 32], strides = [1, 1]} : vector<2x128xf32> to vector<2x32xf32>
    %42 = arith.negf %41 : vector<2x32xf32>
    %43 = math.exp %42 : vector<2x32xf32>
    %cst_12 = arith.constant 1.000000e+00 : f32
    %44 = vector.broadcast %cst_12 : f32 to vector<2x32xf32>
    %45 = arith.addf %44, %43 : vector<2x32xf32>
    %46 = arith.divf %44, %45 : vector<2x32xf32>
    %47 = vector.extract_strided_slice %40 {offsets = [0, 32], sizes = [2, 32], strides = [1, 1]} : vector<2x128xf32> to vector<2x32xf32>
    %48 = arith.negf %47 : vector<2x32xf32>
    %49 = math.exp %48 : vector<2x32xf32>
    %cst_13 = arith.constant 1.000000e+00 : f32
    %50 = vector.broadcast %cst_13 : f32 to vector<2x32xf32>
    %51 = arith.addf %50, %49 : vector<2x32xf32>
    %52 = arith.divf %50, %51 : vector<2x32xf32>
    %53 = vector.extract_strided_slice %40 {offsets = [0, 64], sizes = [2, 32], strides = [1, 1]} : vector<2x128xf32> to vector<2x32xf32>
    %54 = math.tanh %53 : vector<2x32xf32>
    %55 = vector.extract_strided_slice %40 {offsets = [0, 96], sizes = [2, 32], strides = [1, 1]} : vector<2x128xf32> to vector<2x32xf32>
    %56 = arith.negf %55 : vector<2x32xf32>
    %57 = math.exp %56 : vector<2x32xf32>
    %cst_14 = arith.constant 1.000000e+00 : f32
    %58 = vector.broadcast %cst_14 : f32 to vector<2x32xf32>
    %59 = arith.addf %58, %57 : vector<2x32xf32>
    %60 = arith.divf %58, %59 : vector<2x32xf32>
    %61 = arith.mulf %52, %2 : vector<2x32xf32>
    %62 = arith.mulf %46, %54 : vector<2x32xf32>
    %63 = arith.addf %61, %62 : vector<2x32xf32>
    %64 = math.tanh %63 : vector<2x32xf32>
    %65 = arith.mulf %60, %64 : vector<2x32xf32>
    %66 = arith.index_cast %c0_i32 : i32 to index
    %c0_15 = arith.constant 0 : index
    %c0_16 = arith.constant 0 : index
    %67 = vector.load %arg5[%66, %c0_15, %c0_16] : memref<8x2x64xf32, #tpu.memory_space<vmem>>, vector<1x2x32xf32>
    %68 = vector.shape_cast %67 : vector<1x2x32xf32> to vector<2x32xf32>
    %69 = vector.shape_cast %33 : vector<2x32xf32> to vector<1x2x32xf32>
    tpu.vector_store %arg5[%66, %c0_15, %c0_16], %69 {strides = array<i32>} : memref<8x2x64xf32, #tpu.memory_space<vmem>>, vector<1x2x32xf32>,
    %70 = arith.index_cast %34 : i32 to index
    %c0_17 = arith.constant 0 : index
    %c32 = arith.constant 32 : index
    %71 = vector.load %arg5[%70, %c0_17, %c32] : memref<8x2x64xf32, #tpu.memory_space<vmem>>, vector<1x2x32xf32>
    %72 = vector.shape_cast %71 : vector<1x2x32xf32> to vector<2x32xf32>
    %73 = vector.shape_cast %65 : vector<2x32xf32> to vector<1x2x32xf32>
    tpu.vector_store %arg5[%70, %c0_17, %c32], %73 {strides = array<i32>} : memref<8x2x64xf32, #tpu.memory_space<vmem>>, vector<1x2x32xf32>,
    %c1_i32 = arith.constant 1 : i32
    %74 = arith.index_cast %c1_i32 : i32 to index
    %c0_18 = arith.constant 0 : index
    %c0_19 = arith.constant 0 : index
    %75 = vector.load %arg1[%74, %c0_18, %c0_19] : memref<8x2x128xf32, #tpu.memory_space<vmem>>, vector<1x2x128xf32>
    %76 = vector.shape_cast %75 : vector<1x2x128xf32> to vector<2x128xf32>
    %77 = arith.truncf %33 : vector<2x32xf32> to vector<2x32xbf16>
    %cst_20 = arith.constant dense<0.000000e+00> : vector<2x128xf32>
    %78 = tpu.matmul %77, %0, %cst_20 {dimension_numbers = #tpu.dot_dimension_numbers<[1], [0], [0], [1], [0, 0, 1, 1], [], []>} : vector<2x32xbf16>, vector<32x128xbf16>, vector<2x128xf32> -> vector<2x128xf32>
    %79 = arith.addf %76, %78 : vector<2x128xf32>
    %80 = vector.extract_strided_slice %79 {offsets = [0, 0], sizes = [2, 32], strides = [1, 1]} : vector<2x128xf32> to vector<2x32xf32>
    %81 = arith.negf %80 : vector<2x32xf32>
    %82 = math.exp %81 : vector<2x32xf32>
    %cst_21 = arith.constant 1.000000e+00 : f32
    %83 = vector.broadcast %cst_21 : f32 to vector<2x32xf32>
    %84 = arith.addf %83, %82 : vector<2x32xf32>
    %85 = arith.divf %83, %84 : vector<2x32xf32>
    %86 = vector.extract_strided_slice %79 {offsets = [0, 32], sizes = [2, 32], strides = [1, 1]} : vector<2x128xf32> to vector<2x32xf32>
    %87 = arith.negf %86 : vector<2x32xf32>
    %88 = math.exp %87 : vector<2x32xf32>
    %cst_22 = arith.constant 1.000000e+00 : f32
    %89 = vector.broadcast %cst_22 : f32 to vector<2x32xf32>
    %90 = arith.addf %89, %88 : vector<2x32xf32>
    %91 = arith.divf %89, %90 : vector<2x32xf32>
    %92 = vector.extract_strided_slice %79 {offsets = [0, 64], sizes = [2, 32], strides = [1, 1]} : vector<2x128xf32> to vector<2x32xf32>
    %93 = math.tanh %92 : vector<2x32xf32>
    %94 = vector.extract_strided_slice %79 {offsets = [0, 96], sizes = [2, 32], strides = [1, 1]} : vector<2x128xf32> to vector<2x32xf32>
    %95 = arith.negf %94 : vector<2x32xf32>
    %96 = math.exp %95 : vector<2x32xf32>
    %cst_23 = arith.constant 1.000000e+00 : f32
    %97 = vector.broadcast %cst_23 : f32 to vector<2x32xf32>
    %98 = arith.addf %97, %96 : vector<2x32xf32>
    %99 = arith.divf %97, %98 : vector<2x32xf32>
    %100 = arith.mulf %91, %31 : vector<2x32xf32>
    %101 = arith.mulf %85, %93 : vector<2x32xf32>
    %102 = arith.addf %100, %101 : vector<2x32xf32>
    %103 = math.tanh %102 : vector<2x32xf32>
    %104 = arith.mulf %99, %103 : vector<2x32xf32>
    %c7_i32_24 = arith.constant 7 : i32
    %105 = arith.subi %c7_i32_24, %c1_i32 : i32
    %106 = arith.index_cast %105 : i32 to index
    %c0_25 = arith.constant 0 : index
    %c0_26 = arith.constant 0 : index
    %107 = vector.load %arg2[%106, %c0_25, %c0_26] : memref<8x2x128xf32, #tpu.memory_space<vmem>>, vector<1x2x128xf32>
    %108 = vector.shape_cast %107 : vector<1x2x128xf32> to vector<2x128xf32>
    %109 = arith.truncf %65 : vector<2x32xf32> to vector<2x32xbf16>
    %cst_27 = arith.constant dense<0.000000e+00> : vector<2x128xf32>
    %110 = tpu.matmul %109, %1, %cst_27 {dimension_numbers = #tpu.dot_dimension_numbers<[1], [0], [0], [1], [0, 0, 1, 1], [], []>} : vector<2x32xbf16>, vector<32x128xbf16>, vector<2x128xf32> -> vector<2x128xf32>
    %111 = arith.addf %108, %110 : vector<2x128xf32>
    %112 = vector.extract_strided_slice %111 {offsets = [0, 0], sizes = [2, 32], strides = [1, 1]} : vector<2x128xf32> to vector<2x32xf32>
    %113 = arith.negf %112 : vector<2x32xf32>
    %114 = math.exp %113 : vector<2x32xf32>
    %cst_28 = arith.constant 1.000000e+00 : f32
    %115 = vector.broadcast %cst_28 : f32 to vector<2x32xf32>
    %116 = arith.addf %115, %114 : vector<2x32xf32>
    %117 = arith.divf %115, %116 : vector<2x32xf32>
    %118 = vector.extract_strided_slice %111 {offsets = [0, 32], sizes = [2, 32], strides = [1, 1]} : vector<2x128xf32> to vector<2x32xf32>
    %119 = arith.negf %118 : vector<2x32xf32>
    %120 = math.exp %119 : vector<2x32xf32>
    %cst_29 = arith.constant 1.000000e+00 : f32
    %121 = vector.broadcast %cst_29 : f32 to vector<2x32xf32>
    %122 = arith.addf %121, %120 : vector<2x32xf32>
    %123 = arith.divf %121, %122 : vector<2x32xf32>
    %124 = vector.extract_strided_slice %111 {offsets = [0, 64], sizes = [2, 32], strides = [1, 1]} : vector<2x128xf32> to vector<2x32xf32>
    %125 = math.tanh %124 : vector<2x32xf32>
    %126 = vector.extract_strided_slice %111 {offsets = [0, 96], sizes = [2, 32], strides = [1, 1]} : vector<2x128xf32> to vector<2x32xf32>
    %127 = arith.negf %126 : vector<2x32xf32>
    %128 = math.exp %127 : vector<2x32xf32>
    %cst_30 = arith.constant 1.000000e+00 : f32
    %129 = vector.broadcast %cst_30 : f32 to vector<2x32xf32>
    %130 = arith.addf %129, %128 : vector<2x32xf32>
    %131 = arith.divf %129, %130 : vector<2x32xf32>
    %132 = arith.mulf %123, %63 : vector<2x32xf32>
    %133 = arith.mulf %117, %125 : vector<2x32xf32>
    %134 = arith.addf %132, %133 : vector<2x32xf32>
    %135 = math.tanh %134 : vector<2x32xf32>
    %136 = arith.mulf %131, %135 : vector<2x32xf32>
    %137 = arith.index_cast %c1_i32 : i32 to index
    %c0_31 = arith.constant 0 : index
    %c0_32 = arith.constant 0 : index
    %138 = vector.load %arg5[%137, %c0_31, %c0_32] : memref<8x2x64xf32, #tpu.memory_space<vmem>>, vector<1x2x32xf32>
    %139 = vector.shape_cast %138 : vector<1x2x32xf32> to vector<2x32xf32>
    %140 = vector.shape_cast %104 : vector<2x32xf32> to vector<1x2x32xf32>
    tpu.vector_store %arg5[%137, %c0_31, %c0_32], %140 {strides = array<i32>} : memref<8x2x64xf32, #tpu.memory_space<vmem>>, vector<1x2x32xf32>,
    %141 = arith.index_cast %105 : i32 to index
    %c0_33 = arith.constant 0 : index
    %c32_34 = arith.constant 32 : index
    %142 = vector.load %arg5[%141, %c0_33, %c32_34] : memref<8x2x64xf32, #tpu.memory_space<vmem>>, vector<1x2x32xf32>
    %143 = vector.shape_cast %142 : vector<1x2x32xf32> to vector<2x32xf32>
    %144 = vector.shape_cast %136 : vector<2x32xf32> to vector<1x2x32xf32>
    tpu.vector_store %arg5[%141, %c0_33, %c32_34], %144 {strides = array<i32>} : memref<8x2x64xf32, #tpu.memory_space<vmem>>, vector<1x2x32xf32>,
    %c2_i32 = arith.constant 2 : i32
    %145 = arith.index_cast %c2_i32 : i32 to index
    %c0_35 = arith.constant 0 : index
    %c0_36 = arith.constant 0 : index
    %146 = vector.load %arg1[%145, %c0_35, %c0_36] : memref<8x2x128xf32, #tpu.memory_space<vmem>>, vector<1x2x128xf32>
    %147 = vector.shape_cast %146 : vector<1x2x128xf32> to vector<2x128xf32>
    %148 = arith.truncf %104 : vector<2x32xf32> to vector<2x32xbf16>
    %cst_37 = arith.constant dense<0.000000e+00> : vector<2x128xf32>
    %149 = tpu.matmul %148, %0, %cst_37 {dimension_numbers = #tpu.dot_dimension_numbers<[1], [0], [0], [1], [0, 0, 1, 1], [], []>} : vector<2x32xbf16>, vector<32x128xbf16>, vector<2x128xf32> -> vector<2x128xf32>
    %150 = arith.addf %147, %149 : vector<2x128xf32>
    %151 = vector.extract_strided_slice %150 {offsets = [0, 0], sizes = [2, 32], strides = [1, 1]} : vector<2x128xf32> to vector<2x32xf32>
    %152 = arith.negf %151 : vector<2x32xf32>
    %153 = math.exp %152 : vector<2x32xf32>
    %cst_38 = arith.constant 1.000000e+00 : f32
    %154 = vector.broadcast %cst_38 : f32 to vector<2x32xf32>
    %155 = arith.addf %154, %153 : vector<2x32xf32>
    %156 = arith.divf %154, %155 : vector<2x32xf32>
    %157 = vector.extract_strided_slice %150 {offsets = [0, 32], sizes = [2, 32], strides = [1, 1]} : vector<2x128xf32> to vector<2x32xf32>
    %158 = arith.negf %157 : vector<2x32xf32>
    %159 = math.exp %158 : vector<2x32xf32>
    %cst_39 = arith.constant 1.000000e+00 : f32
    %160 = vector.broadcast %cst_39 : f32 to vector<2x32xf32>
    %161 = arith.addf %160, %159 : vector<2x32xf32>
    %162 = arith.divf %160, %161 : vector<2x32xf32>
    %163 = vector.extract_strided_slice %150 {offsets = [0, 64], sizes = [2, 32], strides = [1, 1]} : vector<2x128xf32> to vector<2x32xf32>
    %164 = math.tanh %163 : vector<2x32xf32>
    %165 = vector.extract_strided_slice %150 {offsets = [0, 96], sizes = [2, 32], strides = [1, 1]} : vector<2x128xf32> to vector<2x32xf32>
    %166 = arith.negf %165 : vector<2x32xf32>
    %167 = math.exp %166 : vector<2x32xf32>
    %cst_40 = arith.constant 1.000000e+00 : f32
    %168 = vector.broadcast %cst_40 : f32 to vector<2x32xf32>
    %169 = arith.addf %168, %167 : vector<2x32xf32>
    %170 = arith.divf %168, %169 : vector<2x32xf32>
    %171 = arith.mulf %162, %102 : vector<2x32xf32>
    %172 = arith.mulf %156, %164 : vector<2x32xf32>
    %173 = arith.addf %171, %172 : vector<2x32xf32>
    %174 = math.tanh %173 : vector<2x32xf32>
    %175 = arith.mulf %170, %174 : vector<2x32xf32>
    %c7_i32_41 = arith.constant 7 : i32
    %176 = arith.subi %c7_i32_41, %c2_i32 : i32
    %177 = arith.index_cast %176 : i32 to index
    %c0_42 = arith.constant 0 : index
    %c0_43 = arith.constant 0 : index
    %178 = vector.load %arg2[%177, %c0_42, %c0_43] : memref<8x2x128xf32, #tpu.memory_space<vmem>>, vector<1x2x128xf32>
    %179 = vector.shape_cast %178 : vector<1x2x128xf32> to vector<2x128xf32>
    %180 = arith.truncf %136 : vector<2x32xf32> to vector<2x32xbf16>
    %cst_44 = arith.constant dense<0.000000e+00> : vector<2x128xf32>
    %181 = tpu.matmul %180, %1, %cst_44 {dimension_numbers = #tpu.dot_dimension_numbers<[1], [0], [0], [1], [0, 0, 1, 1], [], []>} : vector<2x32xbf16>, vector<32x128xbf16>, vector<2x128xf32> -> vector<2x128xf32>
    %182 = arith.addf %179, %181 : vector<2x128xf32>
    %183 = vector.extract_strided_slice %182 {offsets = [0, 0], sizes = [2, 32], strides = [1, 1]} : vector<2x128xf32> to vector<2x32xf32>
    %184 = arith.negf %183 : vector<2x32xf32>
    %185 = math.exp %184 : vector<2x32xf32>
    %cst_45 = arith.constant 1.000000e+00 : f32
    %186 = vector.broadcast %cst_45 : f32 to vector<2x32xf32>
    %187 = arith.addf %186, %185 : vector<2x32xf32>
    %188 = arith.divf %186, %187 : vector<2x32xf32>
    %189 = vector.extract_strided_slice %182 {offsets = [0, 32], sizes = [2, 32], strides = [1, 1]} : vector<2x128xf32> to vector<2x32xf32>
    %190 = arith.negf %189 : vector<2x32xf32>
    %191 = math.exp %190 : vector<2x32xf32>
    %cst_46 = arith.constant 1.000000e+00 : f32
    %192 = vector.broadcast %cst_46 : f32 to vector<2x32xf32>
    %193 = arith.addf %192, %191 : vector<2x32xf32>
    %194 = arith.divf %192, %193 : vector<2x32xf32>
    %195 = vector.extract_strided_slice %182 {offsets = [0, 64], sizes = [2, 32], strides = [1, 1]} : vector<2x128xf32> to vector<2x32xf32>
    %196 = math.tanh %195 : vector<2x32xf32>
    %197 = vector.extract_strided_slice %182 {offsets = [0, 96], sizes = [2, 32], strides = [1, 1]} : vector<2x128xf32> to vector<2x32xf32>
    %198 = arith.negf %197 : vector<2x32xf32>
    %199 = math.exp %198 : vector<2x32xf32>
    %cst_47 = arith.constant 1.000000e+00 : f32
    %200 = vector.broadcast %cst_47 : f32 to vector<2x32xf32>
    %201 = arith.addf %200, %199 : vector<2x32xf32>
    %202 = arith.divf %200, %201 : vector<2x32xf32>
    %203 = arith.mulf %194, %134 : vector<2x32xf32>
    %204 = arith.mulf %188, %196 : vector<2x32xf32>
    %205 = arith.addf %203, %204 : vector<2x32xf32>
    %206 = math.tanh %205 : vector<2x32xf32>
    %207 = arith.mulf %202, %206 : vector<2x32xf32>
    %208 = arith.index_cast %c2_i32 : i32 to index
    %c0_48 = arith.constant 0 : index
    %c0_49 = arith.constant 0 : index
    %209 = vector.load %arg5[%208, %c0_48, %c0_49] : memref<8x2x64xf32, #tpu.memory_space<vmem>>, vector<1x2x32xf32>
    %210 = vector.shape_cast %209 : vector<1x2x32xf32> to vector<2x32xf32>
    %211 = vector.shape_cast %175 : vector<2x32xf32> to vector<1x2x32xf32>
    tpu.vector_store %arg5[%208, %c0_48, %c0_49], %211 {strides = array<i32>} : memref<8x2x64xf32, #tpu.memory_space<vmem>>, vector<1x2x32xf32>,
    %212 = arith.index_cast %176 : i32 to index
    %c0_50 = arith.constant 0 : index
    %c32_51 = arith.constant 32 : index
    %213 = vector.load %arg5[%212, %c0_50, %c32_51] : memref<8x2x64xf32, #tpu.memory_space<vmem>>, vector<1x2x32xf32>
    %214 = vector.shape_cast %213 : vector<1x2x32xf32> to vector<2x32xf32>
    %215 = vector.shape_cast %207 : vector<2x32xf32> to vector<1x2x32xf32>
    tpu.vector_store %arg5[%212, %c0_50, %c32_51], %215 {strides = array<i32>} : memref<8x2x64xf32, #tpu.memory_space<vmem>>, vector<1x2x32xf32>,
    %c3_i32 = arith.constant 3 : i32
    %216 = arith.index_cast %c3_i32 : i32 to index
    %c0_52 = arith.constant 0 : index
    %c0_53 = arith.constant 0 : index
    %217 = vector.load %arg1[%216, %c0_52, %c0_53] : memref<8x2x128xf32, #tpu.memory_space<vmem>>, vector<1x2x128xf32>
    %218 = vector.shape_cast %217 : vector<1x2x128xf32> to vector<2x128xf32>
    %219 = arith.truncf %175 : vector<2x32xf32> to vector<2x32xbf16>
    %cst_54 = arith.constant dense<0.000000e+00> : vector<2x128xf32>
    %220 = tpu.matmul %219, %0, %cst_54 {dimension_numbers = #tpu.dot_dimension_numbers<[1], [0], [0], [1], [0, 0, 1, 1], [], []>} : vector<2x32xbf16>, vector<32x128xbf16>, vector<2x128xf32> -> vector<2x128xf32>
    %221 = arith.addf %218, %220 : vector<2x128xf32>
    %222 = vector.extract_strided_slice %221 {offsets = [0, 0], sizes = [2, 32], strides = [1, 1]} : vector<2x128xf32> to vector<2x32xf32>
    %223 = arith.negf %222 : vector<2x32xf32>
    %224 = math.exp %223 : vector<2x32xf32>
    %cst_55 = arith.constant 1.000000e+00 : f32
    %225 = vector.broadcast %cst_55 : f32 to vector<2x32xf32>
    %226 = arith.addf %225, %224 : vector<2x32xf32>
    %227 = arith.divf %225, %226 : vector<2x32xf32>
    %228 = vector.extract_strided_slice %221 {offsets = [0, 32], sizes = [2, 32], strides = [1, 1]} : vector<2x128xf32> to vector<2x32xf32>
    %229 = arith.negf %228 : vector<2x32xf32>
    %230 = math.exp %229 : vector<2x32xf32>
    %cst_56 = arith.constant 1.000000e+00 : f32
    %231 = vector.broadcast %cst_56 : f32 to vector<2x32xf32>
    %232 = arith.addf %231, %230 : vector<2x32xf32>
    %233 = arith.divf %231, %232 : vector<2x32xf32>
    %234 = vector.extract_strided_slice %221 {offsets = [0, 64], sizes = [2, 32], strides = [1, 1]} : vector<2x128xf32> to vector<2x32xf32>
    %235 = math.tanh %234 : vector<2x32xf32>
    %236 = vector.extract_strided_slice %221 {offsets = [0, 96], sizes = [2, 32], strides = [1, 1]} : vector<2x128xf32> to vector<2x32xf32>
    %237 = arith.negf %236 : vector<2x32xf32>
    %238 = math.exp %237 : vector<2x32xf32>
    %cst_57 = arith.constant 1.000000e+00 : f32
    %239 = vector.broadcast %cst_57 : f32 to vector<2x32xf32>
    %240 = arith.addf %239, %238 : vector<2x32xf32>
    %241 = arith.divf %239, %240 : vector<2x32xf32>
    %242 = arith.mulf %233, %173 : vector<2x32xf32>
    %243 = arith.mulf %227, %235 : vector<2x32xf32>
    %244 = arith.addf %242, %243 : vector<2x32xf32>
    %245 = math.tanh %244 : vector<2x32xf32>
    %246 = arith.mulf %241, %245 : vector<2x32xf32>
    %c7_i32_58 = arith.constant 7 : i32
    %247 = arith.subi %c7_i32_58, %c3_i32 : i32
    %248 = arith.index_cast %247 : i32 to index
    %c0_59 = arith.constant 0 : index
    %c0_60 = arith.constant 0 : index
    %249 = vector.load %arg2[%248, %c0_59, %c0_60] : memref<8x2x128xf32, #tpu.memory_space<vmem>>, vector<1x2x128xf32>
    %250 = vector.shape_cast %249 : vector<1x2x128xf32> to vector<2x128xf32>
    %251 = arith.truncf %207 : vector<2x32xf32> to vector<2x32xbf16>
    %cst_61 = arith.constant dense<0.000000e+00> : vector<2x128xf32>
    %252 = tpu.matmul %251, %1, %cst_61 {dimension_numbers = #tpu.dot_dimension_numbers<[1], [0], [0], [1], [0, 0, 1, 1], [], []>} : vector<2x32xbf16>, vector<32x128xbf16>, vector<2x128xf32> -> vector<2x128xf32>
    %253 = arith.addf %250, %252 : vector<2x128xf32>
    %254 = vector.extract_strided_slice %253 {offsets = [0, 0], sizes = [2, 32], strides = [1, 1]} : vector<2x128xf32> to vector<2x32xf32>
    %255 = arith.negf %254 : vector<2x32xf32>
    %256 = math.exp %255 : vector<2x32xf32>
    %cst_62 = arith.constant 1.000000e+00 : f32
    %257 = vector.broadcast %cst_62 : f32 to vector<2x32xf32>
    %258 = arith.addf %257, %256 : vector<2x32xf32>
    %259 = arith.divf %257, %258 : vector<2x32xf32>
    %260 = vector.extract_strided_slice %253 {offsets = [0, 32], sizes = [2, 32], strides = [1, 1]} : vector<2x128xf32> to vector<2x32xf32>
    %261 = arith.negf %260 : vector<2x32xf32>
    %262 = math.exp %261 : vector<2x32xf32>
    %cst_63 = arith.constant 1.000000e+00 : f32
    %263 = vector.broadcast %cst_63 : f32 to vector<2x32xf32>
    %264 = arith.addf %263, %262 : vector<2x32xf32>
    %265 = arith.divf %263, %264 : vector<2x32xf32>
    %266 = vector.extract_strided_slice %253 {offsets = [0, 64], sizes = [2, 32], strides = [1, 1]} : vector<2x128xf32> to vector<2x32xf32>
    %267 = math.tanh %266 : vector<2x32xf32>
    %268 = vector.extract_strided_slice %253 {offsets = [0, 96], sizes = [2, 32], strides = [1, 1]} : vector<2x128xf32> to vector<2x32xf32>
    %269 = arith.negf %268 : vector<2x32xf32>
    %270 = math.exp %269 : vector<2x32xf32>
    %cst_64 = arith.constant 1.000000e+00 : f32
    %271 = vector.broadcast %cst_64 : f32 to vector<2x32xf32>
    %272 = arith.addf %271, %270 : vector<2x32xf32>
    %273 = arith.divf %271, %272 : vector<2x32xf32>
    %274 = arith.mulf %265, %205 : vector<2x32xf32>
    %275 = arith.mulf %259, %267 : vector<2x32xf32>
    %276 = arith.addf %274, %275 : vector<2x32xf32>
    %277 = math.tanh %276 : vector<2x32xf32>
    %278 = arith.mulf %273, %277 : vector<2x32xf32>
    %279 = arith.index_cast %c3_i32 : i32 to index
    %c0_65 = arith.constant 0 : index
    %c0_66 = arith.constant 0 : index
    %280 = vector.load %arg5[%279, %c0_65, %c0_66] : memref<8x2x64xf32, #tpu.memory_space<vmem>>, vector<1x2x32xf32>
    %281 = vector.shape_cast %280 : vector<1x2x32xf32> to vector<2x32xf32>
    %282 = vector.shape_cast %246 : vector<2x32xf32> to vector<1x2x32xf32>
    tpu.vector_store %arg5[%279, %c0_65, %c0_66], %282 {strides = array<i32>} : memref<8x2x64xf32, #tpu.memory_space<vmem>>, vector<1x2x32xf32>,
    %283 = arith.index_cast %247 : i32 to index
    %c0_67 = arith.constant 0 : index
    %c32_68 = arith.constant 32 : index
    %284 = vector.load %arg5[%283, %c0_67, %c32_68] : memref<8x2x64xf32, #tpu.memory_space<vmem>>, vector<1x2x32xf32>
    %285 = vector.shape_cast %284 : vector<1x2x32xf32> to vector<2x32xf32>
    %286 = vector.shape_cast %278 : vector<2x32xf32> to vector<1x2x32xf32>
    tpu.vector_store %arg5[%283, %c0_67, %c32_68], %286 {strides = array<i32>} : memref<8x2x64xf32, #tpu.memory_space<vmem>>, vector<1x2x32xf32>,
    %c4_i32 = arith.constant 4 : i32
    %287 = arith.index_cast %c4_i32 : i32 to index
    %c0_69 = arith.constant 0 : index
    %c0_70 = arith.constant 0 : index
    %288 = vector.load %arg1[%287, %c0_69, %c0_70] : memref<8x2x128xf32, #tpu.memory_space<vmem>>, vector<1x2x128xf32>
    %289 = vector.shape_cast %288 : vector<1x2x128xf32> to vector<2x128xf32>
    %290 = arith.truncf %246 : vector<2x32xf32> to vector<2x32xbf16>
    %cst_71 = arith.constant dense<0.000000e+00> : vector<2x128xf32>
    %291 = tpu.matmul %290, %0, %cst_71 {dimension_numbers = #tpu.dot_dimension_numbers<[1], [0], [0], [1], [0, 0, 1, 1], [], []>} : vector<2x32xbf16>, vector<32x128xbf16>, vector<2x128xf32> -> vector<2x128xf32>
    %292 = arith.addf %289, %291 : vector<2x128xf32>
    %293 = vector.extract_strided_slice %292 {offsets = [0, 0], sizes = [2, 32], strides = [1, 1]} : vector<2x128xf32> to vector<2x32xf32>
    %294 = arith.negf %293 : vector<2x32xf32>
    %295 = math.exp %294 : vector<2x32xf32>
    %cst_72 = arith.constant 1.000000e+00 : f32
    %296 = vector.broadcast %cst_72 : f32 to vector<2x32xf32>
    %297 = arith.addf %296, %295 : vector<2x32xf32>
    %298 = arith.divf %296, %297 : vector<2x32xf32>
    %299 = vector.extract_strided_slice %292 {offsets = [0, 32], sizes = [2, 32], strides = [1, 1]} : vector<2x128xf32> to vector<2x32xf32>
    %300 = arith.negf %299 : vector<2x32xf32>
    %301 = math.exp %300 : vector<2x32xf32>
    %cst_73 = arith.constant 1.000000e+00 : f32
    %302 = vector.broadcast %cst_73 : f32 to vector<2x32xf32>
    %303 = arith.addf %302, %301 : vector<2x32xf32>
    %304 = arith.divf %302, %303 : vector<2x32xf32>
    %305 = vector.extract_strided_slice %292 {offsets = [0, 64], sizes = [2, 32], strides = [1, 1]} : vector<2x128xf32> to vector<2x32xf32>
    %306 = math.tanh %305 : vector<2x32xf32>
    %307 = vector.extract_strided_slice %292 {offsets = [0, 96], sizes = [2, 32], strides = [1, 1]} : vector<2x128xf32> to vector<2x32xf32>
    %308 = arith.negf %307 : vector<2x32xf32>
    %309 = math.exp %308 : vector<2x32xf32>
    %cst_74 = arith.constant 1.000000e+00 : f32
    %310 = vector.broadcast %cst_74 : f32 to vector<2x32xf32>
    %311 = arith.addf %310, %309 : vector<2x32xf32>
    %312 = arith.divf %310, %311 : vector<2x32xf32>
    %313 = arith.mulf %304, %244 : vector<2x32xf32>
    %314 = arith.mulf %298, %306 : vector<2x32xf32>
    %315 = arith.addf %313, %314 : vector<2x32xf32>
    %316 = math.tanh %315 : vector<2x32xf32>
    %317 = arith.mulf %312, %316 : vector<2x32xf32>
    %c7_i32_75 = arith.constant 7 : i32
    %318 = arith.subi %c7_i32_75, %c4_i32 : i32
    %319 = arith.index_cast %318 : i32 to index
    %c0_76 = arith.constant 0 : index
    %c0_77 = arith.constant 0 : index
    %320 = vector.load %arg2[%319, %c0_76, %c0_77] : memref<8x2x128xf32, #tpu.memory_space<vmem>>, vector<1x2x128xf32>
    %321 = vector.shape_cast %320 : vector<1x2x128xf32> to vector<2x128xf32>
    %322 = arith.truncf %278 : vector<2x32xf32> to vector<2x32xbf16>
    %cst_78 = arith.constant dense<0.000000e+00> : vector<2x128xf32>
    %323 = tpu.matmul %322, %1, %cst_78 {dimension_numbers = #tpu.dot_dimension_numbers<[1], [0], [0], [1], [0, 0, 1, 1], [], []>} : vector<2x32xbf16>, vector<32x128xbf16>, vector<2x128xf32> -> vector<2x128xf32>
    %324 = arith.addf %321, %323 : vector<2x128xf32>
    %325 = vector.extract_strided_slice %324 {offsets = [0, 0], sizes = [2, 32], strides = [1, 1]} : vector<2x128xf32> to vector<2x32xf32>
    %326 = arith.negf %325 : vector<2x32xf32>
    %327 = math.exp %326 : vector<2x32xf32>
    %cst_79 = arith.constant 1.000000e+00 : f32
    %328 = vector.broadcast %cst_79 : f32 to vector<2x32xf32>
    %329 = arith.addf %328, %327 : vector<2x32xf32>
    %330 = arith.divf %328, %329 : vector<2x32xf32>
    %331 = vector.extract_strided_slice %324 {offsets = [0, 32], sizes = [2, 32], strides = [1, 1]} : vector<2x128xf32> to vector<2x32xf32>
    %332 = arith.negf %331 : vector<2x32xf32>
    %333 = math.exp %332 : vector<2x32xf32>
    %cst_80 = arith.constant 1.000000e+00 : f32
    %334 = vector.broadcast %cst_80 : f32 to vector<2x32xf32>
    %335 = arith.addf %334, %333 : vector<2x32xf32>
    %336 = arith.divf %334, %335 : vector<2x32xf32>
    %337 = vector.extract_strided_slice %324 {offsets = [0, 64], sizes = [2, 32], strides = [1, 1]} : vector<2x128xf32> to vector<2x32xf32>
    %338 = math.tanh %337 : vector<2x32xf32>
    %339 = vector.extract_strided_slice %324 {offsets = [0, 96], sizes = [2, 32], strides = [1, 1]} : vector<2x128xf32> to vector<2x32xf32>
    %340 = arith.negf %339 : vector<2x32xf32>
    %341 = math.exp %340 : vector<2x32xf32>
    %cst_81 = arith.constant 1.000000e+00 : f32
    %342 = vector.broadcast %cst_81 : f32 to vector<2x32xf32>
    %343 = arith.addf %342, %341 : vector<2x32xf32>
    %344 = arith.divf %342, %343 : vector<2x32xf32>
    %345 = arith.mulf %336, %276 : vector<2x32xf32>
    %346 = arith.mulf %330, %338 : vector<2x32xf32>
    %347 = arith.addf %345, %346 : vector<2x32xf32>
    %348 = math.tanh %347 : vector<2x32xf32>
    %349 = arith.mulf %344, %348 : vector<2x32xf32>
    %350 = arith.index_cast %c4_i32 : i32 to index
    %c0_82 = arith.constant 0 : index
    %c0_83 = arith.constant 0 : index
    %351 = vector.load %arg5[%350, %c0_82, %c0_83] : memref<8x2x64xf32, #tpu.memory_space<vmem>>, vector<1x2x32xf32>
    %352 = vector.shape_cast %351 : vector<1x2x32xf32> to vector<2x32xf32>
    %353 = vector.shape_cast %317 : vector<2x32xf32> to vector<1x2x32xf32>
    tpu.vector_store %arg5[%350, %c0_82, %c0_83], %353 {strides = array<i32>} : memref<8x2x64xf32, #tpu.memory_space<vmem>>, vector<1x2x32xf32>,
    %354 = arith.index_cast %318 : i32 to index
    %c0_84 = arith.constant 0 : index
    %c32_85 = arith.constant 32 : index
    %355 = vector.load %arg5[%354, %c0_84, %c32_85] : memref<8x2x64xf32, #tpu.memory_space<vmem>>, vector<1x2x32xf32>
    %356 = vector.shape_cast %355 : vector<1x2x32xf32> to vector<2x32xf32>
    %357 = vector.shape_cast %349 : vector<2x32xf32> to vector<1x2x32xf32>
    tpu.vector_store %arg5[%354, %c0_84, %c32_85], %357 {strides = array<i32>} : memref<8x2x64xf32, #tpu.memory_space<vmem>>, vector<1x2x32xf32>,
    %c5_i32 = arith.constant 5 : i32
    %358 = arith.index_cast %c5_i32 : i32 to index
    %c0_86 = arith.constant 0 : index
    %c0_87 = arith.constant 0 : index
    %359 = vector.load %arg1[%358, %c0_86, %c0_87] : memref<8x2x128xf32, #tpu.memory_space<vmem>>, vector<1x2x128xf32>
    %360 = vector.shape_cast %359 : vector<1x2x128xf32> to vector<2x128xf32>
    %361 = arith.truncf %317 : vector<2x32xf32> to vector<2x32xbf16>
    %cst_88 = arith.constant dense<0.000000e+00> : vector<2x128xf32>
    %362 = tpu.matmul %361, %0, %cst_88 {dimension_numbers = #tpu.dot_dimension_numbers<[1], [0], [0], [1], [0, 0, 1, 1], [], []>} : vector<2x32xbf16>, vector<32x128xbf16>, vector<2x128xf32> -> vector<2x128xf32>
    %363 = arith.addf %360, %362 : vector<2x128xf32>
    %364 = vector.extract_strided_slice %363 {offsets = [0, 0], sizes = [2, 32], strides = [1, 1]} : vector<2x128xf32> to vector<2x32xf32>
    %365 = arith.negf %364 : vector<2x32xf32>
    %366 = math.exp %365 : vector<2x32xf32>
    %cst_89 = arith.constant 1.000000e+00 : f32
    %367 = vector.broadcast %cst_89 : f32 to vector<2x32xf32>
    %368 = arith.addf %367, %366 : vector<2x32xf32>
    %369 = arith.divf %367, %368 : vector<2x32xf32>
    %370 = vector.extract_strided_slice %363 {offsets = [0, 32], sizes = [2, 32], strides = [1, 1]} : vector<2x128xf32> to vector<2x32xf32>
    %371 = arith.negf %370 : vector<2x32xf32>
    %372 = math.exp %371 : vector<2x32xf32>
    %cst_90 = arith.constant 1.000000e+00 : f32
    %373 = vector.broadcast %cst_90 : f32 to vector<2x32xf32>
    %374 = arith.addf %373, %372 : vector<2x32xf32>
    %375 = arith.divf %373, %374 : vector<2x32xf32>
    %376 = vector.extract_strided_slice %363 {offsets = [0, 64], sizes = [2, 32], strides = [1, 1]} : vector<2x128xf32> to vector<2x32xf32>
    %377 = math.tanh %376 : vector<2x32xf32>
    %378 = vector.extract_strided_slice %363 {offsets = [0, 96], sizes = [2, 32], strides = [1, 1]} : vector<2x128xf32> to vector<2x32xf32>
    %379 = arith.negf %378 : vector<2x32xf32>
    %380 = math.exp %379 : vector<2x32xf32>
    %cst_91 = arith.constant 1.000000e+00 : f32
    %381 = vector.broadcast %cst_91 : f32 to vector<2x32xf32>
    %382 = arith.addf %381, %380 : vector<2x32xf32>
    %383 = arith.divf %381, %382 : vector<2x32xf32>
    %384 = arith.mulf %375, %315 : vector<2x32xf32>
    %385 = arith.mulf %369, %377 : vector<2x32xf32>
    %386 = arith.addf %384, %385 : vector<2x32xf32>
    %387 = math.tanh %386 : vector<2x32xf32>
    %388 = arith.mulf %383, %387 : vector<2x32xf32>
    %c7_i32_92 = arith.constant 7 : i32
    %389 = arith.subi %c7_i32_92, %c5_i32 : i32
    %390 = arith.index_cast %389 : i32 to index
    %c0_93 = arith.constant 0 : index
    %c0_94 = arith.constant 0 : index
    %391 = vector.load %arg2[%390, %c0_93, %c0_94] : memref<8x2x128xf32, #tpu.memory_space<vmem>>, vector<1x2x128xf32>
    %392 = vector.shape_cast %391 : vector<1x2x128xf32> to vector<2x128xf32>
    %393 = arith.truncf %349 : vector<2x32xf32> to vector<2x32xbf16>
    %cst_95 = arith.constant dense<0.000000e+00> : vector<2x128xf32>
    %394 = tpu.matmul %393, %1, %cst_95 {dimension_numbers = #tpu.dot_dimension_numbers<[1], [0], [0], [1], [0, 0, 1, 1], [], []>} : vector<2x32xbf16>, vector<32x128xbf16>, vector<2x128xf32> -> vector<2x128xf32>
    %395 = arith.addf %392, %394 : vector<2x128xf32>
    %396 = vector.extract_strided_slice %395 {offsets = [0, 0], sizes = [2, 32], strides = [1, 1]} : vector<2x128xf32> to vector<2x32xf32>
    %397 = arith.negf %396 : vector<2x32xf32>
    %398 = math.exp %397 : vector<2x32xf32>
    %cst_96 = arith.constant 1.000000e+00 : f32
    %399 = vector.broadcast %cst_96 : f32 to vector<2x32xf32>
    %400 = arith.addf %399, %398 : vector<2x32xf32>
    %401 = arith.divf %399, %400 : vector<2x32xf32>
    %402 = vector.extract_strided_slice %395 {offsets = [0, 32], sizes = [2, 32], strides = [1, 1]} : vector<2x128xf32> to vector<2x32xf32>
    %403 = arith.negf %402 : vector<2x32xf32>
    %404 = math.exp %403 : vector<2x32xf32>
    %cst_97 = arith.constant 1.000000e+00 : f32
    %405 = vector.broadcast %cst_97 : f32 to vector<2x32xf32>
    %406 = arith.addf %405, %404 : vector<2x32xf32>
    %407 = arith.divf %405, %406 : vector<2x32xf32>
    %408 = vector.extract_strided_slice %395 {offsets = [0, 64], sizes = [2, 32], strides = [1, 1]} : vector<2x128xf32> to vector<2x32xf32>
    %409 = math.tanh %408 : vector<2x32xf32>
    %410 = vector.extract_strided_slice %395 {offsets = [0, 96], sizes = [2, 32], strides = [1, 1]} : vector<2x128xf32> to vector<2x32xf32>
    %411 = arith.negf %410 : vector<2x32xf32>
    %412 = math.exp %411 : vector<2x32xf32>
    %cst_98 = arith.constant 1.000000e+00 : f32
    %413 = vector.broadcast %cst_98 : f32 to vector<2x32xf32>
    %414 = arith.addf %413, %412 : vector<2x32xf32>
    %415 = arith.divf %413, %414 : vector<2x32xf32>
    %416 = arith.mulf %407, %347 : vector<2x32xf32>
    %417 = arith.mulf %401, %409 : vector<2x32xf32>
    %418 = arith.addf %416, %417 : vector<2x32xf32>
    %419 = math.tanh %418 : vector<2x32xf32>
    %420 = arith.mulf %415, %419 : vector<2x32xf32>
    %421 = arith.index_cast %c5_i32 : i32 to index
    %c0_99 = arith.constant 0 : index
    %c0_100 = arith.constant 0 : index
    %422 = vector.load %arg5[%421, %c0_99, %c0_100] : memref<8x2x64xf32, #tpu.memory_space<vmem>>, vector<1x2x32xf32>
    %423 = vector.shape_cast %422 : vector<1x2x32xf32> to vector<2x32xf32>
    %424 = vector.shape_cast %388 : vector<2x32xf32> to vector<1x2x32xf32>
    tpu.vector_store %arg5[%421, %c0_99, %c0_100], %424 {strides = array<i32>} : memref<8x2x64xf32, #tpu.memory_space<vmem>>, vector<1x2x32xf32>,
    %425 = arith.index_cast %389 : i32 to index
    %c0_101 = arith.constant 0 : index
    %c32_102 = arith.constant 32 : index
    %426 = vector.load %arg5[%425, %c0_101, %c32_102] : memref<8x2x64xf32, #tpu.memory_space<vmem>>, vector<1x2x32xf32>
    %427 = vector.shape_cast %426 : vector<1x2x32xf32> to vector<2x32xf32>
    %428 = vector.shape_cast %420 : vector<2x32xf32> to vector<1x2x32xf32>
    tpu.vector_store %arg5[%425, %c0_101, %c32_102], %428 {strides = array<i32>} : memref<8x2x64xf32, #tpu.memory_space<vmem>>, vector<1x2x32xf32>,
    %c6_i32 = arith.constant 6 : i32
    %429 = arith.index_cast %c6_i32 : i32 to index
    %c0_103 = arith.constant 0 : index
    %c0_104 = arith.constant 0 : index
    %430 = vector.load %arg1[%429, %c0_103, %c0_104] : memref<8x2x128xf32, #tpu.memory_space<vmem>>, vector<1x2x128xf32>
    %431 = vector.shape_cast %430 : vector<1x2x128xf32> to vector<2x128xf32>
    %432 = arith.truncf %388 : vector<2x32xf32> to vector<2x32xbf16>
    %cst_105 = arith.constant dense<0.000000e+00> : vector<2x128xf32>
    %433 = tpu.matmul %432, %0, %cst_105 {dimension_numbers = #tpu.dot_dimension_numbers<[1], [0], [0], [1], [0, 0, 1, 1], [], []>} : vector<2x32xbf16>, vector<32x128xbf16>, vector<2x128xf32> -> vector<2x128xf32>
    %434 = arith.addf %431, %433 : vector<2x128xf32>
    %435 = vector.extract_strided_slice %434 {offsets = [0, 0], sizes = [2, 32], strides = [1, 1]} : vector<2x128xf32> to vector<2x32xf32>
    %436 = arith.negf %435 : vector<2x32xf32>
    %437 = math.exp %436 : vector<2x32xf32>
    %cst_106 = arith.constant 1.000000e+00 : f32
    %438 = vector.broadcast %cst_106 : f32 to vector<2x32xf32>
    %439 = arith.addf %438, %437 : vector<2x32xf32>
    %440 = arith.divf %438, %439 : vector<2x32xf32>
    %441 = vector.extract_strided_slice %434 {offsets = [0, 32], sizes = [2, 32], strides = [1, 1]} : vector<2x128xf32> to vector<2x32xf32>
    %442 = arith.negf %441 : vector<2x32xf32>
    %443 = math.exp %442 : vector<2x32xf32>
    %cst_107 = arith.constant 1.000000e+00 : f32
    %444 = vector.broadcast %cst_107 : f32 to vector<2x32xf32>
    %445 = arith.addf %444, %443 : vector<2x32xf32>
    %446 = arith.divf %444, %445 : vector<2x32xf32>
    %447 = vector.extract_strided_slice %434 {offsets = [0, 64], sizes = [2, 32], strides = [1, 1]} : vector<2x128xf32> to vector<2x32xf32>
    %448 = math.tanh %447 : vector<2x32xf32>
    %449 = vector.extract_strided_slice %434 {offsets = [0, 96], sizes = [2, 32], strides = [1, 1]} : vector<2x128xf32> to vector<2x32xf32>
    %450 = arith.negf %449 : vector<2x32xf32>
    %451 = math.exp %450 : vector<2x32xf32>
    %cst_108 = arith.constant 1.000000e+00 : f32
    %452 = vector.broadcast %cst_108 : f32 to vector<2x32xf32>
    %453 = arith.addf %452, %451 : vector<2x32xf32>
    %454 = arith.divf %452, %453 : vector<2x32xf32>
    %455 = arith.mulf %446, %386 : vector<2x32xf32>
    %456 = arith.mulf %440, %448 : vector<2x32xf32>
    %457 = arith.addf %455, %456 : vector<2x32xf32>
    %458 = math.tanh %457 : vector<2x32xf32>
    %459 = arith.mulf %454, %458 : vector<2x32xf32>
    %c7_i32_109 = arith.constant 7 : i32
    %460 = arith.subi %c7_i32_109, %c6_i32 : i32
    %461 = arith.index_cast %460 : i32 to index
    %c0_110 = arith.constant 0 : index
    %c0_111 = arith.constant 0 : index
    %462 = vector.load %arg2[%461, %c0_110, %c0_111] : memref<8x2x128xf32, #tpu.memory_space<vmem>>, vector<1x2x128xf32>
    %463 = vector.shape_cast %462 : vector<1x2x128xf32> to vector<2x128xf32>
    %464 = arith.truncf %420 : vector<2x32xf32> to vector<2x32xbf16>
    %cst_112 = arith.constant dense<0.000000e+00> : vector<2x128xf32>
    %465 = tpu.matmul %464, %1, %cst_112 {dimension_numbers = #tpu.dot_dimension_numbers<[1], [0], [0], [1], [0, 0, 1, 1], [], []>} : vector<2x32xbf16>, vector<32x128xbf16>, vector<2x128xf32> -> vector<2x128xf32>
    %466 = arith.addf %463, %465 : vector<2x128xf32>
    %467 = vector.extract_strided_slice %466 {offsets = [0, 0], sizes = [2, 32], strides = [1, 1]} : vector<2x128xf32> to vector<2x32xf32>
    %468 = arith.negf %467 : vector<2x32xf32>
    %469 = math.exp %468 : vector<2x32xf32>
    %cst_113 = arith.constant 1.000000e+00 : f32
    %470 = vector.broadcast %cst_113 : f32 to vector<2x32xf32>
    %471 = arith.addf %470, %469 : vector<2x32xf32>
    %472 = arith.divf %470, %471 : vector<2x32xf32>
    %473 = vector.extract_strided_slice %466 {offsets = [0, 32], sizes = [2, 32], strides = [1, 1]} : vector<2x128xf32> to vector<2x32xf32>
    %474 = arith.negf %473 : vector<2x32xf32>
    %475 = math.exp %474 : vector<2x32xf32>
    %cst_114 = arith.constant 1.000000e+00 : f32
    %476 = vector.broadcast %cst_114 : f32 to vector<2x32xf32>
    %477 = arith.addf %476, %475 : vector<2x32xf32>
    %478 = arith.divf %476, %477 : vector<2x32xf32>
    %479 = vector.extract_strided_slice %466 {offsets = [0, 64], sizes = [2, 32], strides = [1, 1]} : vector<2x128xf32> to vector<2x32xf32>
    %480 = math.tanh %479 : vector<2x32xf32>
    %481 = vector.extract_strided_slice %466 {offsets = [0, 96], sizes = [2, 32], strides = [1, 1]} : vector<2x128xf32> to vector<2x32xf32>
    %482 = arith.negf %481 : vector<2x32xf32>
    %483 = math.exp %482 : vector<2x32xf32>
    %cst_115 = arith.constant 1.000000e+00 : f32
    %484 = vector.broadcast %cst_115 : f32 to vector<2x32xf32>
    %485 = arith.addf %484, %483 : vector<2x32xf32>
    %486 = arith.divf %484, %485 : vector<2x32xf32>
    %487 = arith.mulf %478, %418 : vector<2x32xf32>
    %488 = arith.mulf %472, %480 : vector<2x32xf32>
    %489 = arith.addf %487, %488 : vector<2x32xf32>
    %490 = math.tanh %489 : vector<2x32xf32>
    %491 = arith.mulf %486, %490 : vector<2x32xf32>
    %492 = arith.index_cast %c6_i32 : i32 to index
    %c0_116 = arith.constant 0 : index
    %c0_117 = arith.constant 0 : index
    %493 = vector.load %arg5[%492, %c0_116, %c0_117] : memref<8x2x64xf32, #tpu.memory_space<vmem>>, vector<1x2x32xf32>
    %494 = vector.shape_cast %493 : vector<1x2x32xf32> to vector<2x32xf32>
    %495 = vector.shape_cast %459 : vector<2x32xf32> to vector<1x2x32xf32>
    tpu.vector_store %arg5[%492, %c0_116, %c0_117], %495 {strides = array<i32>} : memref<8x2x64xf32, #tpu.memory_space<vmem>>, vector<1x2x32xf32>,
    %496 = arith.index_cast %460 : i32 to index
    %c0_118 = arith.constant 0 : index
    %c32_119 = arith.constant 32 : index
    %497 = vector.load %arg5[%496, %c0_118, %c32_119] : memref<8x2x64xf32, #tpu.memory_space<vmem>>, vector<1x2x32xf32>
    %498 = vector.shape_cast %497 : vector<1x2x32xf32> to vector<2x32xf32>
    %499 = vector.shape_cast %491 : vector<2x32xf32> to vector<1x2x32xf32>
    tpu.vector_store %arg5[%496, %c0_118, %c32_119], %499 {strides = array<i32>} : memref<8x2x64xf32, #tpu.memory_space<vmem>>, vector<1x2x32xf32>,
    %c7_i32_120 = arith.constant 7 : i32
    %500 = arith.index_cast %c7_i32_120 : i32 to index
    %c0_121 = arith.constant 0 : index
    %c0_122 = arith.constant 0 : index
    %501 = vector.load %arg1[%500, %c0_121, %c0_122] : memref<8x2x128xf32, #tpu.memory_space<vmem>>, vector<1x2x128xf32>
    %502 = vector.shape_cast %501 : vector<1x2x128xf32> to vector<2x128xf32>
    %503 = arith.truncf %459 : vector<2x32xf32> to vector<2x32xbf16>
    %cst_123 = arith.constant dense<0.000000e+00> : vector<2x128xf32>
    %504 = tpu.matmul %503, %0, %cst_123 {dimension_numbers = #tpu.dot_dimension_numbers<[1], [0], [0], [1], [0, 0, 1, 1], [], []>} : vector<2x32xbf16>, vector<32x128xbf16>, vector<2x128xf32> -> vector<2x128xf32>
    %505 = arith.addf %502, %504 : vector<2x128xf32>
    %506 = vector.extract_strided_slice %505 {offsets = [0, 0], sizes = [2, 32], strides = [1, 1]} : vector<2x128xf32> to vector<2x32xf32>
    %507 = arith.negf %506 : vector<2x32xf32>
    %508 = math.exp %507 : vector<2x32xf32>
    %cst_124 = arith.constant 1.000000e+00 : f32
    %509 = vector.broadcast %cst_124 : f32 to vector<2x32xf32>
    %510 = arith.addf %509, %508 : vector<2x32xf32>
    %511 = arith.divf %509, %510 : vector<2x32xf32>
    %512 = vector.extract_strided_slice %505 {offsets = [0, 32], sizes = [2, 32], strides = [1, 1]} : vector<2x128xf32> to vector<2x32xf32>
    %513 = arith.negf %512 : vector<2x32xf32>
    %514 = math.exp %513 : vector<2x32xf32>
    %cst_125 = arith.constant 1.000000e+00 : f32
    %515 = vector.broadcast %cst_125 : f32 to vector<2x32xf32>
    %516 = arith.addf %515, %514 : vector<2x32xf32>
    %517 = arith.divf %515, %516 : vector<2x32xf32>
    %518 = vector.extract_strided_slice %505 {offsets = [0, 64], sizes = [2, 32], strides = [1, 1]} : vector<2x128xf32> to vector<2x32xf32>
    %519 = math.tanh %518 : vector<2x32xf32>
    %520 = vector.extract_strided_slice %505 {offsets = [0, 96], sizes = [2, 32], strides = [1, 1]} : vector<2x128xf32> to vector<2x32xf32>
    %521 = arith.negf %520 : vector<2x32xf32>
    %522 = math.exp %521 : vector<2x32xf32>
    %cst_126 = arith.constant 1.000000e+00 : f32
    %523 = vector.broadcast %cst_126 : f32 to vector<2x32xf32>
    %524 = arith.addf %523, %522 : vector<2x32xf32>
    %525 = arith.divf %523, %524 : vector<2x32xf32>
    %526 = arith.mulf %517, %457 : vector<2x32xf32>
    %527 = arith.mulf %511, %519 : vector<2x32xf32>
    %528 = arith.addf %526, %527 : vector<2x32xf32>
    %529 = math.tanh %528 : vector<2x32xf32>
    %530 = arith.mulf %525, %529 : vector<2x32xf32>
    %c7_i32_127 = arith.constant 7 : i32
    %531 = arith.subi %c7_i32_127, %c7_i32_120 : i32
    %532 = arith.index_cast %531 : i32 to index
    %c0_128 = arith.constant 0 : index
    %c0_129 = arith.constant 0 : index
    %533 = vector.load %arg2[%532, %c0_128, %c0_129] : memref<8x2x128xf32, #tpu.memory_space<vmem>>, vector<1x2x128xf32>
    %534 = vector.shape_cast %533 : vector<1x2x128xf32> to vector<2x128xf32>
    %535 = arith.truncf %491 : vector<2x32xf32> to vector<2x32xbf16>
    %cst_130 = arith.constant dense<0.000000e+00> : vector<2x128xf32>
    %536 = tpu.matmul %535, %1, %cst_130 {dimension_numbers = #tpu.dot_dimension_numbers<[1], [0], [0], [1], [0, 0, 1, 1], [], []>} : vector<2x32xbf16>, vector<32x128xbf16>, vector<2x128xf32> -> vector<2x128xf32>
    %537 = arith.addf %534, %536 : vector<2x128xf32>
    %538 = vector.extract_strided_slice %537 {offsets = [0, 0], sizes = [2, 32], strides = [1, 1]} : vector<2x128xf32> to vector<2x32xf32>
    %539 = arith.negf %538 : vector<2x32xf32>
    %540 = math.exp %539 : vector<2x32xf32>
    %cst_131 = arith.constant 1.000000e+00 : f32
    %541 = vector.broadcast %cst_131 : f32 to vector<2x32xf32>
    %542 = arith.addf %541, %540 : vector<2x32xf32>
    %543 = arith.divf %541, %542 : vector<2x32xf32>
    %544 = vector.extract_strided_slice %537 {offsets = [0, 32], sizes = [2, 32], strides = [1, 1]} : vector<2x128xf32> to vector<2x32xf32>
    %545 = arith.negf %544 : vector<2x32xf32>
    %546 = math.exp %545 : vector<2x32xf32>
    %cst_132 = arith.constant 1.000000e+00 : f32
    %547 = vector.broadcast %cst_132 : f32 to vector<2x32xf32>
    %548 = arith.addf %547, %546 : vector<2x32xf32>
    %549 = arith.divf %547, %548 : vector<2x32xf32>
    %550 = vector.extract_strided_slice %537 {offsets = [0, 64], sizes = [2, 32], strides = [1, 1]} : vector<2x128xf32> to vector<2x32xf32>
    %551 = math.tanh %550 : vector<2x32xf32>
    %552 = vector.extract_strided_slice %537 {offsets = [0, 96], sizes = [2, 32], strides = [1, 1]} : vector<2x128xf32> to vector<2x32xf32>
    %553 = arith.negf %552 : vector<2x32xf32>
    %554 = math.exp %553 : vector<2x32xf32>
    %cst_133 = arith.constant 1.000000e+00 : f32
    %555 = vector.broadcast %cst_133 : f32 to vector<2x32xf32>
    %556 = arith.addf %555, %554 : vector<2x32xf32>
    %557 = arith.divf %555, %556 : vector<2x32xf32>
    %558 = arith.mulf %549, %489 : vector<2x32xf32>
    %559 = arith.mulf %543, %551 : vector<2x32xf32>
    %560 = arith.addf %558, %559 : vector<2x32xf32>
    %561 = math.tanh %560 : vector<2x32xf32>
    %562 = arith.mulf %557, %561 : vector<2x32xf32>
    %563 = arith.index_cast %c7_i32_120 : i32 to index
    %c0_134 = arith.constant 0 : index
    %c0_135 = arith.constant 0 : index
    %564 = vector.load %arg5[%563, %c0_134, %c0_135] : memref<8x2x64xf32, #tpu.memory_space<vmem>>, vector<1x2x32xf32>
    %565 = vector.shape_cast %564 : vector<1x2x32xf32> to vector<2x32xf32>
    %566 = vector.shape_cast %530 : vector<2x32xf32> to vector<1x2x32xf32>
    tpu.vector_store %arg5[%563, %c0_134, %c0_135], %566 {strides = array<i32>} : memref<8x2x64xf32, #tpu.memory_space<vmem>>, vector<1x2x32xf32>,
    %567 = arith.index_cast %531 : i32 to index
    %c0_136 = arith.constant 0 : index
    %c32_137 = arith.constant 32 : index
    %568 = vector.load %arg5[%567, %c0_136, %c32_137] : memref<8x2x64xf32, #tpu.memory_space<vmem>>, vector<1x2x32xf32>
    %569 = vector.shape_cast %568 : vector<1x2x32xf32> to vector<2x32xf32>
    %570 = vector.shape_cast %562 : vector<2x32xf32> to vector<1x2x32xf32>
    tpu.vector_store %arg5[%567, %c0_136, %c32_137], %570 {strides = array<i32>} : memref<8x2x64xf32, #tpu.memory_space<vmem>>, vector<1x2x32xf32>,
    %c8_i32 = arith.constant 8 : i32
    %c0_138 = arith.constant 0 : index
    %c0_139 = arith.constant 0 : index
    %571 = vector.load %arg6[%c0_138, %c0_139] : memref<2x64xf32, #tpu.memory_space<vmem>>, vector<2x32xf32>
    tpu.vector_store %arg6[%c0_138, %c0_139], %530 {strides = array<i32>} : memref<2x64xf32, #tpu.memory_space<vmem>>, vector<2x32xf32>,
    %c0_140 = arith.constant 0 : index
    %c32_141 = arith.constant 32 : index
    %572 = vector.load %arg6[%c0_140, %c32_141] : memref<2x64xf32, #tpu.memory_space<vmem>>, vector<2x32xf32>
    tpu.vector_store %arg6[%c0_140, %c32_141], %562 {strides = array<i32>} : memref<2x64xf32, #tpu.memory_space<vmem>>, vector<2x32xf32>,
    return
  }
  func.func @transform_0(%arg0: i32) -> (i32, i32, i32) {
    %c0_i32 = arith.constant 0 : i32
    %c0_i32_0 = arith.constant 0 : i32
    %c0_i32_1 = arith.constant 0 : i32
    %c0_i32_2 = arith.constant 0 : i32
    return %c0_i32, %c0_i32_0, %c0_i32_1 : i32, i32, i32
  }
  func.func @transform_1(%arg0: i32) -> (i32, i32, i32) {
    %c0_i32 = arith.constant 0 : i32
    %c0_i32_0 = arith.constant 0 : i32
    %c0_i32_1 = arith.constant 0 : i32
    %c0_i32_2 = arith.constant 0 : i32
    return %c0_i32, %c0_i32_0, %c0_i32_1 : i32, i32, i32
  }
  func.func @transform_2(%arg0: i32) -> (i32, i32) {
    %c0_i32 = arith.constant 0 : i32
    %c0_i32_0 = arith.constant 0 : i32
    %c0_i32_1 = arith.constant 0 : i32
    return %c0_i32, %c0_i32_0 : i32, i32
  }
  func.func @transform_3(%arg0: i32) -> (i32, i32) {
    %c0_i32 = arith.constant 0 : i32
    %c0_i32_0 = arith.constant 0 : i32
    %c0_i32_1 = arith.constant 0 : i32
    return %c0_i32, %c0_i32_0 : i32, i32
  }
  func.func @transform_4(%arg0: i32) -> (i32, i32, i32) {
    %c0_i32 = arith.constant 0 : i32
    %c0_i32_0 = arith.constant 0 : i32
    %c0_i32_1 = arith.constant 0 : i32
    %c0_i32_2 = arith.constant 0 : i32
    return %c0_i32, %c0_i32_0, %c0_i32_1 : i32, i32, i32
  }
  func.func @transform_5(%arg0: i32) -> (i32, i32) {
    %c0_i32 = arith.constant 0 : i32
    %c0_i32_0 = arith.constant 0 : i32
    %c0_i32_1 = arith.constant 0 : i32
    return %c0_i32, %c0_i32_0 : i32, i32
  }
}

</mosaic_0001>

<bundles_post_ra>
// kernel: lstm_model_forward.3
= control target key start
LH: loop header
LB: loop body
LE: loop exit
PB: predicated region body
PF: predicated region fallthrough
CT: control target
= control target key end

     0   :  { %v1599_v0 = vmov 0.0   ;;  %vm1600_vm0 = vmmov 0   ;;  %v1601_v5 = vmov 0   ;;  %s1602_s25 = smov 64   ;;  %s1603_s26 = smov 32   ;;  %vm39_vm1 = vcmask 261120   ;;  %s1925_s2 = inlined_call_operand.vmem [shape: bf16[32,128], index: 2, kind: input, shape index: {}]   ;;  %s1926_s3 = inlined_call_operand.vmem [shape: bf16[32,128], index: 3, kind: input, shape index: {}]   ;;  %s1927_s0 = inlined_call_operand.vmem [shape: f32[8,2,128], index: 0, kind: input, shape index: {}]   ;;  %s1928_s1 = inlined_call_operand.vmem [shape: f32[8,2,128], index: 1, kind: input, shape index: {}]   ;;  %s1929_s4 = inlined_call_operand.vmem [shape: f32[2,64], index: 4, kind: output, shape index: {}]  }
   0x1   :  { %1334 = vmatprep.subr.bf16.mxu0 %v1599_v0  ;;  %v1633_v1 = vld [vmem:[%s1925_s2] sm:$0xff]   ;;  %1342 = vmatprep.subr.bf16.mxu1 %v1599_v0  ;;  %v1649_v3 = vld [vmem:[%s1925_s2 + $0x8] sm:$0xff]   ;;  %vm1226_vm2 = vcmask 254976   ;;  %vm1232_vm3 = vcmask 517376  }
   0x2   :  { %v1639_v2 = vld [vmem:[%s1926_s3] sm:$0xff]   ;;  %1338 = vmatprep.mubr.msk.bf16.mxu0 %vm1600_vm0, %v1599_v0  ;;  %1346 = vmatprep.mubr.msk.bf16.mxu1 %vm1600_vm0, %v1599_v0  ;;  %v1656_v4 = vld [vmem:[%s1926_s3 + $0x8] sm:$0xff]  }
   0x3   :  { %1335 = vmatpush3.bf16.msra.mxu0 %v1633_v1  ;;  %1343 = vmatpush3.bf16.msra.mxu1 %v1639_v2  ;;  %v26_v6 = vld [vmem:[%s1927_s0] sm:$0x3]  ;;  %v1241_v7 = vld [vmem:[%s1928_s1 + $0xe] sm:$0x3]  ;;  %v1245_v48 = vld [vmem:[%s1927_s0 + $0x2] sm:$0x3] }
   0x4   :  { %1336 = vmatprep.subr.bf16.mxu0 %v1599_v0  ;;  %1344 = vmatprep.subr.bf16.mxu1 %v1599_v0  ;;  %v1248_v53 = vld [vmem:[%s1928_s1 + $0xc] sm:$0x3] }
   0x7   :  { %1337 = vmatpush3.bf16.msra.mxu0 %v1649_v3  ;;  %1345 = vmatpush3.bf16.msra.mxu1 %v1656_v4 }
   0x8   :  { %1350 = vmatprep.subr.bf16.mxu0 %v1599_v0  ;;  %1358 = vmatprep.subr.bf16.mxu1 %v1599_v0 }
   0xa   :  { %1339 = vmatmul.mubr.bf16.vlgmr.msra.gmra.mrb[0].mxu0 %v1601_v5  ;;  %1347 = vmatmul.mubr.bf16.vlgmr.msra.gmra.mrb[0].mxu1 %v1601_v5 }
   0xb   :  { %1351 = vmatpush3.bf16.msra.mxu0 %v1633_v1  ;;  %1359 = vmatpush3.bf16.msra.mxu1 %v1639_v2 }
   0xc   :  { %1352 = vmatprep.subr.bf16.mxu0 %v1599_v0  ;;  %1354 = vmatprep.mubr.msk.bf16.mxu0 %vm1600_vm0, %v1599_v0 }
   0xd   :  { %1360 = vmatprep.subr.bf16.mxu1 %v1599_v0  ;;  %1362 = vmatprep.mubr.msk.bf16.mxu1 %vm1600_vm0, %v1599_v0 }
   0xf   :  { %1353 = vmatpush3.bf16.msra.mxu0 %v1649_v3  ;;  %1361 = vmatpush3.bf16.msra.mxu1 %v1656_v4 }
  0x10   :  { %1366 = vmatprep.subr.bf16.mxu0 %v1599_v0  ;;  %1374 = vmatprep.subr.bf16.mxu1 %v1599_v0 }
  0xdd   :  { %v77_v8 = vpop.f32.mrb[0].mxu0  ;;  %v156_v11 = vpop.f32.mrb[0].mxu1 }
  0xde   :  { %v83_v9 = vadd.f32 %v77_v8, %v26_v6  ;;  %v1340_v10 = vpop.f32.mrb[1].mxu0  ;;  %v162_v12 = vadd.f32 %v1241_v7, %v156_v11  ;;  %v1348_v14 = vpop.f32.mrb[1].mxu1 }
  0xdf   :  { %v80_v13 = vpop.f32.mrb[2].mxu0  ;;  %v159_v16 = vpop.f32.mrb[2].mxu1 }
  0xe0   :  { %1471 = vtanh.f32 %v83_v9  ;;  %v1341_v15 = vpop.f32.mrb[3].mxu0  ;;  %v1349_v17 = vpop.f32.mrb[3].mxu1  ;;  %v1240_v20 = vmul.f32 -1.442695, %v83_v9  ;;  %v1244_v21 = vmul.f32 -1.442695, %v162_v12 }
  0xe1   :  { %1473 = vtanh.f32 %v162_v12 }
  0xe2   :  { %1475 = vpow2.f32 %v1240_v20 }
  0xe3   :  { %1477 = vpow2.f32 %v1244_v21 }
  0xea   :  { %v1472_v18 = vpop.eup %1471 }
  0xeb   :  { %93 = vrot.lane.b32.xlu0 %v1472_v18, %s1602_s25  ;;  %v1474_v19 = vpop.eup %1473 }
  0xec   :  { %v1476_v22 = vpop.eup %1475 }
  0xed   :  { %v87_v23 = vadd.f32 1.0, %v1476_v22  ;;  %v1478_v24 = vpop.eup %1477 }
  0xee   :  { %v166_v25 = vadd.f32 1.0, %v1478_v24 }
  0xef   :  { %172 = vrot.lane.b32.xlu0 %v1474_v19, %s1602_s25  ;;  %1479 = vrcp.f32 %v87_v23 }
  0xf0   :  { %1481 = vrcp.f32 %v166_v25 }
  0xf9   :  { %v1480_v26 = vpop.eup %1479 }
  0xfa   :  { %v1482_v29 = vpop.eup %1481  ;;  %v91_v32 = vmul.f32 0.0, %v1480_v26 }
  0xfb   :  { %v170_v35 = vmul.f32 0.0, %v1482_v29 }
 0x15d   :  { %v94_v27 = vpop.permute.xlu0 %93 }
 0x15e   :  { %v96_v28 = vmul.f32 %v1480_v26, %v94_v27 }
 0x160   :  { %98 = vrot.lane.b32.xlu1 %v96_v28, %s1603_s26 }
 0x161   :  { %v173_v30 = vpop.permute.xlu0 %172 }
 0x162   :  { %v175_v31 = vmul.f32 %v1482_v29, %v173_v30 }
 0x164   :  { %177 = vrot.lane.b32.xlu1 %v175_v31, %s1603_s26  ;;  %v1251_v31 = vld [vmem:[%s1927_s0 + $0x4] sm:$0x3] }
 0x1d2   :  { %v99_v33 = vpop.permute.xlu1 %98 }
 0x1d3   :  { %v1685_v34 = vadd.f32 %v99_v33, %v91_v32 }
 0x1d5   :  { %1483 = vtanh.f32 %v1685_v34 }
 0x1d6   :  { %v178_v36 = vpop.permute.xlu1 %177 }
 0x1d7   :  { %v1688_v37 = vadd.f32 %v178_v36, %v170_v35  ;;  %v1254_v36 = vld [vmem:[%s1928_s1 + $0xa] sm:$0x3] }
 0x1d9   :  { %1485 = vtanh.f32 %v1688_v37 }
 0x1df   :  { %v1484_v38 = vpop.eup %1483 }
 0x1e0   :  { %104 = vrot.lane.b32.xlu0 %v1484_v38, %s1602_s25 }
 0x1e3   :  { %v1486_v39 = vpop.eup %1485 }
 0x1e4   :  { %183 = vrot.lane.b32.xlu1 %v1486_v39, %s1602_s25 }
 0x252   :  { %v105_v40 = vpop.permute.xlu0 %104 }
 0x253   :  { %v107_v41 = vmul.f32 %v1480_v26, %v105_v40 }
 0x255   :  { %v189_v42 = vpack.c.bf16 %v107_v41, %v107_v41 }
 0x256   :  { %v184_v43 = vpop.permute.xlu1 %183 }
 0x257   :  { %v186_v44 = vmul.f32 %v1482_v29, %v184_v43  ;;  %191 = vrot.lane.b32.xlu0 %v189_v42, %s1603_s26 }
 0x259   :  { %v263_v45 = vpack.c.bf16 %v186_v44, %v186_v44 }
 0x25b   :  { %265 = vrot.lane.b32.xlu1 %v263_v45, %s1603_s26 }
 0x2c9   :  { %v192_v46 = vpop.permute.xlu0 %191 }
 0x2ca   :  { %1355 = vmatmul.mubr.msk.bf16.vlgmr.msra.gmra.mrb[4].mxu0 %vm39_vm1, %v192_v46 }
 0x2cb   :  { %1367 = vmatpush3.bf16.msra.mxu0 %v1633_v1  ;;  %1370 = vmatprep.mubr.msk.bf16.mxu0 %vm1600_vm0, %v1599_v0 }
 0x2cc   :  { %1368 = vmatprep.subr.bf16.mxu0 %v1599_v0 }
 0x2cd   :  { %v266_v47 = vpop.permute.xlu1 %265 }
 0x2ce   :  { %1363 = vmatmul.mubr.msk.bf16.vlgmr.msra.gmra.mrb[4].mxu1 %vm39_vm1, %v266_v47 }
 0x2cf   :  { %1375 = vmatpush3.bf16.msra.mxu1 %v1639_v2  ;;  %1369 = vmatpush3.bf16.msra.mxu0 %v1649_v3 }
 0x2d0   :  { %1376 = vmatprep.subr.bf16.mxu1 %v1599_v0  ;;  %1378 = vmatprep.mubr.msk.bf16.mxu1 %vm1600_vm0, %v1599_v0 }
 0x2d1   :  { %1382 = vmatprep.subr.bf16.mxu0 %v1599_v0 }
 0x2d3   :  { %1377 = vmatpush3.bf16.msra.mxu1 %v1656_v4 }
 0x2d4   :  { %1390 = vmatprep.subr.bf16.mxu1 %v1599_v0 }
 0x39d   :  { %v230_v49 = vpop.f32.mrb[4].mxu0 }
 0x39e   :  { %v236_v50 = vadd.f32 %v1245_v48, %v230_v49  ;;  %v1356_v51 = vpop.f32.mrb[5].mxu0 }
 0x39f   :  { %v233_v52 = vpop.f32.mrb[6].mxu0 }
 0x3a0   :  { %1487 = vtanh.f32 %v236_v50  ;;  %v1357_v54 = vpop.f32.mrb[7].mxu0  ;;  %v1247_v62 = vmul.f32 -1.442695, %v236_v50 }
 0x3a1   :  { %v304_v55 = vpop.f32.mrb[4].mxu1 }
 0x3a2   :  { %v310_v56 = vadd.f32 %v1248_v53, %v304_v55  ;;  %v1364_v57 = vpop.f32.mrb[5].mxu1 }
 0x3a3   :  { %v307_v58 = vpop.f32.mrb[6].mxu1 }
 0x3a4   :  { %1489 = vtanh.f32 %v310_v56  ;;  %v1365_v59 = vpop.f32.mrb[7].mxu1  ;;  %v1250_v63 = vmul.f32 -1.442695, %v310_v56 }
 0x3a5   :  { %1491 = vpow2.f32 %v1247_v62 }
 0x3a6   :  { %1493 = vpow2.f32 %v1250_v63 }
 0x3aa   :  { %v1488_v60 = vpop.eup %1487 }
 0x3ab   :  { %246 = vrot.lane.b32.xlu0 %v1488_v60, %s1602_s25 }
 0x3ae   :  { %v1490_v61 = vpop.eup %1489 }
 0x3af   :  { %320 = vrot.lane.b32.xlu1 %v1490_v61, %s1602_s25  ;;  %v1492_v5 = vpop.eup %1491 }
 0x3b0   :  { %v240_v6 = vadd.f32 1.0, %v1492_v5  ;;  %v1494_v7 = vpop.eup %1493 }
 0x3b1   :  { %v314_v8 = vadd.f32 1.0, %v1494_v7 }
 0x3b2   :  { %1495 = vrcp.f32 %v240_v6 }
 0x3b3   :  { %1497 = vrcp.f32 %v314_v8 }
 0x3bc   :  { %v1496_v9 = vpop.eup %1495 }
 0x3bd   :  { %v1498_v12 = vpop.eup %1497  ;;  %v244_v15 = vmul.f32 %v1496_v9, %v1685_v34 }
 0x3be   :  { %v318_v18 = vmul.f32 %v1498_v12, %v1688_v37 }
 0x41d   :  { %v247_v10 = vpop.permute.xlu0 %246 }
 0x41e   :  { %v249_v11 = vmul.f32 %v1496_v9, %v247_v10 }
 0x420   :  { %251 = vrot.lane.b32.xlu0 %v249_v11, %s1603_s26 }
 0x421   :  { %v321_v13 = vpop.permute.xlu1 %320 }
 0x422   :  { %v323_v14 = vmul.f32 %v1498_v12, %v321_v13 }
 0x424   :  { %325 = vrot.lane.b32.xlu1 %v323_v14, %s1603_s26  ;;  %v1257_v14 = vld [vmem:[%s1927_s0 + $0x6] sm:$0x3] }
 0x492   :  { %v252_v16 = vpop.permute.xlu0 %251 }
 0x493   :  { %v1720_v17 = vadd.f32 %v252_v16, %v244_v15 }
 0x495   :  { %1499 = vtanh.f32 %v1720_v17 }
 0x496   :  { %v326_v19 = vpop.permute.xlu1 %325 }
 0x497   :  { %v1724_v20 = vadd.f32 %v326_v19, %v318_v18  ;;  %v1260_v19 = vld [vmem:[%s1928_s1 + $0x8] sm:$0x3] }
 0x499   :  { %1501 = vtanh.f32 %v1724_v20 }
 0x49f   :  { %v1500_v21 = vpop.eup %1499 }
 0x4a0   :  { %257 = vrot.lane.b32.xlu0 %v1500_v21, %s1602_s25 }
 0x4a3   :  { %v1502_v22 = vpop.eup %1501 }
 0x4a4   :  { %331 = vrot.lane.b32.xlu1 %v1502_v22, %s1602_s25 }
 0x512   :  { %v258_v23 = vpop.permute.xlu0 %257 }
 0x513   :  { %v260_v24 = vmul.f32 %v1496_v9, %v258_v23 }
 0x515   :  { %v337_v25 = vpack.c.bf16 %v260_v24, %v260_v24 }
 0x516   :  { %v332_v26 = vpop.permute.xlu1 %331 }
 0x517   :  { %v334_v27 = vmul.f32 %v1498_v12, %v332_v26  ;;  %339 = vrot.lane.b32.xlu0 %v337_v25, %s1603_s26 }
 0x519   :  { %v411_v28 = vpack.c.bf16 %v334_v27, %v334_v27 }
 0x51b   :  { %413 = vrot.lane.b32.xlu1 %v411_v28, %s1603_s26 }
 0x589   :  { %v340_v29 = vpop.permute.xlu0 %339 }
 0x58a   :  { %1371 = vmatmul.mubr.msk.bf16.vlgmr.msra.gmra.mrb[8].mxu0 %vm39_vm1, %v340_v29 }
 0x58b   :  { %1383 = vmatpush3.bf16.msra.mxu0 %v1633_v1  ;;  %1386 = vmatprep.mubr.msk.bf16.mxu0 %vm1600_vm0, %v1599_v0 }
 0x58c   :  { %1384 = vmatprep.subr.bf16.mxu0 %v1599_v0 }
 0x58d   :  { %v414_v30 = vpop.permute.xlu1 %413 }
 0x58e   :  { %1379 = vmatmul.mubr.msk.bf16.vlgmr.msra.gmra.mrb[8].mxu1 %vm39_vm1, %v414_v30 }
 0x58f   :  { %1391 = vmatpush3.bf16.msra.mxu1 %v1639_v2  ;;  %1385 = vmatpush3.bf16.msra.mxu0 %v1649_v3 }
 0x590   :  { %1392 = vmatprep.subr.bf16.mxu1 %v1599_v0  ;;  %1394 = vmatprep.mubr.msk.bf16.mxu1 %vm1600_vm0, %v1599_v0 }
 0x591   :  { %1398 = vmatprep.subr.bf16.mxu0 %v1599_v0 }
 0x593   :  { %1393 = vmatpush3.bf16.msra.mxu1 %v1656_v4 }
 0x594   :  { %1406 = vmatprep.subr.bf16.mxu1 %v1599_v0 }
 0x65d   :  { %v378_v32 = vpop.f32.mrb[8].mxu0 }
 0x65e   :  { %v384_v33 = vadd.f32 %v1251_v31, %v378_v32  ;;  %v1372_v34 = vpop.f32.mrb[9].mxu0 }
 0x65f   :  { %v381_v35 = vpop.f32.mrb[10].mxu0 }
 0x660   :  { %1503 = vtanh.f32 %v384_v33  ;;  %v1373_v37 = vpop.f32.mrb[11].mxu0  ;;  %v1253_v45 = vmul.f32 -1.442695, %v384_v33 }
 0x661   :  { %v452_v38 = vpop.f32.mrb[8].mxu1 }
 0x662   :  { %v458_v39 = vadd.f32 %v1254_v36, %v452_v38  ;;  %v1380_v40 = vpop.f32.mrb[9].mxu1 }
 0x663   :  { %v455_v41 = vpop.f32.mrb[10].mxu1 }
 0x664   :  { %1505 = vtanh.f32 %v458_v39  ;;  %v1381_v42 = vpop.f32.mrb[11].mxu1  ;;  %v1256_v46 = vmul.f32 -1.442695, %v458_v39 }
 0x665   :  { %1507 = vpow2.f32 %v1253_v45 }
 0x666   :  { %1509 = vpow2.f32 %v1256_v46 }
 0x66a   :  { %v1504_v43 = vpop.eup %1503 }
 0x66b   :  { %394 = vrot.lane.b32.xlu0 %v1504_v43, %s1602_s25 }
 0x66e   :  { %v1506_v44 = vpop.eup %1505 }
 0x66f   :  { %468 = vrot.lane.b32.xlu1 %v1506_v44, %s1602_s25  ;;  %v1508_v47 = vpop.eup %1507 }
 0x670   :  { %v388_v48 = vadd.f32 1.0, %v1508_v47  ;;  %v1510_v49 = vpop.eup %1509 }
 0x671   :  { %v462_v50 = vadd.f32 1.0, %v1510_v49 }
 0x672   :  { %1511 = vrcp.f32 %v388_v48 }
 0x673   :  { %1513 = vrcp.f32 %v462_v50 }
 0x67c   :  { %v1512_v51 = vpop.eup %1511 }
 0x67d   :  { %v1514_v54 = vpop.eup %1513  ;;  %v392_v57 = vmul.f32 %v1512_v51, %v1720_v17 }
 0x67e   :  { %v466_v60 = vmul.f32 %v1514_v54, %v1724_v20 }
 0x6dd   :  { %v395_v52 = vpop.permute.xlu0 %394 }
 0x6de   :  { %v397_v53 = vmul.f32 %v1512_v51, %v395_v52 }
 0x6e0   :  { %399 = vrot.lane.b32.xlu0 %v397_v53, %s1603_s26 }
 0x6e1   :  { %v469_v55 = vpop.permute.xlu1 %468 }
 0x6e2   :  { %v471_v56 = vmul.f32 %v1514_v54, %v469_v55 }
 0x6e4   :  { %473 = vrot.lane.b32.xlu1 %v471_v56, %s1603_s26  ;;  %v1263_v56 = vld [vmem:[%s1927_s0 + $0x8] sm:$0x3] }
 0x752   :  { %v400_v58 = vpop.permute.xlu0 %399 }
 0x753   :  { %v1756_v59 = vadd.f32 %v400_v58, %v392_v57 }
 0x755   :  { %1515 = vtanh.f32 %v1756_v59 }
 0x756   :  { %v474_v61 = vpop.permute.xlu1 %473 }
 0x757   :  { %v1760_v62 = vadd.f32 %v474_v61, %v466_v60  ;;  %v1266_v61 = vld [vmem:[%s1928_s1 + $0x6] sm:$0x3] }
 0x759   :  { %1517 = vtanh.f32 %v1760_v62 }
 0x75f   :  { %v1516_v63 = vpop.eup %1515 }
 0x760   :  { %405 = vrot.lane.b32.xlu0 %v1516_v63, %s1602_s25 }
 0x763   :  { %v1518_v5 = vpop.eup %1517 }
 0x764   :  { %479 = vrot.lane.b32.xlu1 %v1518_v5, %s1602_s25 }
 0x7d2   :  { %v406_v6 = vpop.permute.xlu0 %405 }
 0x7d3   :  { %v408_v7 = vmul.f32 %v1512_v51, %v406_v6 }
 0x7d5   :  { %v485_v8 = vpack.c.bf16 %v408_v7, %v408_v7 }
 0x7d6   :  { %v480_v9 = vpop.permute.xlu1 %479 }
 0x7d7   :  { %v482_v10 = vmul.f32 %v1514_v54, %v480_v9  ;;  %487 = vrot.lane.b32.xlu0 %v485_v8, %s1603_s26 }
 0x7d9   :  { %v559_v11 = vpack.c.bf16 %v482_v10, %v482_v10 }
 0x7db   :  { %561 = vrot.lane.b32.xlu1 %v559_v11, %s1603_s26 }
 0x849   :  { %v488_v12 = vpop.permute.xlu0 %487 }
 0x84a   :  { %1387 = vmatmul.mubr.msk.bf16.vlgmr.msra.gmra.mrb[12].mxu0 %vm39_vm1, %v488_v12 }
 0x84b   :  { %1399 = vmatpush3.bf16.msra.mxu0 %v1633_v1  ;;  %1402 = vmatprep.mubr.msk.bf16.mxu0 %vm1600_vm0, %v1599_v0 }
 0x84c   :  { %1400 = vmatprep.subr.bf16.mxu0 %v1599_v0 }
 0x84d   :  { %v562_v13 = vpop.permute.xlu1 %561 }
 0x84e   :  { %1395 = vmatmul.mubr.msk.bf16.vlgmr.msra.gmra.mrb[12].mxu1 %vm39_vm1, %v562_v13 }
 0x84f   :  { %1407 = vmatpush3.bf16.msra.mxu1 %v1639_v2  ;;  %1401 = vmatpush3.bf16.msra.mxu0 %v1649_v3 }
 0x850   :  { %1408 = vmatprep.subr.bf16.mxu1 %v1599_v0  ;;  %1410 = vmatprep.mubr.msk.bf16.mxu1 %vm1600_vm0, %v1599_v0 }
 0x851   :  { %1414 = vmatprep.subr.bf16.mxu0 %v1599_v0 }
 0x853   :  { %1409 = vmatpush3.bf16.msra.mxu1 %v1656_v4 }
 0x854   :  { %1422 = vmatprep.subr.bf16.mxu1 %v1599_v0 }
 0x91d   :  { %v526_v15 = vpop.f32.mrb[12].mxu0 }
 0x91e   :  { %v532_v16 = vadd.f32 %v1257_v14, %v526_v15  ;;  %v1388_v17 = vpop.f32.mrb[13].mxu0 }
 0x91f   :  { %v529_v18 = vpop.f32.mrb[14].mxu0 }
 0x920   :  { %1519 = vtanh.f32 %v532_v16  ;;  %v1389_v20 = vpop.f32.mrb[15].mxu0  ;;  %v1259_v28 = vmul.f32 -1.442695, %v532_v16 }
 0x921   :  { %v600_v21 = vpop.f32.mrb[12].mxu1 }
 0x922   :  { %v606_v22 = vadd.f32 %v1260_v19, %v600_v21  ;;  %v1396_v23 = vpop.f32.mrb[13].mxu1 }
 0x923   :  { %v603_v24 = vpop.f32.mrb[14].mxu1 }
 0x924   :  { %1521 = vtanh.f32 %v606_v22  ;;  %v1397_v25 = vpop.f32.mrb[15].mxu1  ;;  %v1262_v29 = vmul.f32 -1.442695, %v606_v22 }
 0x925   :  { %1523 = vpow2.f32 %v1259_v28 }
 0x926   :  { %1525 = vpow2.f32 %v1262_v29 }
 0x92a   :  { %v1520_v26 = vpop.eup %1519 }
 0x92b   :  { %542 = vrot.lane.b32.xlu0 %v1520_v26, %s1602_s25 }
 0x92e   :  { %v1522_v27 = vpop.eup %1521 }
 0x92f   :  { %616 = vrot.lane.b32.xlu1 %v1522_v27, %s1602_s25  ;;  %v1524_v30 = vpop.eup %1523 }
 0x930   :  { %v536_v31 = vadd.f32 1.0, %v1524_v30  ;;  %v1526_v32 = vpop.eup %1525 }
 0x931   :  { %v610_v33 = vadd.f32 1.0, %v1526_v32 }
 0x932   :  { %1527 = vrcp.f32 %v536_v31 }
 0x933   :  { %1529 = vrcp.f32 %v610_v33 }
 0x93c   :  { %v1528_v34 = vpop.eup %1527 }
 0x93d   :  { %v1530_v37 = vpop.eup %1529  ;;  %v540_v40 = vmul.f32 %v1528_v34, %v1756_v59 }
 0x93e   :  { %v614_v43 = vmul.f32 %v1530_v37, %v1760_v62 }
 0x99d   :  { %v543_v35 = vpop.permute.xlu0 %542 }
 0x99e   :  { %v545_v36 = vmul.f32 %v1528_v34, %v543_v35 }
 0x9a0   :  { %547 = vrot.lane.b32.xlu0 %v545_v36, %s1603_s26 }
 0x9a1   :  { %v617_v38 = vpop.permute.xlu1 %616 }
 0x9a2   :  { %v619_v39 = vmul.f32 %v1530_v37, %v617_v38 }
 0x9a4   :  { %621 = vrot.lane.b32.xlu1 %v619_v39, %s1603_s26  ;;  %v1269_v39 = vld [vmem:[%s1927_s0 + $0xa] sm:$0x3] }
 0xa12   :  { %v548_v41 = vpop.permute.xlu0 %547 }
 0xa13   :  { %v1792_v42 = vadd.f32 %v548_v41, %v540_v40 }
 0xa15   :  { %1531 = vtanh.f32 %v1792_v42 }
 0xa16   :  { %v622_v44 = vpop.permute.xlu1 %621 }
 0xa17   :  { %v1796_v45 = vadd.f32 %v622_v44, %v614_v43  ;;  %v1272_v44 = vld [vmem:[%s1928_s1 + $0x4] sm:$0x3] }
 0xa19   :  { %1533 = vtanh.f32 %v1796_v45 }
 0xa1f   :  { %v1532_v46 = vpop.eup %1531 }
 0xa20   :  { %553 = vrot.lane.b32.xlu0 %v1532_v46, %s1602_s25 }
 0xa23   :  { %v1534_v47 = vpop.eup %1533 }
 0xa24   :  { %627 = vrot.lane.b32.xlu1 %v1534_v47, %s1602_s25 }
 0xa92   :  { %v554_v48 = vpop.permute.xlu0 %553 }
 0xa93   :  { %v556_v49 = vmul.f32 %v1528_v34, %v554_v48 }
 0xa95   :  { %v633_v50 = vpack.c.bf16 %v556_v49, %v556_v49 }
 0xa96   :  { %v628_v51 = vpop.permute.xlu1 %627 }
 0xa97   :  { %v630_v52 = vmul.f32 %v1530_v37, %v628_v51  ;;  %635 = vrot.lane.b32.xlu0 %v633_v50, %s1603_s26 }
 0xa99   :  { %v707_v53 = vpack.c.bf16 %v630_v52, %v630_v52 }
 0xa9b   :  { %709 = vrot.lane.b32.xlu1 %v707_v53, %s1603_s26 }
 0xb09   :  { %v636_v54 = vpop.permute.xlu0 %635 }
 0xb0a   :  { %1403 = vmatmul.mubr.msk.bf16.vlgmr.msra.gmra.mrb[16].mxu0 %vm39_vm1, %v636_v54 }
 0xb0b   :  { %1415 = vmatpush3.bf16.msra.mxu0 %v1633_v1  ;;  %1418 = vmatprep.mubr.msk.bf16.mxu0 %vm1600_vm0, %v1599_v0 }
 0xb0c   :  { %1416 = vmatprep.subr.bf16.mxu0 %v1599_v0 }
 0xb0d   :  { %v710_v55 = vpop.permute.xlu1 %709 }
 0xb0e   :  { %1411 = vmatmul.mubr.msk.bf16.vlgmr.msra.gmra.mrb[16].mxu1 %vm39_vm1, %v710_v55 }
 0xb0f   :  { %1423 = vmatpush3.bf16.msra.mxu1 %v1639_v2  ;;  %1417 = vmatpush3.bf16.msra.mxu0 %v1649_v3 }
 0xb10   :  { %1424 = vmatprep.subr.bf16.mxu1 %v1599_v0  ;;  %1426 = vmatprep.mubr.msk.bf16.mxu1 %vm1600_vm0, %v1599_v0 }
 0xb11   :  { %1430 = vmatprep.subr.bf16.mxu0 %v1599_v0 }
 0xb13   :  { %1425 = vmatpush3.bf16.msra.mxu1 %v1656_v4 }
 0xb14   :  { %1438 = vmatprep.subr.bf16.mxu1 %v1599_v0 }
 0xbdd   :  { %v674_v57 = vpop.f32.mrb[16].mxu0 }
 0xbde   :  { %v680_v58 = vadd.f32 %v1263_v56, %v674_v57  ;;  %v1404_v59 = vpop.f32.mrb[17].mxu0 }
 0xbdf   :  { %v677_v60 = vpop.f32.mrb[18].mxu0 }
 0xbe0   :  { %1535 = vtanh.f32 %v680_v58  ;;  %v1405_v62 = vpop.f32.mrb[19].mxu0  ;;  %v1265_v11 = vmul.f32 -1.442695, %v680_v58 }
 0xbe1   :  { %v748_v63 = vpop.f32.mrb[16].mxu1 }
 0xbe2   :  { %v754_v5 = vadd.f32 %v1266_v61, %v748_v63  ;;  %v1412_v6 = vpop.f32.mrb[17].mxu1 }
 0xbe3   :  { %v751_v7 = vpop.f32.mrb[18].mxu1 }
 0xbe4   :  { %1537 = vtanh.f32 %v754_v5  ;;  %v1413_v8 = vpop.f32.mrb[19].mxu1  ;;  %v1268_v12 = vmul.f32 -1.442695, %v754_v5 }
 0xbe5   :  { %1539 = vpow2.f32 %v1265_v11 }
 0xbe6   :  { %1541 = vpow2.f32 %v1268_v12 }
 0xbea   :  { %v1536_v9 = vpop.eup %1535 }
 0xbeb   :  { %690 = vrot.lane.b32.xlu0 %v1536_v9, %s1602_s25 }
 0xbee   :  { %v1538_v10 = vpop.eup %1537 }
 0xbef   :  { %764 = vrot.lane.b32.xlu1 %v1538_v10, %s1602_s25  ;;  %v1540_v13 = vpop.eup %1539 }
 0xbf0   :  { %v684_v14 = vadd.f32 1.0, %v1540_v13  ;;  %v1542_v15 = vpop.eup %1541 }
 0xbf1   :  { %v758_v16 = vadd.f32 1.0, %v1542_v15 }
 0xbf2   :  { %1543 = vrcp.f32 %v684_v14 }
 0xbf3   :  { %1545 = vrcp.f32 %v758_v16 }
 0xbfc   :  { %v1544_v17 = vpop.eup %1543 }
 0xbfd   :  { %v1546_v20 = vpop.eup %1545  ;;  %v688_v23 = vmul.f32 %v1544_v17, %v1792_v42 }
 0xbfe   :  { %v762_v26 = vmul.f32 %v1546_v20, %v1796_v45 }
 0xc5d   :  { %v691_v18 = vpop.permute.xlu0 %690 }
 0xc5e   :  { %v693_v19 = vmul.f32 %v1544_v17, %v691_v18 }
 0xc60   :  { %695 = vrot.lane.b32.xlu0 %v693_v19, %s1603_s26 }
 0xc61   :  { %v765_v21 = vpop.permute.xlu1 %764 }
 0xc62   :  { %v767_v22 = vmul.f32 %v1546_v20, %v765_v21 }
 0xc64   :  { %769 = vrot.lane.b32.xlu1 %v767_v22, %s1603_s26 }
 0xcd2   :  { %v696_v24 = vpop.permute.xlu0 %695 }
 0xcd3   :  { %v1828_v25 = vadd.f32 %v696_v24, %v688_v23 }
 0xcd5   :  { %1547 = vtanh.f32 %v1828_v25 }
 0xcd6   :  { %v770_v27 = vpop.permute.xlu1 %769 }
 0xcd7   :  { %v1832_v28 = vadd.f32 %v770_v27, %v762_v26 }
 0xcd9   :  { %1549 = vtanh.f32 %v1832_v28 }
 0xcdf   :  { %v1548_v29 = vpop.eup %1547 }
 0xce0   :  { %701 = vrot.lane.b32.xlu0 %v1548_v29, %s1602_s25 }
 0xce3   :  { %v1550_v30 = vpop.eup %1549 }
 0xce4   :  { %775 = vrot.lane.b32.xlu1 %v1550_v30, %s1602_s25 }
 0xd52   :  { %v702_v31 = vpop.permute.xlu0 %701 }
 0xd53   :  { %v704_v32 = vmul.f32 %v1544_v17, %v702_v31 }
 0xd55   :  { %v781_v33 = vpack.c.bf16 %v704_v32, %v704_v32 }
 0xd56   :  { %v776_v34 = vpop.permute.xlu1 %775 }
 0xd57   :  { %v778_v35 = vmul.f32 %v1546_v20, %v776_v34  ;;  %783 = vrot.lane.b32.xlu0 %v781_v33, %s1603_s26 }
 0xd59   :  { %v855_v36 = vpack.c.bf16 %v778_v35, %v778_v35 }
 0xd5b   :  { %857 = vrot.lane.b32.xlu1 %v855_v36, %s1603_s26 }
 0xdc9   :  { %v784_v37 = vpop.permute.xlu0 %783 }
 0xdca   :  { %1419 = vmatmul.mubr.msk.bf16.vlgmr.msra.gmra.mrb[20].mxu0 %vm39_vm1, %v784_v37 }
 0xdcb   :  { %1431 = vmatpush3.bf16.msra.mxu0 %v1633_v1  ;;  %1434 = vmatprep.mubr.msk.bf16.mxu0 %vm1600_vm0, %v1599_v0 }
 0xdcc   :  { %1432 = vmatprep.subr.bf16.mxu0 %v1599_v0 }
 0xdcd   :  { %v858_v38 = vpop.permute.xlu1 %857 }
 0xdce   :  { %1427 = vmatmul.mubr.msk.bf16.vlgmr.msra.gmra.mrb[20].mxu1 %vm39_vm1, %v858_v38 }
 0xdcf   :  { %1439 = vmatpush3.bf16.msra.mxu1 %v1639_v2  ;;  %1433 = vmatpush3.bf16.msra.mxu0 %v1649_v3 }
 0xdd0   :  { %1440 = vmatprep.subr.bf16.mxu1 %v1599_v0  ;;  %1442 = vmatprep.mubr.msk.bf16.mxu1 %vm1600_vm0, %v1599_v0 }
 0xdd1   :  { %1446 = vmatprep.subr.bf16.mxu0 %v1599_v0 }
 0xdd3   :  { %1441 = vmatpush3.bf16.msra.mxu1 %v1656_v4 }
 0xdd4   :  { %1454 = vmatprep.subr.bf16.mxu1 %v1599_v0 }
 0xe9d   :  { %v822_v40 = vpop.f32.mrb[20].mxu0 }
 0xe9e   :  { %v828_v41 = vadd.f32 %v1269_v39, %v822_v40  ;;  %v1420_v42 = vpop.f32.mrb[21].mxu0 }
 0xe9f   :  { %v825_v43 = vpop.f32.mrb[22].mxu0 }
 0xea0   :  { %1551 = vtanh.f32 %v828_v41  ;;  %v1421_v45 = vpop.f32.mrb[23].mxu0  ;;  %v1271_v53 = vmul.f32 -1.442695, %v828_v41 }
 0xea1   :  { %v896_v46 = vpop.f32.mrb[20].mxu1 }
 0xea2   :  { %v902_v47 = vadd.f32 %v1272_v44, %v896_v46  ;;  %v1428_v48 = vpop.f32.mrb[21].mxu1 }
 0xea3   :  { %v899_v49 = vpop.f32.mrb[22].mxu1 }
 0xea4   :  { %1553 = vtanh.f32 %v902_v47  ;;  %v1429_v50 = vpop.f32.mrb[23].mxu1  ;;  %v1274_v54 = vmul.f32 -1.442695, %v902_v47 }
 0xea5   :  { %1555 = vpow2.f32 %v1271_v53 }
 0xea6   :  { %1557 = vpow2.f32 %v1274_v54 }
 0xeaa   :  { %v1552_v51 = vpop.eup %1551 }
 0xeab   :  { %838 = vrot.lane.b32.xlu0 %v1552_v51, %s1602_s25 }
 0xeae   :  { %v1554_v52 = vpop.eup %1553 }
 0xeaf   :  { %912 = vrot.lane.b32.xlu1 %v1554_v52, %s1602_s25  ;;  %v1556_v55 = vpop.eup %1555 }
 0xeb0   :  { %v832_v56 = vadd.f32 1.0, %v1556_v55  ;;  %v1558_v57 = vpop.eup %1557 }
 0xeb1   :  { %v906_v58 = vadd.f32 1.0, %v1558_v57 }
 0xeb2   :  { %1559 = vrcp.f32 %v832_v56 }
 0xeb3   :  { %1561 = vrcp.f32 %v906_v58 }
 0xebc   :  { %v1560_v59 = vpop.eup %1559 }
 0xebd   :  { %v1562_v62 = vpop.eup %1561  ;;  %v836_v6 = vmul.f32 %v1560_v59, %v1828_v25 }
 0xebe   :  { %v910_v9 = vmul.f32 %v1562_v62, %v1832_v28 }
 0xf1d   :  { %v839_v60 = vpop.permute.xlu0 %838 }
 0xf1e   :  { %v841_v61 = vmul.f32 %v1560_v59, %v839_v60 }
 0xf20   :  { %843 = vrot.lane.b32.xlu0 %v841_v61, %s1603_s26 }
 0xf21   :  { %v913_v63 = vpop.permute.xlu1 %912 }
 0xf22   :  { %v915_v5 = vmul.f32 %v1562_v62, %v913_v63 }
 0xf24   :  { %917 = vrot.lane.b32.xlu1 %v915_v5, %s1603_s26  ;;  %v1149_v5 = vld [vmem:[%s1928_s1] sm:$0x3] }
 0xf92   :  { %v844_v7 = vpop.permute.xlu0 %843 }
 0xf93   :  { %v1864_v8 = vadd.f32 %v844_v7, %v836_v6 }
 0xf95   :  { %1563 = vtanh.f32 %v1864_v8 }
 0xf96   :  { %v918_v10 = vpop.permute.xlu1 %917 }
 0xf97   :  { %v1868_v11 = vadd.f32 %v918_v10, %v910_v9 }
 0xf99   :  { %1565 = vtanh.f32 %v1868_v11 }
 0xf9f   :  { %v1564_v12 = vpop.eup %1563 }
 0xfa0   :  { %849 = vrot.lane.b32.xlu0 %v1564_v12, %s1602_s25 }
 0xfa3   :  { %v1566_v13 = vpop.eup %1565 }
 0xfa4   :  { %923 = vrot.lane.b32.xlu1 %v1566_v13, %s1602_s25 }
0x1012   :  { %v850_v14 = vpop.permute.xlu0 %849 }
0x1013   :  { %v852_v15 = vmul.f32 %v1560_v59, %v850_v14  ;;  %v1281_v59 = vld [vmem:[%s1927_s0 + $0xe] sm:$0x3] }
0x1015   :  { %v929_v16 = vpack.c.bf16 %v852_v15, %v852_v15 }
0x1016   :  { %v924_v17 = vpop.permute.xlu1 %923 }
0x1017   :  { %v926_v18 = vmul.f32 %v1562_v62, %v924_v17  ;;  %931 = vrot.lane.b32.xlu0 %v929_v16, %s1603_s26 }
0x1019   :  { %v1003_v19 = vpack.c.bf16 %v926_v18, %v926_v18 }
0x101b   :  { %1005 = vrot.lane.b32.xlu1 %v1003_v19, %s1603_s26 }
0x1089   :  { %v932_v20 = vpop.permute.xlu0 %931 }
0x108a   :  { %1435 = vmatmul.mubr.msk.bf16.vlgmr.msra.gmra.mrb[24].mxu0 %vm39_vm1, %v932_v20 }
0x108b   :  { %1447 = vmatpush3.bf16.msra.mxu0 %v1633_v1  ;;  %1450 = vmatprep.mubr.msk.bf16.mxu0 %vm1600_vm0, %v1599_v0  ;;  %v1275_v1 = vld [vmem:[%s1927_s0 + $0xc] sm:$0x3] }
0x108c   :  { %1448 = vmatprep.subr.bf16.mxu0 %v1599_v0 }
0x108d   :  { %v1006_v21 = vpop.permute.xlu1 %1005 }
0x108e   :  { %1443 = vmatmul.mubr.msk.bf16.vlgmr.msra.gmra.mrb[24].mxu1 %vm39_vm1, %v1006_v21 }
0x108f   :  { %1455 = vmatpush3.bf16.msra.mxu1 %v1639_v2  ;;  %1449 = vmatpush3.bf16.msra.mxu0 %v1649_v3  ;;  %v1278_v2 = vld [vmem:[%s1928_s1 + $0x2] sm:$0x3] }
0x1090   :  { %1456 = vmatprep.subr.bf16.mxu1 %v1599_v0  ;;  %1458 = vmatprep.mubr.msk.bf16.mxu1 %vm1600_vm0, %v1599_v0 }
0x1093   :  { %1457 = vmatpush3.bf16.msra.mxu1 %v1656_v4 }
0x115d   :  { %v970_v22 = vpop.f32.mrb[24].mxu0 }
0x115e   :  { %v976_v23 = vadd.f32 %v1275_v1, %v970_v22  ;;  %v1436_v24 = vpop.f32.mrb[25].mxu0 }
0x115f   :  { %v973_v25 = vpop.f32.mrb[26].mxu0 }
0x1160   :  { %1567 = vtanh.f32 %v976_v23  ;;  %v1437_v3 = vpop.f32.mrb[27].mxu0  ;;  %v1277_v31 = vmul.f32 -1.442695, %v976_v23 }
0x1161   :  { %v1044_v26 = vpop.f32.mrb[24].mxu1 }
0x1162   :  { %v1050_v27 = vadd.f32 %v1278_v2, %v1044_v26  ;;  %v1444_v28 = vpop.f32.mrb[25].mxu1 }
0x1163   :  { %v1047_v0 = vpop.f32.mrb[26].mxu1 }
0x1164   :  { %1569 = vtanh.f32 %v1050_v27  ;;  %v1445_v4 = vpop.f32.mrb[27].mxu1  ;;  %v1280_v32 = vmul.f32 -1.442695, %v1050_v27 }
0x1165   :  { %1571 = vpow2.f32 %v1277_v31 }
0x1166   :  { %1573 = vpow2.f32 %v1280_v32 }
0x116a   :  { %v1568_v29 = vpop.eup %1567 }
0x116b   :  { %986 = vrot.lane.b32.xlu0 %v1568_v29, %s1602_s25 }
0x116e   :  { %v1570_v30 = vpop.eup %1569 }
0x116f   :  { %1060 = vrot.lane.b32.xlu1 %v1570_v30, %s1602_s25  ;;  %v1572_v33 = vpop.eup %1571 }
0x1170   :  { %v980_v34 = vadd.f32 1.0, %v1572_v33  ;;  %v1574_v35 = vpop.eup %1573 }
0x1171   :  { %v1054_v36 = vadd.f32 1.0, %v1574_v35 }
0x1172   :  { %1575 = vrcp.f32 %v980_v34 }
0x1173   :  { %1577 = vrcp.f32 %v1054_v36 }
0x117c   :  { %v1576_v37 = vpop.eup %1575 }
0x117d   :  { %v1578_v40 = vpop.eup %1577  ;;  %v984_v43 = vmul.f32 %v1576_v37, %v1864_v8 }
0x117e   :  { %v1058_v46 = vmul.f32 %v1578_v40, %v1868_v11 }
0x11dd   :  { %v987_v38 = vpop.permute.xlu0 %986 }
0x11de   :  { %v989_v39 = vmul.f32 %v1576_v37, %v987_v38 }
0x11e0   :  { %991 = vrot.lane.b32.xlu0 %v989_v39, %s1603_s26 }
0x11e1   :  { %v1061_v41 = vpop.permute.xlu1 %1060 }
0x11e2   :  { %v1063_v42 = vmul.f32 %v1578_v40, %v1061_v41 }
0x11e4   :  { %1065 = vrot.lane.b32.xlu1 %v1063_v42, %s1603_s26 }
0x1252   :  { %v992_v44 = vpop.permute.xlu0 %991 }
0x1253   :  { %v994_v45 = vadd.f32 %v992_v44, %v984_v43 }
0x1255   :  { %1579 = vtanh.f32 %v994_v45 }
0x1256   :  { %v1066_v47 = vpop.permute.xlu1 %1065 }
0x1257   :  { %v1068_v48 = vadd.f32 %v1066_v47, %v1058_v46 }
0x1259   :  { %1581 = vtanh.f32 %v1068_v48 }
0x125f   :  { %v1580_v49 = vpop.eup %1579 }
0x1260   :  { %997 = vrot.lane.b32.xlu0 %v1580_v49, %s1602_s25 }
0x1263   :  { %v1582_v50 = vpop.eup %1581 }
0x1264   :  { %1071 = vrot.lane.b32.xlu1 %v1582_v50, %s1602_s25 }
0x12d2   :  { %v998_v51 = vpop.permute.xlu0 %997 }
0x12d3   :  { %v1000_v52 = vmul.f32 %v1576_v37, %v998_v51 }
0x12d5   :  { %v1077_v53 = vpack.c.bf16 %v1000_v52, %v1000_v52 }
0x12d6   :  { %v1072_v54 = vpop.permute.xlu1 %1071 }
0x12d7   :  { %v1074_v55 = vmul.f32 %v1578_v40, %v1072_v54  ;;  %1079 = vrot.lane.b32.xlu0 %v1077_v53, %s1603_s26 }
0x12d9   :  { %v1150_v56 = vpack.c.bf16 %v1074_v55, %v1074_v55 }
0x12db   :  { %1152 = vrot.lane.b32.xlu1 %v1150_v56, %s1603_s26 }
0x1349   :  { %v1080_v57 = vpop.permute.xlu0 %1079 }
0x134a   :  { %1451 = vmatmul.mubr.msk.bf16.vlgmr.msra.gmra.mrb[28].mxu0 %vm39_vm1, %v1080_v57 }
0x134d   :  { %v1153_v58 = vpop.permute.xlu1 %1152 }
0x134e   :  { %1459 = vmatmul.mubr.msk.bf16.vlgmr.msra.gmra.mrb[28].mxu1 %vm39_vm1, %v1153_v58 }
0x141d   :  { %v1118_v60 = vpop.f32.mrb[28].mxu0 }
0x141e   :  { %v1124_v61 = vadd.f32 %v1281_v59, %v1118_v60  ;;  %v1452_v62 = vpop.f32.mrb[29].mxu0 }
0x141f   :  { %v1121_v63 = vpop.f32.mrb[30].mxu0 }
0x1420   :  { %1583 = vtanh.f32 %v1124_v61  ;;  %v1453_v6 = vpop.f32.mrb[31].mxu0  ;;  %v1283_v14 = vmul.f32 -1.442695, %v1124_v61 }
0x1421   :  { %v1191_v7 = vpop.f32.mrb[28].mxu1 }
0x1422   :  { %v1197_v8 = vadd.f32 %v1191_v7, %v1149_v5  ;;  %v1460_v9 = vpop.f32.mrb[29].mxu1 }
0x1423   :  { %v1194_v10 = vpop.f32.mrb[30].mxu1 }
0x1424   :  { %1585 = vtanh.f32 %v1197_v8  ;;  %v1461_v11 = vpop.f32.mrb[31].mxu1  ;;  %v1285_v15 = vmul.f32 -1.442695, %v1197_v8 }
0x1425   :  { %1587 = vpow2.f32 %v1283_v14 }
0x1426   :  { %1589 = vpow2.f32 %v1285_v15 }
0x142a   :  { %v1584_v12 = vpop.eup %1583 }
0x142b   :  { %1134 = vrot.lane.b32.xlu0 %v1584_v12, %s1602_s25 }
0x142e   :  { %v1586_v13 = vpop.eup %1585 }
0x142f   :  { %1207 = vrot.lane.b32.xlu1 %v1586_v13, %s1602_s25  ;;  %v1588_v16 = vpop.eup %1587 }
0x1430   :  { %v1128_v17 = vadd.f32 1.0, %v1588_v16  ;;  %v1590_v18 = vpop.eup %1589 }
0x1431   :  { %v1201_v19 = vadd.f32 1.0, %v1590_v18 }
0x1432   :  { %1591 = vrcp.f32 %v1128_v17 }
0x1433   :  { %1593 = vrcp.f32 %v1201_v19 }
0x143c   :  { %v1592_v20 = vpop.eup %1591 }
0x143d   :  { %v1594_v22 = vpop.eup %1593  ;;  %v1132_v25 = vmul.f32 %v1592_v20, %v994_v45 }
0x143e   :  { %v1205_v26 = vmul.f32 %v1594_v22, %v1068_v48 }
0x149d   :  { %v1135_v21 = vpop.permute.xlu0 %1134 }
0x149e   :  { %v1137_v1 = vmul.f32 %v1592_v20, %v1135_v21 }
0x14a0   :  { %1139 = vrot.lane.b32.xlu0 %v1137_v1, %s1603_s26 }
0x14a1   :  { %v1208_v23 = vpop.permute.xlu1 %1207 }
0x14a2   :  { %v1210_v24 = vmul.f32 %v1594_v22, %v1208_v23 }
0x14a4   :  { %1212 = vrot.lane.b32.xlu1 %v1210_v24, %s1603_s26 }
0x1512   :  { %v1140_v2 = vpop.permute.xlu0 %1139 }
0x1513   :  { %v1142_v3 = vadd.f32 %v1140_v2, %v1132_v25 }
0x1515   :  { %1595 = vtanh.f32 %v1142_v3 }
0x1516   :  { %v1213_v27 = vpop.permute.xlu1 %1212 }
0x1517   :  { %v1215_v28 = vadd.f32 %v1213_v27, %v1205_v26 }
0x1519   :  { %1597 = vtanh.f32 %v1215_v28 }
0x151f   :  { %v1596_v0 = vpop.eup %1595 }
0x1520   :  { %1145 = vrot.lane.b32.xlu0 %v1596_v0, %s1602_s25 }
0x1523   :  { %v1598_v4 = vpop.eup %1597 }
0x1524   :  { %1218 = vrot.lane.b32.xlu1 %v1598_v4, %s1602_s25 }
0x1592   :  { %v1146_v29 = vpop.permute.xlu0 %1145 }
0x1593   :  { %v1148_v30 = vmul.f32 %v1592_v20, %v1146_v29 }
0x1595   :  { %1223 = vrot.lane.b32.xlu0 %v1148_v30, %s1603_s26 }
0x1596   :  { %v1219_v31 = vpop.permute.xlu1 %1218 }
0x1597   :  { %v1221_v32 = vmul.f32 %v1594_v22, %v1219_v31 }
0x1599   :  { %1229 = vrot.lane.b32.xlu1 %v1221_v32, %s1602_s25 }
0x1607   :  { %v1224_v33 = vpop.permute.xlu0 %1223 }
0x1608   :  { %1227 = vst.msk [vmem:[%s1929_s4] sm:$0x3] %vm1226_vm2, %v1224_v33 }
0x160b   :  { %v1230_v34 = vpop.permute.xlu1 %1229 }
0x160c   :  { %1233 = vst.msk [vmem:[%s1929_s4] sm:$0x3] %vm1232_vm3, %v1230_v34 }

// kernel: lstm_model_forward.2
= control target key start
LH: loop header
LB: loop body
LE: loop exit
PB: predicated region body
PF: predicated region fallthrough
CT: control target
= control target key end

     0   :  { %v1734_v1 = vmov 0.0   ;;  %vm1735_vm0 = vmmov 0   ;;  %s2222_s0 = inlined_call_operand.vmem [shape: f32[8,2,128], index: 0, kind: input, shape index: {}]   ;;  %s2223_s1 = inlined_call_operand.vmem [shape: f32[8,2,128], index: 1, kind: input, shape index: {}]   ;;  %s2224_s2 = inlined_call_operand.vmem [shape: bf16[32,128], index: 2, kind: input, shape index: {}]   ;;  %s2225_s3 = inlined_call_operand.vmem [shape: bf16[32,128], index: 3, kind: input, shape index: {}]   ;;  %s2226_s4 = inlined_call_operand.vmem [shape: f32[8,2,64], index: 4, kind: output, shape index: {0}]   ;;  %s2227_s5 = inlined_call_operand.hbm [shape: f32[2,64], index: 5, kind: output, shape index: {1}]  }
   0x1   :  { %v1773_v0 = vld [vmem:[%s2224_s2] sm:$0xff]   ;;  %1444 = vmatprep.subr.bf16.mxu0 %v1734_v1  ;;  %1452 = vmatprep.subr.bf16.mxu1 %v1734_v1  ;;  %v1786_v3 = vld [vmem:[%s2224_s2 + $0x8] sm:$0xff]  }
   0x2   :  { %v1780_v2 = vld [vmem:[%s2225_s3] sm:$0xff]   ;;  %1445 = vmatpush3.bf16.msra.mxu0 %v1773_v0  ;;  %1448 = vmatprep.mubr.msk.bf16.mxu0 %vm1735_vm0, %v1734_v1  ;;  %v1795_v4 = vld [vmem:[%s2225_s3 + $0x8] sm:$0xff]  }
   0x3   :  { %1453 = vmatpush3.bf16.msra.mxu1 %v1780_v2  ;;  %1446 = vmatprep.subr.bf16.mxu0 %v1734_v1 }
   0x4   :  { %1454 = vmatprep.subr.bf16.mxu1 %v1734_v1  ;;  %1456 = vmatprep.mubr.msk.bf16.mxu1 %vm1735_vm0, %v1734_v1 }
   0x5   :  { %11 = vsyncpa [#allocation3], 0  ;;  %v1736_v5 = vmov 0   ;;  %v29_v6 = vld [vmem:[%s2222_s0] sm:$0x3]  ;;  %s1737_s28 = smov 64  }
   0x6   :  { %1447 = vmatpush3.bf16.msra.mxu0 %v1786_v3  ;;  %v1337_v7 = vld [vmem:[%s2223_s1 + $0xe] sm:$0x3]  ;;  %s1738_s29 = smov 32   ;;  %vm42_vm1 = vcmask 261120   ;;  %v1342_v48 = vld [vmem:[%s2222_s0 + $0x2] sm:$0x3] }
   0x7   :  { %1455 = vmatpush3.bf16.msra.mxu1 %v1795_v4  ;;  %1460 = vmatprep.subr.bf16.mxu0 %v1734_v1  ;;  %v1345_v53 = vld [vmem:[%s2223_s1 + $0xc] sm:$0x3]  ;;  %vm201_vm2 = vcmask 517376   ;;  %vm194_vm3 = vcmask 254976   ;;  %s1739_s26 = smov [#allocation2]  }
   0x8   :  { %1468 = vmatprep.subr.bf16.mxu1 %v1734_v1  ;;  %s1324_s27 = sshll.u32 %s1739_s26, 4  ;;  %s1325_s27 = int_to_ptr.vmem [resolvable:$true] %s1324_s27 }
   0x9   :  { %1449 = vmatmul.mubr.bf16.vlgmr.msra.gmra.mrb[0].mxu0 %v1736_v5  ;;  %s1710_s9 = scalar_lea.vmem %s1325_s27, 32  ;;  %p1715_p1 = scmp.lt.s32.totalorder %s1325_s27, %s1325_s27 }
   0xa   :  { %1457 = vmatmul.mubr.bf16.vlgmr.msra.gmra.mrb[0].mxu1 %v1736_v5  ;;  %1461 = vmatpush3.bf16.msra.mxu0 %v1773_v0  ;;  %p1711_p0 = scmp.ne.s32.totalorder %s1325_s27, %s1710_s9  ;;  %p1716_p2 = scmp.lt.s32.totalorder %s1710_s9, %s1710_s9 }
   0xb   :  { %1462 = vmatprep.subr.bf16.mxu0 %v1734_v1  ;;  %1469 = vmatpush3.bf16.msra.mxu1 %v1780_v2 }
   0xc   :  { %1464 = vmatprep.mubr.msk.bf16.mxu0 %vm1735_vm0, %v1734_v1  ;;  %1470 = vmatprep.subr.bf16.mxu1 %v1734_v1  ;;  %p1717_p3 = por %p1716_p2, %p1715_p1 }
   0xd   :  { %1472 = vmatprep.mubr.msk.bf16.mxu1 %vm1735_vm0, %v1734_v1 }
   0xe   :  { %1463 = vmatpush3.bf16.msra.mxu0 %v1786_v3  ;;  %p1718_p4 = pnand %p1717_p3, %p1711_p0 }
   0xf   :  { %1471 = vmatpush3.bf16.msra.mxu1 %v1795_v4  ;;  %1476 = vmatprep.subr.bf16.mxu0 %v1734_v1 }
  0x10   :  { %1484 = vmatprep.subr.bf16.mxu1 %v1734_v1 }
  0xdc   :  { %v80_v8 = vpop.f32.mrb[0].mxu0 }
  0xdd   :  { %v86_v9 = vadd.f32 %v80_v8, %v29_v6  ;;  %v1450_v10 = vpop.f32.mrb[1].mxu0  ;;  %v159_v11 = vpop.f32.mrb[0].mxu1 }
  0xde   :  { %v165_v12 = vadd.f32 %v1337_v7, %v159_v11  ;;  %v83_v13 = vpop.f32.mrb[2].mxu0  ;;  %v1458_v14 = vpop.f32.mrb[1].mxu1 }
  0xdf   :  { %1582 = vtanh.f32 %v86_v9  ;;  %v1451_v15 = vpop.f32.mrb[3].mxu0  ;;  %v162_v16 = vpop.f32.mrb[2].mxu1  ;;  %v1336_v20 = vmul.f32 -1.442695, %v86_v9 }
  0xe0   :  { %v1459_v17 = vpop.f32.mrb[3].mxu1  ;;  %1584 = vtanh.f32 %v165_v12  ;;  %v1340_v21 = vmul.f32 -1.442695, %v165_v12 }
  0xe1   :  { %1586 = vpow2.f32 %v1336_v20 }
  0xe2   :  { %1588 = vpow2.f32 %v1340_v21 }
  0xe9   :  { %v1583_v18 = vpop.eup %1582 }
  0xea   :  { %96 = vrot.lane.b32.xlu0 %v1583_v18, %s1737_s28  ;;  %v1585_v19 = vpop.eup %1584 }
  0xeb   :  { %v1587_v22 = vpop.eup %1586 }
  0xec   :  { %v90_v23 = vadd.f32 1.0, %v1587_v22  ;;  %v1589_v24 = vpop.eup %1588 }
  0xed   :  { %v169_v25 = vadd.f32 1.0, %v1589_v24 }
  0xee   :  { %175 = vrot.lane.b32.xlu0 %v1585_v19, %s1737_s28  ;;  %1590 = vrcp.f32 %v90_v23 }
  0xef   :  { %1592 = vrcp.f32 %v169_v25 }
  0xf8   :  { %v1591_v26 = vpop.eup %1590 }
  0xf9   :  { %v1593_v29 = vpop.eup %1592  ;;  %v94_v32 = vmul.f32 0.0, %v1591_v26 }
  0xfa   :  { %v173_v35 = vmul.f32 0.0, %v1593_v29 }
 0x15c   :  { %v97_v27 = vpop.permute.xlu0 %96 }
 0x15d   :  { %v99_v28 = vmul.f32 %v1591_v26, %v97_v27 }
 0x15f   :  { %101 = vrot.lane.b32.xlu1 %v99_v28, %s1738_s29 }
 0x160   :  { %v176_v30 = vpop.permute.xlu0 %175 }
 0x161   :  { %v178_v31 = vmul.f32 %v1593_v29, %v176_v30 }
 0x163   :  { %180 = vrot.lane.b32.xlu1 %v178_v31, %s1738_s29  ;;  %v1350_v31 = vld [vmem:[%s2222_s0 + $0x4] sm:$0x3] }
 0x1d1   :  { %v102_v33 = vpop.permute.xlu1 %101 }
 0x1d2   :  { %v1826_v34 = vadd.f32 %v102_v33, %v94_v32 }
 0x1d4   :  { %1594 = vtanh.f32 %v1826_v34 }
 0x1d5   :  { %v181_v36 = vpop.permute.xlu1 %180 }
 0x1d6   :  { %v1829_v37 = vadd.f32 %v181_v36, %v173_v35  ;;  %v1353_v36 = vld [vmem:[%s2223_s1 + $0xa] sm:$0x3] }
 0x1d8   :  { %1596 = vtanh.f32 %v1829_v37 }
 0x1de   :  { %v1595_v38 = vpop.eup %1594 }
 0x1df   :  { %107 = vrot.lane.b32.xlu0 %v1595_v38, %s1737_s28 }
 0x1e2   :  { %v1597_v39 = vpop.eup %1596 }
 0x1e3   :  { %186 = vrot.lane.b32.xlu1 %v1597_v39, %s1737_s28 }
 0x251   :  { %v108_v40 = vpop.permute.xlu0 %107 }
 0x252   :  { %v1834_v41 = vmul.f32 %v1591_v26, %v108_v40 }
 0x254   :  { %v205_v42 = vpack.c.bf16 %v1834_v41, %v1834_v41 }
 0x255   :  { %v187_v43 = vpop.permute.xlu1 %186 }
 0x256   :  { %v1838_v44 = vmul.f32 %v1593_v29, %v187_v43  ;;  %207 = vrot.lane.b32.xlu0 %v205_v42, %s1738_s29 }
 0x258   :  { %v279_v45 = vpack.c.bf16 %v1838_v44, %v1838_v44 }
 0x25a   :  { %281 = vrot.lane.b32.xlu1 %v279_v45, %s1738_s29 }
 0x2c8   :  { %v208_v46 = vpop.permute.xlu0 %207 }
 0x2c9   :  { %1465 = vmatmul.mubr.msk.bf16.vlgmr.msra.gmra.mrb[4].mxu0 %vm42_vm1, %v208_v46 }
 0x2ca   :  { %1477 = vmatpush3.bf16.msra.mxu0 %v1773_v0  ;;  %1480 = vmatprep.mubr.msk.bf16.mxu0 %vm1735_vm0, %v1734_v1 }
 0x2cb   :  { %1478 = vmatprep.subr.bf16.mxu0 %v1734_v1 }
 0x2cc   :  { %v282_v47 = vpop.permute.xlu1 %281 }
 0x2cd   :  { %1473 = vmatmul.mubr.msk.bf16.vlgmr.msra.gmra.mrb[4].mxu1 %vm42_vm1, %v282_v47 }
 0x2ce   :  { %1485 = vmatpush3.bf16.msra.mxu1 %v1780_v2  ;;  %1479 = vmatpush3.bf16.msra.mxu0 %v1786_v3 }
 0x2cf   :  { %1486 = vmatprep.subr.bf16.mxu1 %v1734_v1  ;;  %1488 = vmatprep.mubr.msk.bf16.mxu1 %vm1735_vm0, %v1734_v1 }
 0x2d0   :  { %1492 = vmatprep.subr.bf16.mxu0 %v1734_v1 }
 0x2d2   :  { %1487 = vmatpush3.bf16.msra.mxu1 %v1795_v4 }
 0x2d3   :  { %1500 = vmatprep.subr.bf16.mxu1 %v1734_v1 }
 0x39c   :  { %v246_v49 = vpop.f32.mrb[4].mxu0 }
 0x39d   :  { %v252_v50 = vadd.f32 %v1342_v48, %v246_v49  ;;  %v1466_v51 = vpop.f32.mrb[5].mxu0 }
 0x39e   :  { %v249_v52 = vpop.f32.mrb[6].mxu0 }
 0x39f   :  { %1598 = vtanh.f32 %v252_v50  ;;  %v1467_v54 = vpop.f32.mrb[7].mxu0  ;;  %v1344_v62 = vmul.f32 -1.442695, %v252_v50 }
 0x3a0   :  { %v320_v55 = vpop.f32.mrb[4].mxu1 }
 0x3a1   :  { %v326_v56 = vadd.f32 %v1345_v53, %v320_v55  ;;  %v1474_v57 = vpop.f32.mrb[5].mxu1 }
 0x3a2   :  { %v323_v58 = vpop.f32.mrb[6].mxu1 }
 0x3a3   :  { %1600 = vtanh.f32 %v326_v56  ;;  %v1475_v59 = vpop.f32.mrb[7].mxu1  ;;  %v1347_v63 = vmul.f32 -1.442695, %v326_v56 }
 0x3a4   :  { %1602 = vpow2.f32 %v1344_v62 }
 0x3a5   :  { %1604 = vpow2.f32 %v1347_v63 }
 0x3a9   :  { %v1599_v60 = vpop.eup %1598 }
 0x3aa   :  { %262 = vrot.lane.b32.xlu0 %v1599_v60, %s1737_s28 }
 0x3ad   :  { %v1601_v61 = vpop.eup %1600 }
 0x3ae   :  { %336 = vrot.lane.b32.xlu1 %v1601_v61, %s1737_s28  ;;  %v1603_v5 = vpop.eup %1602 }
 0x3af   :  { %v256_v6 = vadd.f32 1.0, %v1603_v5  ;;  %v1605_v7 = vpop.eup %1604 }
 0x3b0   :  { %v330_v8 = vadd.f32 1.0, %v1605_v7 }
 0x3b1   :  { %1606 = vrcp.f32 %v256_v6 }
 0x3b2   :  { %1608 = vrcp.f32 %v330_v8 }
 0x3bb   :  { %v1607_v9 = vpop.eup %1606 }
 0x3bc   :  { %v1609_v12 = vpop.eup %1608  ;;  %v260_v15 = vmul.f32 %v1607_v9, %v1826_v34 }
 0x3bd   :  { %v334_v18 = vmul.f32 %v1609_v12, %v1829_v37 }
 0x41c   :  { %v263_v10 = vpop.permute.xlu0 %262 }
 0x41d   :  { %v265_v11 = vmul.f32 %v1607_v9, %v263_v10 }
 0x41f   :  { %267 = vrot.lane.b32.xlu0 %v265_v11, %s1738_s29 }
 0x420   :  { %v337_v13 = vpop.permute.xlu1 %336 }
 0x421   :  { %v339_v14 = vmul.f32 %v1609_v12, %v337_v13 }
 0x423   :  { %341 = vrot.lane.b32.xlu1 %v339_v14, %s1738_s29 }
 0x491   :  { %v268_v16 = vpop.permute.xlu0 %267 }
 0x492   :  { %v1869_v17 = vadd.f32 %v268_v16, %v260_v15  ;;  %v1358_v16 = vld [vmem:[%s2222_s0 + $0x6] sm:$0x3] }
 0x494   :  { %1610 = vtanh.f32 %v1869_v17 }
 0x495   :  { %v342_v19 = vpop.permute.xlu1 %341 }
 0x496   :  { %v1873_v20 = vadd.f32 %v342_v19, %v334_v18 }
 0x498   :  { %1612 = vtanh.f32 %v1873_v20 }
 0x49e   :  { %v1611_v21 = vpop.eup %1610 }
 0x49f   :  { %273 = vrot.lane.b32.xlu0 %v1611_v21, %s1737_s28  ;;  %v1361_v21 = vld [vmem:[%s2223_s1 + $0x8] sm:$0x3] }
 0x4a2   :  { %v1613_v22 = vpop.eup %1612 }
 0x4a3   :  { %347 = vrot.lane.b32.xlu1 %v1613_v22, %s1737_s28 }
 0x511   :  { %v274_v23 = vpop.permute.xlu0 %273 }
 0x512   :  { %v1878_v24 = vmul.f32 %v1607_v9, %v274_v23 }
 0x514   :  { %v365_v25 = vpack.c.bf16 %v1878_v24, %v1878_v24 }
 0x515   :  { %v348_v26 = vpop.permute.xlu1 %347 }
 0x516   :  { %v1882_v27 = vmul.f32 %v1609_v12, %v348_v26  ;;  %367 = vrot.lane.b32.xlu0 %v365_v25, %s1738_s29 }
 0x518   :  { %v439_v28 = vpack.c.bf16 %v1882_v27, %v1882_v27 }
 0x51a   :  { %441 = vrot.lane.b32.xlu1 %v439_v28, %s1738_s29 }
 0x588   :  { %v368_v29 = vpop.permute.xlu0 %367 }
 0x589   :  { %1481 = vmatmul.mubr.msk.bf16.vlgmr.msra.gmra.mrb[8].mxu0 %vm42_vm1, %v368_v29 }
 0x58a   :  { %1493 = vmatpush3.bf16.msra.mxu0 %v1773_v0  ;;  %1496 = vmatprep.mubr.msk.bf16.mxu0 %vm1735_vm0, %v1734_v1 }
 0x58b   :  { %1494 = vmatprep.subr.bf16.mxu0 %v1734_v1 }
 0x58c   :  { %v442_v30 = vpop.permute.xlu1 %441 }
 0x58d   :  { %1489 = vmatmul.mubr.msk.bf16.vlgmr.msra.gmra.mrb[8].mxu1 %vm42_vm1, %v442_v30 }
 0x58e   :  { %1501 = vmatpush3.bf16.msra.mxu1 %v1780_v2  ;;  %1495 = vmatpush3.bf16.msra.mxu0 %v1786_v3 }
 0x58f   :  { %1502 = vmatprep.subr.bf16.mxu1 %v1734_v1  ;;  %1504 = vmatprep.mubr.msk.bf16.mxu1 %vm1735_vm0, %v1734_v1 }
 0x590   :  { %1508 = vmatprep.subr.bf16.mxu0 %v1734_v1 }
 0x592   :  { %1503 = vmatpush3.bf16.msra.mxu1 %v1795_v4 }
 0x593   :  { %1516 = vmatprep.subr.bf16.mxu1 %v1734_v1 }
 0x65c   :  { %v406_v32 = vpop.f32.mrb[8].mxu0 }
 0x65d   :  { %v412_v33 = vadd.f32 %v1350_v31, %v406_v32  ;;  %v1482_v34 = vpop.f32.mrb[9].mxu0 }
 0x65e   :  { %v409_v35 = vpop.f32.mrb[10].mxu0 }
 0x65f   :  { %1614 = vtanh.f32 %v412_v33  ;;  %v1483_v37 = vpop.f32.mrb[11].mxu0  ;;  %v1352_v47 = vmul.f32 -1.442695, %v412_v33 }
 0x660   :  { %v480_v38 = vpop.f32.mrb[8].mxu1 }
 0x661   :  { %v486_v39 = vadd.f32 %v1353_v36, %v480_v38  ;;  %v1490_v40 = vpop.f32.mrb[9].mxu1 }
 0x662   :  { %v483_v42 = vpop.f32.mrb[10].mxu1 }
 0x663   :  { %1616 = vtanh.f32 %v486_v39  ;;  %v1491_v43 = vpop.f32.mrb[11].mxu1  ;;  %v1355_v48 = vmul.f32 -1.442695, %v486_v39 }
 0x664   :  { %1618 = vpow2.f32 %v1352_v47 }
 0x665   :  { %1620 = vpow2.f32 %v1355_v48 }
 0x669   :  { %v1615_v45 = vpop.eup %1614 }
 0x66a   :  { %422 = vrot.lane.b32.xlu0 %v1615_v45, %s1737_s28 }
 0x66d   :  { %v1617_v46 = vpop.eup %1616 }
 0x66e   :  { %496 = vrot.lane.b32.xlu1 %v1617_v46, %s1737_s28  ;;  %v1619_v49 = vpop.eup %1618 }
 0x66f   :  { %v416_v50 = vadd.f32 1.0, %v1619_v49  ;;  %v1621_v51 = vpop.eup %1620 }
 0x670   :  { %v490_v52 = vadd.f32 1.0, %v1621_v51 }
 0x671   :  { %1622 = vrcp.f32 %v416_v50 }
 0x672   :  { %1624 = vrcp.f32 %v490_v52 }
 0x67b   :  { %v1623_v53 = vpop.eup %1622 }
 0x67c   :  { %v1625_v56 = vpop.eup %1624  ;;  %v420_v59 = vmul.f32 %v1623_v53, %v1869_v17 }
 0x67d   :  { %v494_v62 = vmul.f32 %v1625_v56, %v1873_v20 }
 0x6dc   :  { %v423_v54 = vpop.permute.xlu0 %422 }
 0x6dd   :  { %v425_v55 = vmul.f32 %v1623_v53, %v423_v54 }
 0x6df   :  { %427 = vrot.lane.b32.xlu0 %v425_v55, %s1738_s29 }
 0x6e0   :  { %v497_v57 = vpop.permute.xlu1 %496 }
 0x6e1   :  { %v499_v58 = vmul.f32 %v1625_v56, %v497_v57 }
 0x6e3   :  { %501 = vrot.lane.b32.xlu1 %v499_v58, %s1738_s29 }
 0x751   :  { %v428_v60 = vpop.permute.xlu0 %427 }
 0x752   :  { %v1913_v61 = vadd.f32 %v428_v60, %v420_v59 }
 0x754   :  { %1626 = vtanh.f32 %v1913_v61 }
 0x755   :  { %v502_v63 = vpop.permute.xlu1 %501 }
 0x756   :  { %v1917_v5 = vadd.f32 %v502_v63, %v494_v62  ;;  %v1366_v62 = vld [vmem:[%s2222_s0 + $0x8] sm:$0x3] }
 0x758   :  { %1628 = vtanh.f32 %v1917_v5 }
 0x75e   :  { %v1627_v6 = vpop.eup %1626 }
 0x75f   :  { %433 = vrot.lane.b32.xlu0 %v1627_v6, %s1737_s28 }
 0x762   :  { %v1629_v7 = vpop.eup %1628 }
 0x763   :  { %507 = vrot.lane.b32.xlu1 %v1629_v7, %s1737_s28 }
 0x7d1   :  { %v434_v8 = vpop.permute.xlu0 %433 }
 0x7d2   :  { %v1922_v9 = vmul.f32 %v1623_v53, %v434_v8  ;;  %v1369_v8 = vld [vmem:[%s2223_s1 + $0x6] sm:$0x3] }
 0x7d4   :  { %v525_v10 = vpack.c.bf16 %v1922_v9, %v1922_v9 }
 0x7d5   :  { %v508_v11 = vpop.permute.xlu1 %507 }
 0x7d6   :  { %v1926_v12 = vmul.f32 %v1625_v56, %v508_v11  ;;  %527 = vrot.lane.b32.xlu0 %v525_v10, %s1738_s29 }
 0x7d8   :  { %v599_v13 = vpack.c.bf16 %v1926_v12, %v1926_v12 }
 0x7da   :  { %601 = vrot.lane.b32.xlu1 %v599_v13, %s1738_s29 }
 0x848   :  { %v528_v14 = vpop.permute.xlu0 %527 }
 0x849   :  { %1497 = vmatmul.mubr.msk.bf16.vlgmr.msra.gmra.mrb[12].mxu0 %vm42_vm1, %v528_v14 }
 0x84a   :  { %1509 = vmatpush3.bf16.msra.mxu0 %v1773_v0  ;;  %1512 = vmatprep.mubr.msk.bf16.mxu0 %vm1735_vm0, %v1734_v1 }
 0x84b   :  { %1510 = vmatprep.subr.bf16.mxu0 %v1734_v1 }
 0x84c   :  { %v602_v15 = vpop.permute.xlu1 %601 }
 0x84d   :  { %1505 = vmatmul.mubr.msk.bf16.vlgmr.msra.gmra.mrb[12].mxu1 %vm42_vm1, %v602_v15 }
 0x84e   :  { %1517 = vmatpush3.bf16.msra.mxu1 %v1780_v2  ;;  %1511 = vmatpush3.bf16.msra.mxu0 %v1786_v3 }
 0x84f   :  { %1518 = vmatprep.subr.bf16.mxu1 %v1734_v1  ;;  %1520 = vmatprep.mubr.msk.bf16.mxu1 %vm1735_vm0, %v1734_v1 }
 0x850   :  { %1524 = vmatprep.subr.bf16.mxu0 %v1734_v1 }
 0x852   :  { %1519 = vmatpush3.bf16.msra.mxu1 %v1795_v4 }
 0x853   :  { %1532 = vmatprep.subr.bf16.mxu1 %v1734_v1 }
 0x91c   :  { %v566_v17 = vpop.f32.mrb[12].mxu0 }
 0x91d   :  { %v572_v18 = vadd.f32 %v1358_v16, %v566_v17  ;;  %v1498_v19 = vpop.f32.mrb[13].mxu0 }
 0x91e   :  { %v569_v20 = vpop.f32.mrb[14].mxu0 }
 0x91f   :  { %1630 = vtanh.f32 %v572_v18  ;;  %v1499_v22 = vpop.f32.mrb[15].mxu0  ;;  %v1360_v32 = vmul.f32 -1.442695, %v572_v18 }
 0x920   :  { %v640_v23 = vpop.f32.mrb[12].mxu1 }
 0x921   :  { %v646_v25 = vadd.f32 %v1361_v21, %v640_v23  ;;  %v1506_v26 = vpop.f32.mrb[13].mxu1 }
 0x922   :  { %v643_v28 = vpop.f32.mrb[14].mxu1 }
 0x923   :  { %1632 = vtanh.f32 %v646_v25  ;;  %v1507_v29 = vpop.f32.mrb[15].mxu1  ;;  %v1363_v33 = vmul.f32 -1.442695, %v646_v25 }
 0x924   :  { %1634 = vpow2.f32 %v1360_v32 }
 0x925   :  { %1636 = vpow2.f32 %v1363_v33 }
 0x929   :  { %v1631_v30 = vpop.eup %1630 }
 0x92a   :  { %582 = vrot.lane.b32.xlu0 %v1631_v30, %s1737_s28 }
 0x92d   :  { %v1633_v31 = vpop.eup %1632 }
 0x92e   :  { %656 = vrot.lane.b32.xlu1 %v1633_v31, %s1737_s28  ;;  %v1635_v34 = vpop.eup %1634 }
 0x92f   :  { %v576_v35 = vadd.f32 1.0, %v1635_v34  ;;  %v1637_v36 = vpop.eup %1636 }
 0x930   :  { %v650_v37 = vadd.f32 1.0, %v1637_v36 }
 0x931   :  { %1638 = vrcp.f32 %v576_v35 }
 0x932   :  { %1640 = vrcp.f32 %v650_v37 }
 0x93b   :  { %v1639_v38 = vpop.eup %1638 }
 0x93c   :  { %v1641_v42 = vpop.eup %1640  ;;  %v580_v46 = vmul.f32 %v1639_v38, %v1913_v61 }
 0x93d   :  { %v654_v49 = vmul.f32 %v1641_v42, %v1917_v5 }
 0x99c   :  { %v583_v39 = vpop.permute.xlu0 %582 }
 0x99d   :  { %v585_v40 = vmul.f32 %v1639_v38, %v583_v39 }
 0x99f   :  { %587 = vrot.lane.b32.xlu0 %v585_v40, %s1738_s29 }
 0x9a0   :  { %v657_v43 = vpop.permute.xlu1 %656 }
 0x9a1   :  { %v659_v45 = vmul.f32 %v1641_v42, %v657_v43 }
 0x9a3   :  { %661 = vrot.lane.b32.xlu1 %v659_v45, %s1738_s29 }
 0xa11   :  { %v588_v47 = vpop.permute.xlu0 %587 }
 0xa12   :  { %v1957_v48 = vadd.f32 %v588_v47, %v580_v46 }
 0xa14   :  { %1642 = vtanh.f32 %v1957_v48 }
 0xa15   :  { %v662_v50 = vpop.permute.xlu1 %661 }
 0xa16   :  { %v1961_v51 = vadd.f32 %v662_v50, %v654_v49 }
 0xa18   :  { %1644 = vtanh.f32 %v1961_v51 }
 0xa1e   :  { %v1643_v52 = vpop.eup %1642 }
 0xa1f   :  { %593 = vrot.lane.b32.xlu0 %v1643_v52, %s1737_s28 }
 0xa22   :  { %v1645_v53 = vpop.eup %1644 }
 0xa23   :  { %667 = vrot.lane.b32.xlu1 %v1645_v53, %s1737_s28 }
 0xa91   :  { %v594_v54 = vpop.permute.xlu0 %593 }
 0xa92   :  { %v1966_v55 = vmul.f32 %v1639_v38, %v594_v54 }
 0xa94   :  { %v685_v56 = vpack.c.bf16 %v1966_v55, %v1966_v55 }
 0xa95   :  { %v668_v57 = vpop.permute.xlu1 %667 }
 0xa96   :  { %v1970_v58 = vmul.f32 %v1641_v42, %v668_v57  ;;  %687 = vrot.lane.b32.xlu0 %v685_v56, %s1738_s29  ;;  %v1377_v57 = vld [vmem:[%s2223_s1 + $0x4] sm:$0x3] }
 0xa98   :  { %v759_v59 = vpack.c.bf16 %v1970_v58, %v1970_v58 }
 0xa9a   :  { %761 = vrot.lane.b32.xlu1 %v759_v59, %s1738_s29 }
 0xb08   :  { %v688_v60 = vpop.permute.xlu0 %687 }
 0xb09   :  { %1513 = vmatmul.mubr.msk.bf16.vlgmr.msra.gmra.mrb[16].mxu0 %vm42_vm1, %v688_v60 }
 0xb0a   :  { %1525 = vmatpush3.bf16.msra.mxu0 %v1773_v0  ;;  %1528 = vmatprep.mubr.msk.bf16.mxu0 %vm1735_vm0, %v1734_v1 }
 0xb0b   :  { %1526 = vmatprep.subr.bf16.mxu0 %v1734_v1 }
 0xb0c   :  { %v762_v61 = vpop.permute.xlu1 %761 }
 0xb0d   :  { %1521 = vmatmul.mubr.msk.bf16.vlgmr.msra.gmra.mrb[16].mxu1 %vm42_vm1, %v762_v61 }
 0xb0e   :  { %1533 = vmatpush3.bf16.msra.mxu1 %v1780_v2  ;;  %1527 = vmatpush3.bf16.msra.mxu0 %v1786_v3 }
 0xb0f   :  { %1534 = vmatprep.subr.bf16.mxu1 %v1734_v1  ;;  %1536 = vmatprep.mubr.msk.bf16.mxu1 %vm1735_vm0, %v1734_v1 }
 0xb10   :  { %1540 = vmatprep.subr.bf16.mxu0 %v1734_v1 }
 0xb12   :  { %1535 = vmatpush3.bf16.msra.mxu1 %v1795_v4 }
 0xb13   :  { %1548 = vmatprep.subr.bf16.mxu1 %v1734_v1 }
 0xbdc   :  { %v726_v63 = vpop.f32.mrb[16].mxu0 }
 0xbdd   :  { %v732_v5 = vadd.f32 %v1366_v62, %v726_v63  ;;  %v1514_v6 = vpop.f32.mrb[17].mxu0 }
 0xbde   :  { %v729_v7 = vpop.f32.mrb[18].mxu0 }
 0xbdf   :  { %1646 = vtanh.f32 %v732_v5  ;;  %v1515_v10 = vpop.f32.mrb[19].mxu0  ;;  %v1368_v19 = vmul.f32 -1.442695, %v732_v5 }
 0xbe0   :  { %v800_v11 = vpop.f32.mrb[16].mxu1 }
 0xbe1   :  { %v806_v13 = vadd.f32 %v1369_v8, %v800_v11  ;;  %v1522_v14 = vpop.f32.mrb[17].mxu1 }
 0xbe2   :  { %v803_v15 = vpop.f32.mrb[18].mxu1 }
 0xbe3   :  { %1648 = vtanh.f32 %v806_v13  ;;  %v1523_v16 = vpop.f32.mrb[19].mxu1  ;;  %v1371_v20 = vmul.f32 -1.442695, %v806_v13 }
 0xbe4   :  { %1650 = vpow2.f32 %v1368_v19 }
 0xbe5   :  { %1652 = vpow2.f32 %v1371_v20 }
 0xbe9   :  { %v1647_v17 = vpop.eup %1646 }
 0xbea   :  { %742 = vrot.lane.b32.xlu0 %v1647_v17, %s1737_s28 }
 0xbed   :  { %v1649_v18 = vpop.eup %1648 }
 0xbee   :  { %816 = vrot.lane.b32.xlu1 %v1649_v18, %s1737_s28  ;;  %v1651_v21 = vpop.eup %1650 }
 0xbef   :  { %v736_v22 = vadd.f32 1.0, %v1651_v21  ;;  %v1653_v23 = vpop.eup %1652 }
 0xbf0   :  { %v810_v25 = vadd.f32 1.0, %v1653_v23 }
 0xbf1   :  { %1654 = vrcp.f32 %v736_v22 }
 0xbf2   :  { %1656 = vrcp.f32 %v810_v25 }
 0xbfb   :  { %v1655_v26 = vpop.eup %1654 }
 0xbfc   :  { %v1657_v30 = vpop.eup %1656  ;;  %v740_v33 = vmul.f32 %v1655_v26, %v1957_v48 }
 0xbfd   :  { %v814_v36 = vmul.f32 %v1657_v30, %v1961_v51  ;;  %v1374_v51 = vld [vmem:[%s2222_s0 + $0xa] sm:$0x3] }
 0xc5c   :  { %v743_v28 = vpop.permute.xlu0 %742 }
 0xc5d   :  { %v745_v29 = vmul.f32 %v1655_v26, %v743_v28 }
 0xc5f   :  { %747 = vrot.lane.b32.xlu0 %v745_v29, %s1738_s29 }
 0xc60   :  { %v817_v31 = vpop.permute.xlu1 %816 }
 0xc61   :  { %v819_v32 = vmul.f32 %v1657_v30, %v817_v31 }
 0xc63   :  { %821 = vrot.lane.b32.xlu1 %v819_v32, %s1738_s29 }
 0xcd1   :  { %v748_v34 = vpop.permute.xlu0 %747 }
 0xcd2   :  { %v2001_v35 = vadd.f32 %v748_v34, %v740_v33 }
 0xcd4   :  { %1658 = vtanh.f32 %v2001_v35 }
 0xcd5   :  { %v822_v37 = vpop.permute.xlu1 %821 }
 0xcd6   :  { %v2005_v38 = vadd.f32 %v822_v37, %v814_v36 }
 0xcd8   :  { %1660 = vtanh.f32 %v2005_v38 }
 0xcde   :  { %v1659_v39 = vpop.eup %1658 }
 0xcdf   :  { %753 = vrot.lane.b32.xlu0 %v1659_v39, %s1737_s28 }
 0xce2   :  { %v1661_v40 = vpop.eup %1660 }
 0xce3   :  { %827 = vrot.lane.b32.xlu1 %v1661_v40, %s1737_s28 }
 0xd51   :  { %v754_v42 = vpop.permute.xlu0 %753 }
 0xd52   :  { %v2010_v43 = vmul.f32 %v1655_v26, %v754_v42 }
 0xd54   :  { %v843_v45 = vpack.c.bf16 %v2010_v43, %v2010_v43 }
 0xd55   :  { %v828_v46 = vpop.permute.xlu1 %827 }
 0xd56   :  { %v2014_v47 = vmul.f32 %v1657_v30, %v828_v46  ;;  %845 = vrot.lane.b32.xlu0 %v843_v45, %s1738_s29 }
 0xd58   :  { %v917_v48 = vpack.c.bf16 %v2014_v47, %v2014_v47 }
 0xd5a   :  { %919 = vrot.lane.b32.xlu1 %v917_v48, %s1738_s29 }
 0xdc8   :  { %v846_v49 = vpop.permute.xlu0 %845 }
 0xdc9   :  { %1529 = vmatmul.mubr.msk.bf16.vlgmr.msra.gmra.mrb[20].mxu0 %vm42_vm1, %v846_v49 }
 0xdca   :  { %1541 = vmatpush3.bf16.msra.mxu0 %v1773_v0  ;;  %1544 = vmatprep.mubr.msk.bf16.mxu0 %vm1735_vm0, %v1734_v1 }
 0xdcb   :  { %1542 = vmatprep.subr.bf16.mxu0 %v1734_v1 }
 0xdcc   :  { %v920_v50 = vpop.permute.xlu1 %919 }
 0xdcd   :  { %1537 = vmatmul.mubr.msk.bf16.vlgmr.msra.gmra.mrb[20].mxu1 %vm42_vm1, %v920_v50 }
 0xdce   :  { %1549 = vmatpush3.bf16.msra.mxu1 %v1780_v2  ;;  %1543 = vmatpush3.bf16.msra.mxu0 %v1786_v3 }
 0xdcf   :  { %1550 = vmatprep.subr.bf16.mxu1 %v1734_v1  ;;  %1552 = vmatprep.mubr.msk.bf16.mxu1 %vm1735_vm0, %v1734_v1 }
 0xdd0   :  { %1556 = vmatprep.subr.bf16.mxu0 %v1734_v1 }
 0xdd2   :  { %1551 = vmatpush3.bf16.msra.mxu1 %v1795_v4 }
 0xdd3   :  { %1564 = vmatprep.subr.bf16.mxu1 %v1734_v1 }
 0xe9c   :  { %v884_v52 = vpop.f32.mrb[20].mxu0 }
 0xe9d   :  { %v890_v53 = vadd.f32 %v1374_v51, %v884_v52  ;;  %v1530_v54 = vpop.f32.mrb[21].mxu0 }
 0xe9e   :  { %v887_v56 = vpop.f32.mrb[22].mxu0 }
 0xe9f   :  { %1662 = vtanh.f32 %v890_v53  ;;  %v1531_v59 = vpop.f32.mrb[23].mxu0  ;;  %v1376_v8 = vmul.f32 -1.442695, %v890_v53 }
 0xea0   :  { %v958_v60 = vpop.f32.mrb[20].mxu1 }
 0xea1   :  { %v964_v61 = vadd.f32 %v1377_v57, %v958_v60  ;;  %v1538_v62 = vpop.f32.mrb[21].mxu1 }
 0xea2   :  { %v961_v63 = vpop.f32.mrb[22].mxu1 }
 0xea3   :  { %1664 = vtanh.f32 %v964_v61  ;;  %v1539_v5 = vpop.f32.mrb[23].mxu1  ;;  %v1379_v10 = vmul.f32 -1.442695, %v964_v61 }
 0xea4   :  { %1666 = vpow2.f32 %v1376_v8 }
 0xea5   :  { %1668 = vpow2.f32 %v1379_v10 }
 0xea9   :  { %v1663_v6 = vpop.eup %1662 }
 0xeaa   :  { %900 = vrot.lane.b32.xlu0 %v1663_v6, %s1737_s28 }
 0xead   :  { %v1665_v7 = vpop.eup %1664 }
 0xeae   :  { %974 = vrot.lane.b32.xlu1 %v1665_v7, %s1737_s28  ;;  %v1667_v11 = vpop.eup %1666 }
 0xeaf   :  { %v894_v13 = vadd.f32 1.0, %v1667_v11  ;;  %v1669_v14 = vpop.eup %1668 }
 0xeb0   :  { %v968_v15 = vadd.f32 1.0, %v1669_v14 }
 0xeb1   :  { %1670 = vrcp.f32 %v894_v13 }
 0xeb2   :  { %1672 = vrcp.f32 %v968_v15 }
 0xebb   :  { %v1671_v16 = vpop.eup %1670 }
 0xebc   :  { %v1673_v19 = vpop.eup %1672  ;;  %v898_v22 = vmul.f32 %v1671_v16, %v2001_v35 }
 0xebd   :  { %v972_v26 = vmul.f32 %v1673_v19, %v2005_v38 }
 0xf1c   :  { %v901_v17 = vpop.permute.xlu0 %900 }
 0xf1d   :  { %v903_v18 = vmul.f32 %v1671_v16, %v901_v17 }
 0xf1f   :  { %905 = vrot.lane.b32.xlu0 %v903_v18, %s1738_s29 }
 0xf20   :  { %v975_v20 = vpop.permute.xlu1 %974 }
 0xf21   :  { %v977_v21 = vmul.f32 %v1673_v19, %v975_v20 }
 0xf23   :  { %979 = vrot.lane.b32.xlu1 %v977_v21, %s1738_s29 }
 0xf91   :  { %v906_v23 = vpop.permute.xlu0 %905 }
 0xf92   :  { %v2045_v25 = vadd.f32 %v906_v23, %v898_v22 }
 0xf94   :  { %1674 = vtanh.f32 %v2045_v25 }
 0xf95   :  { %v980_v28 = vpop.permute.xlu1 %979 }
 0xf96   :  { %v2049_v29 = vadd.f32 %v980_v28, %v972_v26  ;;  %v1390_v28 = vld [vmem:[%s2222_s0 + $0xe] sm:$0x3] }
 0xf98   :  { %1676 = vtanh.f32 %v2049_v29 }
 0xf9e   :  { %v1675_v30 = vpop.eup %1674 }
 0xf9f   :  { %911 = vrot.lane.b32.xlu0 %v1675_v30, %s1737_s28 }
 0xfa2   :  { %v1677_v31 = vpop.eup %1676 }
 0xfa3   :  { %985 = vrot.lane.b32.xlu1 %v1677_v31, %s1737_s28 }
0x1011   :  { %v912_v32 = vpop.permute.xlu0 %911 }
0x1012   :  { %v2054_v33 = vmul.f32 %v1671_v16, %v912_v32 }
0x1014   :  { %v1001_v34 = vpack.c.bf16 %v2054_v33, %v2054_v33 }
0x1015   :  { %v986_v35 = vpop.permute.xlu1 %985 }
0x1016   :  { %v2058_v36 = vmul.f32 %v1673_v19, %v986_v35  ;;  %1003 = vrot.lane.b32.xlu0 %v1001_v34, %s1738_s29  ;;  %v1231_v34 = vld [vmem:[%s2223_s1] sm:$0x3] }
0x1018   :  { %v1075_v37 = vpack.c.bf16 %v2058_v36, %v2058_v36 }
0x101a   :  { %1077 = vrot.lane.b32.xlu1 %v1075_v37, %s1738_s29 }
0x1088   :  { %v1004_v38 = vpop.permute.xlu0 %1003 }
0x1089   :  { %1545 = vmatmul.mubr.msk.bf16.vlgmr.msra.gmra.mrb[24].mxu0 %vm42_vm1, %v1004_v38 }
0x108a   :  { %1557 = vmatpush3.bf16.msra.mxu0 %v1773_v0  ;;  %1560 = vmatprep.mubr.msk.bf16.mxu0 %vm1735_vm0, %v1734_v1  ;;  %v1382_v0 = vld [vmem:[%s2222_s0 + $0xc] sm:$0x3] }
0x108b   :  { %1558 = vmatprep.subr.bf16.mxu0 %v1734_v1 }
0x108c   :  { %v1078_v39 = vpop.permute.xlu1 %1077 }
0x108d   :  { %1553 = vmatmul.mubr.msk.bf16.vlgmr.msra.gmra.mrb[24].mxu1 %vm42_vm1, %v1078_v39 }
0x108e   :  { %1565 = vmatpush3.bf16.msra.mxu1 %v1780_v2  ;;  %1559 = vmatpush3.bf16.msra.mxu0 %v1786_v3  ;;  %v1385_v2 = vld [vmem:[%s2223_s1 + $0x2] sm:$0x3] }
0x108f   :  { %1566 = vmatprep.subr.bf16.mxu1 %v1734_v1  ;;  %1568 = vmatprep.mubr.msk.bf16.mxu1 %vm1735_vm0, %v1734_v1 }
0x1092   :  { %1567 = vmatpush3.bf16.msra.mxu1 %v1795_v4 }
0x115c   :  { %v1042_v40 = vpop.f32.mrb[24].mxu0 }
0x115d   :  { %v1048_v42 = vadd.f32 %v1382_v0, %v1042_v40  ;;  %v1546_v45 = vpop.f32.mrb[25].mxu0 }
0x115e   :  { %v1045_v46 = vpop.f32.mrb[26].mxu0 }
0x115f   :  { %1678 = vtanh.f32 %v1048_v42  ;;  %v1547_v3 = vpop.f32.mrb[27].mxu0  ;;  %v1384_v53 = vmul.f32 -1.442695, %v1048_v42 }
0x1160   :  { %v1116_v48 = vpop.f32.mrb[24].mxu1 }
0x1161   :  { %v1122_v49 = vadd.f32 %v1385_v2, %v1116_v48  ;;  %v1554_v50 = vpop.f32.mrb[25].mxu1 }
0x1162   :  { %v1119_v1 = vpop.f32.mrb[26].mxu1 }
0x1163   :  { %1680 = vtanh.f32 %v1122_v49  ;;  %v1555_v4 = vpop.f32.mrb[27].mxu1  ;;  %v1387_v54 = vmul.f32 -1.442695, %v1122_v49 }
0x1164   :  { %1682 = vpow2.f32 %v1384_v53 }
0x1165   :  { %1684 = vpow2.f32 %v1387_v54 }
0x1169   :  { %v1679_v51 = vpop.eup %1678 }
0x116a   :  { %1058 = vrot.lane.b32.xlu0 %v1679_v51, %s1737_s28 }
0x116d   :  { %v1681_v52 = vpop.eup %1680 }
0x116e   :  { %1132 = vrot.lane.b32.xlu1 %v1681_v52, %s1737_s28  ;;  %v1683_v56 = vpop.eup %1682 }
0x116f   :  { %v1052_v57 = vadd.f32 1.0, %v1683_v56  ;;  %v1685_v59 = vpop.eup %1684 }
0x1170   :  { %v1126_v60 = vadd.f32 1.0, %v1685_v59 }
0x1171   :  { %1686 = vrcp.f32 %v1052_v57 }
0x1172   :  { %1688 = vrcp.f32 %v1126_v60 }
0x117b   :  { %v1687_v61 = vpop.eup %1686 }
0x117c   :  { %v1689_v5 = vpop.eup %1688  ;;  %v1056_v8 = vmul.f32 %v1687_v61, %v2045_v25 }
0x117d   :  { %v1130_v13 = vmul.f32 %v1689_v5, %v2049_v29 }
0x11dc   :  { %v1059_v62 = vpop.permute.xlu0 %1058 }
0x11dd   :  { %v1061_v63 = vmul.f32 %v1687_v61, %v1059_v62 }
0x11df   :  { %1063 = vrot.lane.b32.xlu0 %v1061_v63, %s1738_s29 }
0x11e0   :  { %v1133_v6 = vpop.permute.xlu1 %1132 }
0x11e1   :  { %v1135_v7 = vmul.f32 %v1689_v5, %v1133_v6 }
0x11e3   :  { %1137 = vrot.lane.b32.xlu1 %v1135_v7, %s1738_s29 }
0x1251   :  { %v1064_v10 = vpop.permute.xlu0 %1063 }
0x1252   :  { %v1066_v11 = vadd.f32 %v1064_v10, %v1056_v8 }
0x1254   :  { %1690 = vtanh.f32 %v1066_v11 }
0x1255   :  { %v1138_v14 = vpop.permute.xlu1 %1137 }
0x1256   :  { %v1140_v15 = vadd.f32 %v1138_v14, %v1130_v13 }
0x1258   :  { %1692 = vtanh.f32 %v1140_v15 }
0x125e   :  { %v1691_v16 = vpop.eup %1690 }
0x125f   :  { %1069 = vrot.lane.b32.xlu0 %v1691_v16, %s1737_s28 }
0x1262   :  { %v1693_v17 = vpop.eup %1692 }
0x1263   :  { %1143 = vrot.lane.b32.xlu1 %v1693_v17, %s1737_s28 }
0x12d1   :  { %v1070_v18 = vpop.permute.xlu0 %1069 }
0x12d2   :  { %v2090_v19 = vmul.f32 %v1687_v61, %v1070_v18 }
0x12d4   :  { %v1159_v20 = vpack.c.bf16 %v2090_v19, %v2090_v19 }
0x12d5   :  { %v1144_v21 = vpop.permute.xlu1 %1143 }
0x12d6   :  { %v2094_v22 = vmul.f32 %v1689_v5, %v1144_v21  ;;  %1161 = vrot.lane.b32.xlu0 %v1159_v20, %s1738_s29 }
0x12d8   :  { %v1232_v23 = vpack.c.bf16 %v2094_v22, %v2094_v22 }
0x12da   :  { %1234 = vrot.lane.b32.xlu1 %v1232_v23, %s1738_s29 }
0x1348   :  { %v1162_v25 = vpop.permute.xlu0 %1161 }
0x1349   :  { %1561 = vmatmul.mubr.msk.bf16.vlgmr.msra.gmra.mrb[28].mxu0 %vm42_vm1, %v1162_v25 }
0x134c   :  { %v1235_v26 = vpop.permute.xlu1 %1234 }
0x134d   :  { %1569 = vmatmul.mubr.msk.bf16.vlgmr.msra.gmra.mrb[28].mxu1 %vm42_vm1, %v1235_v26 }
0x141c   :  { %v1200_v29 = vpop.f32.mrb[28].mxu0 }
0x141d   :  { %v1206_v30 = vadd.f32 %v1390_v28, %v1200_v29  ;;  %v1562_v31 = vpop.f32.mrb[29].mxu0 }
0x141e   :  { %v1203_v32 = vpop.f32.mrb[30].mxu0 }
0x141f   :  { %1694 = vtanh.f32 %v1206_v30  ;;  %v1563_v35 = vpop.f32.mrb[31].mxu0  ;;  %v1392_v46 = vmul.f32 -1.442695, %v1206_v30 }
0x1420   :  { %v1273_v37 = vpop.f32.mrb[28].mxu1 }
0x1421   :  { %v1279_v38 = vadd.f32 %v1273_v37, %v1231_v34  ;;  %v1570_v39 = vpop.f32.mrb[29].mxu1 }
0x1422   :  { %v1276_v0 = vpop.f32.mrb[30].mxu1 }
0x1423   :  { %1696 = vtanh.f32 %v1279_v38  ;;  %v1571_v40 = vpop.f32.mrb[31].mxu1  ;;  %v1394_v2 = vmul.f32 -1.442695, %v1279_v38 }
0x1424   :  { %1698 = vpow2.f32 %v1392_v46 }
0x1425   :  { %1700 = vpow2.f32 %v1394_v2 }
0x1429   :  { %v1695_v42 = vpop.eup %1694 }
0x142a   :  { %1216 = vrot.lane.b32.xlu0 %v1695_v42, %s1737_s28 }
0x142d   :  { %v1697_v45 = vpop.eup %1696 }
0x142e   :  { %1289 = vrot.lane.b32.xlu1 %v1697_v45, %s1737_s28  ;;  %v1699_v3 = vpop.eup %1698 }
0x142f   :  { %v1210_v48 = vadd.f32 1.0, %v1699_v3  ;;  %v1701_v49 = vpop.eup %1700 }
0x1430   :  { %v1283_v50 = vadd.f32 1.0, %v1701_v49 }
0x1431   :  { %1702 = vrcp.f32 %v1210_v48 }
0x1432   :  { %1704 = vrcp.f32 %v1283_v50 }
0x143b   :  { %v1703_v1 = vpop.eup %1702 }
0x143c   :  { %v1705_v52 = vpop.eup %1704  ;;  %v1214_v56 = vmul.f32 %v1703_v1, %v1066_v11 }
0x143d   :  { %v1287_v60 = vmul.f32 %v1705_v52, %v1140_v15 }
0x149c   :  { %v1217_v4 = vpop.permute.xlu0 %1216 }
0x149d   :  { %v1219_v51 = vmul.f32 %v1703_v1, %v1217_v4 }
0x149f   :  { %1221 = vrot.lane.b32.xlu0 %v1219_v51, %s1738_s29 }
0x14a0   :  { %v1290_v53 = vpop.permute.xlu1 %1289 }
0x14a1   :  { %v1292_v54 = vmul.f32 %v1705_v52, %v1290_v53 }
0x14a3   :  { %1294 = vrot.lane.b32.xlu1 %v1292_v54, %s1738_s29 }
0x1511   :  { %v1222_v57 = vpop.permute.xlu0 %1221 }
0x1512   :  { %v1224_v59 = vadd.f32 %v1222_v57, %v1214_v56 }
0x1514   :  { %1706 = vtanh.f32 %v1224_v59 }
0x1515   :  { %v1295_v61 = vpop.permute.xlu1 %1294 }
0x1516   :  { %v1297_v62 = vadd.f32 %v1295_v61, %v1287_v60 }
0x1518   :  { %1708 = vtanh.f32 %v1297_v62 }
0x151e   :  { %v1707_v63 = vpop.eup %1706 }
0x151f   :  { %1227 = vrot.lane.b32.xlu0 %v1707_v63, %s1737_s28 }
0x1522   :  { %v1709_v5 = vpop.eup %1708 }
0x1523   :  { %1300 = vrot.lane.b32.xlu1 %v1709_v5, %s1737_s28  ;;  %197 = vrot.lane.b32.xlu0 %v1838_v44, %s1737_s28 }
0x1527   :  { %191 = vrot.lane.b32.xlu1 %v1834_v41, %s1738_s29  ;;  %358 = vrot.lane.b32.xlu0 %v1882_v27, %s1737_s28 }
0x152b   :  { %352 = vrot.lane.b32.xlu1 %v1878_v24, %s1738_s29  ;;  %518 = vrot.lane.b32.xlu0 %v1926_v12, %s1737_s28 }
0x152f   :  { %512 = vrot.lane.b32.xlu1 %v1922_v9, %s1738_s29  ;;  %678 = vrot.lane.b32.xlu0 %v1970_v58, %s1737_s28 }
0x1533   :  { %672 = vrot.lane.b32.xlu1 %v1966_v55, %s1738_s29  ;;  %832 = vrot.lane.b32.xlu0 %v2010_v43, %s1738_s29 }
0x1537   :  { %837 = vrot.lane.b32.xlu1 %v2014_v47, %s1737_s28  ;;  %990 = vrot.lane.b32.xlu0 %v2054_v33, %s1738_s29 }
0x153b   :  { %995 = vrot.lane.b32.xlu1 %v2058_v36, %s1737_s28 }
0x1591   :  { %v1228_v41 = vpop.permute.xlu0 %1227 }
0x1592   :  { %v1230_v44 = vmul.f32 %v1703_v1, %v1228_v41 }
0x1594   :  { %1305 = vrot.lane.b32.xlu0 %v1230_v44, %s1738_s29 }
0x1595   :  { %v1301_v24 = vpop.permute.xlu1 %1300  ;;  %v198_v27 = vpop.permute.xlu0 %197 }
0x1596   :  { %v1303_v9 = vmul.f32 %v1705_v52, %v1301_v24  ;;  %1341 = vst.msk [vmem:[%s2226_s4 + $0xe] sm:$0x3] %vm201_vm2, %v198_v27 }
0x1598   :  { %1310 = vrot.lane.b32.xlu1 %v1303_v9, %s1737_s28  ;;  %1148 = vrot.lane.b32.xlu0 %v2090_v19, %s1738_s29 }
0x1599   :  { %v192_v12 = vpop.permute.xlu1 %191  ;;  %v359_v55 = vpop.permute.xlu0 %358 }
0x159a   :  { %195 = vst.msk [vmem:[%s2226_s4] sm:$0x3] %vm194_vm3, %v192_v12 }
0x159b   :  { %1349 = vst.msk [vmem:[%s2226_s4 + $0xc] sm:$0x3] %vm201_vm2, %v359_v55 }
0x159c   :  { %1153 = vrot.lane.b32.xlu1 %v2094_v22, %s1737_s28 }
0x159d   :  { %v353_v58 = vpop.permute.xlu1 %352  ;;  %v519_v43 = vpop.permute.xlu0 %518 }
0x159e   :  { %1348 = vst.msk [vmem:[%s2226_s4 + $0x2] sm:$0x3] %vm194_vm3, %v353_v58 }
0x159f   :  { %1357 = vst.msk [vmem:[%s2226_s4 + $0xa] sm:$0x3] %vm201_vm2, %v519_v43 }
0x15a1   :  { %v513_v47 = vpop.permute.xlu1 %512  ;;  %v679_v33 = vpop.permute.xlu0 %678 }
0x15a2   :  { %1356 = vst.msk [vmem:[%s2226_s4 + $0x4] sm:$0x3] %vm194_vm3, %v513_v47 }
0x15a3   :  { %1365 = vst.msk [vmem:[%s2226_s4 + $0x8] sm:$0x3] %vm201_vm2, %v679_v33 }
0x15a5   :  { %v673_v36 = vpop.permute.xlu1 %672  ;;  %v833_v6 = vpop.permute.xlu0 %832 }
0x15a6   :  { %1364 = vst.msk [vmem:[%s2226_s4 + $0x6] sm:$0x3] %vm194_vm3, %v673_v36  ;;  %1372 = vst.msk [vmem:[%s2226_s4 + $0x8] sm:$0x3] %vm194_vm3, %v833_v6 }
0x15a9   :  { %v838_v7 = vpop.permute.xlu1 %837  ;;  %v991_v8 = vpop.permute.xlu0 %990 }
0x15aa   :  { %1373 = vst.msk [vmem:[%s2226_s4 + $0x6] sm:$0x3] %vm201_vm2, %v838_v7 }
0x15ab   :  { %1380 = vst.msk [vmem:[%s2226_s4 + $0xa] sm:$0x3] %vm194_vm3, %v991_v8 }
0x15ad   :  { %v996_v10 = vpop.permute.xlu1 %995 }
0x15ae   :  { %1381 = vst.msk [vmem:[%s2226_s4 + $0x4] sm:$0x3] %vm201_vm2, %v996_v10 }
0x1606   :  { %v1306_v11 = vpop.permute.xlu0 %1305 }
0x1607   :  { %1395 = vst.msk [vmem:[%s2226_s4 + $0xe] sm:$0x3] %vm194_vm3, %v1306_v11  ;;  %1314 = vst.msk [vmem:[#allocation2] sm:$0x3] %vm194_vm3, %v1306_v11 }
0x160a   :  { %v1311_v13 = vpop.permute.xlu1 %1310  ;;  %v1149_v14 = vpop.permute.xlu0 %1148 }
0x160b   :  { %1313 = vst.msk [vmem:[%s2226_s4] sm:$0x3] %vm201_vm2, %v1311_v13  ;;  %1315 = vst.msk [vmem:[#allocation2] sm:$0x3] %vm201_vm2, %v1311_v13 }
0x160c   :  { %1388 = vst.msk [vmem:[%s2226_s4 + $0xc] sm:$0x3] %vm194_vm3, %v1149_v14 }
0x160d   :  { %1721 = shalt.err (!%p1718_p4)
}
0x160e   :  { %s1722_s12 = scalar_lea.hbm %s2227_s5, 32 }
0x160f   :  { %p1723_p5 = scmp.ne.s32.totalorder %s2227_s5, %s1722_s12  ;;  %p1726_p6 = scmp.lt.u32.totalorder %s1722_s12, %s2227_s5 }
0x1611   :  { %p1728_p7 = pnand %p1726_p6, %p1723_p5 }
0x1613   :  { %1731 = shalt.err (!%p1728_p7)
}
0x1614   :  { %1327 = dma.vmem_to_hbm [thread:$0]  %s1325_s27, 32, %s2227_s5, [#allocation3]   ;;  %v1154_v15 = vpop.permute.xlu1 %1153 }
0x1615   :  { %1389 = vst.msk [vmem:[%s2226_s4 + $0x2] sm:$0x3] %vm201_vm2, %v1154_v15 }
0x1616   :  { %1732 = dma.done.wait [#allocation3], 32  }
0x1617   :  { %1733 = vsyncadd [#allocation3], 4294967264 }
0x1618   :  { %1333 = vsyncpa [#allocation3], 1 }

</bundles_post_ra>
